<compile_context>
chip_gen: v7x
topology: tpu7x:2x2x1
jax: 0.10.0
libtpu: 0.0.40
codegen_flags: <defaults>
</compile_context>

<pallas_src>
import functools

import jax
import jax.numpy as jnp
from jax.experimental import pallas as pl
from jax.experimental.pallas import tpu as pltpu

NEG_INF = -1e30


def _vmem():
    return pl.BlockSpec(memory_space=pltpu.MemorySpace.VMEM)


# ---------------- fused forward kernel ----------------

def _fused_forward_kernel(block_meta, num_graphs, fg_dim, *refs):
    """block_meta: tuple of (hidden_dim, has_residual_proj) per residual block."""
    out_ref = refs[-1]
    it = iter(refs[:-1])
    x_ref = next(it)
    adj_ref = next(it)
    mneg_ref = next(it)
    gf_ref = next(it)

    adj_pos = adj_ref[...] > 0.0        # computed once, reused by every GATConv

    def gat_conv(h_in, hdim):
        # Single-head PyG GATConv (heads=1, concat=True, slope=0.2, self-loops, bias).
        w_aug = next(it)[...]           # (Cin, hdim + 2) = [W | W@att_src | W@att_dst]
        bias = next(it)[...]            # (1, hdim)
        haug = jnp.dot(h_in, w_aug, preferred_element_type=jnp.float32)
        h = haug[:, :hdim]              # (N, hdim)
        a_src = haug[:, hdim:hdim + 1]  # (N, 1)
        a_dst = haug[:, hdim + 1:hdim + 2]
        # e[i, j] = a_dst[i] + a_src[j]; the (N,1)->(1,N) transpose is one XLU relayout
        # (negligible at this N; the projections themselves are folded into the main dot).
        e = a_dst + a_src.T
        # LeakyReLU(0.2) + adjacency mask fused into a single select.
        e = jnp.where(adj_pos, jnp.where(e > 0.0, e, 0.2 * e), NEG_INF)
        e = e - jnp.max(e, axis=1, keepdims=True)
        p = jnp.exp(e)                  # masked entries underflow to exactly 0
        p = p * pl.reciprocal(jnp.sum(p, axis=1, keepdims=True), approx=False)
        return jnp.dot(p, h, preferred_element_type=jnp.float32) + bias

    def graph_norm(h, relu):
        # PyG GraphNorm with batch=None (single graph over all nodes), eps=1e-5.
        scale = next(it)[...]
        weight = next(it)[...]
        bias = next(it)[...]
        mean = jnp.mean(h, axis=0, keepdims=True)
        xc = h - scale * mean
        var = jnp.mean(xc * xc, axis=0, keepdims=True)
        y = weight * xc * jax.lax.rsqrt(var + 1e-5) + bias
        return jnp.maximum(y, 0.0) if relu else y

    h = x_ref[...]
    for hdim, has_res in block_meta:
        x_in = h
        h = gat_conv(h, hdim)
        h = graph_norm(h, relu=True)
        # TODO(synk): Dropout layers run in inference mode (identity); no RNG dropout here.
        h = gat_conv(h, hdim)
        h = graph_norm(h, relu=False)
        if has_res:
            rw = next(it)[...]
            rb = next(it)[...]
            res = jnp.dot(x_in, rw, preferred_element_type=jnp.float32) + rb
        else:
            res = x_in
        h = jnp.maximum(h + res, 0.0)

    # global_max_pool: masked per-graph max (mask is 0 / -1e30), kept as VMEM values.
    mneg = mneg_ref[...]
    pooled = jnp.concatenate(
        [jnp.max(h + mneg[:, g:g + 1], axis=0, keepdims=True) for g in range(num_graphs)],
        axis=0)                                            # (G, H_last)

    # MLP head; fc1's weight is pre-split so we never build a (H_last + fg_dim)-wide concat.
    fc1_wx = next(it)[...]
    fc1_wg = next(it)[...]
    fc1_b = next(it)[...]
    gf = gf_ref[...]                                       # (1, fg_dim)
    if fg_dim == 1:
        gf_term = gf * fc1_wg                              # (1,1) * (1,F1) broadcast
    else:
        gf_term = jnp.dot(gf, fc1_wg, preferred_element_type=jnp.float32)
    z = jnp.dot(pooled, fc1_wx, preferred_element_type=jnp.float32) + gf_term + fc1_b
    z = jnp.maximum(z, 0.0)
    for _ in range(2):                                     # fc2, fc3 (+ ReLU)
        w = next(it)[...]
        b = next(it)[...]
        z = jnp.maximum(jnp.dot(z, w, preferred_element_type=jnp.float32) + b, 0.0)
    w = next(it)[...]                                      # classification head
    b = next(it)[...]
    out_ref[...] = jnp.dot(z, w, preferred_element_type=jnp.float32) + b


def gnn_forward(params, x, adj, mask_neg, graph_features):
    gf = graph_features.reshape(1, -1).astype(jnp.float32)
    flat = [x, adj, mask_neg, gf]
    block_meta = []
    for blk in params["blocks"]:
        hdim = blk["conv1"]["w_aug"].shape[1] - 2
        has_res = blk["res"] is not None
        block_meta.append((hdim, has_res))
        flat += [blk["conv1"]["w_aug"], blk["conv1"]["b"],
                 blk["gn1"]["scale"], blk["gn1"]["weight"], blk["gn1"]["bias"],
                 blk["conv2"]["w_aug"], blk["conv2"]["b"],
                 blk["gn2"]["scale"], blk["gn2"]["weight"], blk["gn2"]["bias"]]
        if has_res:
            flat += [blk["res"]["w"], blk["res"]["b"]]
    head = params["head"]
    flat += [head["fc1_wx"], head["fc1_wg"], head["fc1_b"],
             head["fc2"]["w"], head["fc2"]["b"],
             head["fc3"]["w"], head["fc3"]["b"],
             head["cls"]["w"], head["cls"]["b"]]

    num_graphs = mask_neg.shape[1]
    num_classes = head["cls"]["w"].shape[1]
    fg_dim = gf.shape[1]
    kernel = functools.partial(_fused_forward_kernel, tuple(block_meta), num_graphs, fg_dim)
    return pl.pallas_call(
        kernel,
        out_shape=jax.ShapeDtypeStruct((num_graphs, num_classes), jnp.float32),
        in_specs=[_vmem() for _ in flat],
        out_specs=_vmem(),
    )(*flat)


# ---------------- parameters ----------------

def init_params(key, in_feats, graph_feat_dim, hidden, fc_dims, num_classes):
    """Raw PyTorch-style parameters (W, att_src, att_dst, ... like the nn.Module)."""
    def nxt():
        nonlocal key
        key, sub = jax.random.split(key)
        return sub

    def lin(cin, cout):
        return {"w": jax.random.normal(nxt(), (cin, cout), jnp.float32) / jnp.sqrt(cin),
                "b": jax.random.normal(nxt(), (1, cout), jnp.float32) * 0.01}

    def gat(cin, cout):
        return {"w": jax.random.normal(nxt(), (cin, cout), jnp.float32) / jnp.sqrt(cin),
                "att_src": jax.random.normal(nxt(), (cout, 1), jnp.float32) / jnp.sqrt(cout),
                "att_dst": jax.random.normal(nxt(), (cout, 1), jnp.float32) / jnp.sqrt(cout),
                "b": jnp.zeros((1, cout), jnp.float32)}

    def gn(c):
        return {"scale": jnp.ones((1, c), jnp.float32),   # mean_scale
                "weight": jnp.ones((1, c), jnp.float32),
                "bias": jnp.zeros((1, c), jnp.float32)}

    blocks, cin = [], in_feats
    for h in hidden:
        blocks.append({"conv1": gat(cin, h), "gn1": gn(h),
                       "conv2": gat(h, h), "gn2": gn(h),
                       "res": lin(cin, h) if cin != h else None})
        cin = h
    return {"blocks": blocks,
            "fc1": lin(hidden[-1] + graph_feat_dim, fc_dims[0]),
            "fc2": lin(fc_dims[0], fc_dims[1]),
            "fc3": lin(fc_dims[1], fc_dims[2]),
            "cls": lin(fc_dims[2], num_classes)}


def prepare_params(raw):
    """One-time parameter folding for the fused kernel (done outside the hot path)."""
    def fold_gat(g):
        w = g["w"]
        w_aug = jnp.concatenate([w, w @ g["att_src"], w @ g["att_dst"]], axis=1)
        return {"w_aug": w_aug, "b": g["b"]}

    blocks = [{"conv1": fold_gat(blk["conv1"]), "gn1": blk["gn1"],
               "conv2": fold_gat(blk["conv2"]), "gn2": blk["gn2"],
               "res": blk["res"]} for blk in raw["blocks"]]
    h_last = raw["blocks"][-1]["gn2"]["weight"].shape[1]
    fc1_w = raw["fc1"]["w"]                               # (h_last + graph_feat_dim, F1)
    head = {"fc1_wx": fc1_w[:h_last], "fc1_wg": fc1_w[h_last:], "fc1_b": raw["fc1"]["b"],
            "fc2": raw["fc2"], "fc3": raw["fc3"], "cls": raw["cls"]}
    return {"blocks": blocks, "head": head}


# ---------------- pure-JAX reference (correctness check only) ----------------

def _reference_forward(raw, x, adj, mask_neg, graph_features):
    def gat(x, p):
        h = x @ p["w"]
        a_src = h @ p["att_src"]
        a_dst = h @ p["att_dst"]
        e = a_dst + a_src.T
        e = jnp.where(e > 0, e, 0.2 * e)
        e = jnp.where(adj > 0, e, NEG_INF)
        e = e - e.max(axis=1, keepdims=True)
        w = jnp.exp(e) * (adj > 0)
        w = w / w.sum(axis=1, keepdims=True)
        return w @ h + p["b"]

    def gn(x, p, relu):
        mean = x.mean(axis=0, keepdims=True)
        xc = x - p["scale"] * mean
        var = (xc * xc).mean(axis=0, keepdims=True)
        y = p["weight"] * xc / jnp.sqrt(var + 1e-5) + p["bias"]
        return jnp.maximum(y, 0.0) if relu else y

    h = x
    for blk in raw["blocks"]:
        r = h
        h = gn(gat(h, blk["conv1"]), blk["gn1"], True)
        h = gn(gat(h, blk["conv2"]), blk["gn2"], False)
        if blk["res"] is not None:
            r = r @ blk["res"]["w"] + blk["res"]["b"]
        h = jnp.maximum(h + r, 0.0)
    pooled = jnp.max(h[:, None, :] + mask_neg[:, :, None], axis=0)   # (G, H_last)
    g = pooled.shape[0]
    gf = jnp.broadcast_to(graph_features[None, :], (g, graph_features.shape[0]))
    z = jnp.concatenate([pooled, gf], axis=1)
    z = jnp.maximum(z @ raw["fc1"]["w"] + raw["fc1"]["b"], 0.0)
    z = jnp.maximum(z @ raw["fc2"]["w"] + raw["fc2"]["b"], 0.0)
    z = jnp.maximum(z @ raw["fc3"]["w"] + raw["fc3"]["b"], 0.0)
    return z @ raw["cls"]["w"] + raw["cls"]["b"]


if __name__ == "__main__":
    # Small shapes consistent with the module's forward.
    N, IN_FEATS, E, G, FG = 32, 16, 64, 2, 1
    HIDDEN = [32, 64, 128]          # scaled-down hidden_channels
    FC = [256, 128, 64]             # scaled-down fc_out_channels
    NUM_CLASSES = 7

    key = jax.random.PRNGKey(0)
    kx, ks, kd, kg, kp = jax.random.split(key, 5)

    x = jax.random.normal(kx, (N, IN_FEATS), jnp.float32)
    src = jax.random.randint(ks, (E,), 0, N)
    dst = jax.random.randint(kd, (E,), 0, N)
    adj = jnp.zeros((N, N), jnp.float32).at[dst, src].set(1.0)      # adj[dst, src]
    adj = jnp.maximum(adj, jnp.eye(N, dtype=jnp.float32))           # add self loops

    batch = jnp.repeat(jnp.arange(G), N // G)                       # node -> graph id
    mask_neg = jnp.where(batch[:, None] == jnp.arange(G)[None, :],
                         0.0, NEG_INF).astype(jnp.float32)          # (N, G)
    graph_features = jax.random.normal(kg, (FG,), jnp.float32)      # data.graph_features

    raw = init_params(kp, IN_FEATS, FG, HIDDEN, FC, NUM_CLASSES)
    params = prepare_params(raw)

    fwd = jax.jit(gnn_forward)
    out = jax.block_until_ready(fwd(params, x, adj, mask_neg, graph_features))
    assert out.shape == (G, NUM_CLASSES)
    assert bool(jnp.all(jnp.isfinite(out)))

    ref = _reference_forward(raw, x, adj, mask_neg, graph_features)
    assert bool(jnp.allclose(out, ref, rtol=2e-3, atol=2e-3)), "mismatch vs pure-JAX reference"
    print("KERNEL_OK")
</pallas_src>

<mosaic_0001>
module attributes {stable_mosaic.version = 11 : i64} {
  func.func @_fused_forward_kernel(%arg0: memref<32x16xf32, #tpu.memory_space<vmem>>, %arg1: memref<32x32xf32, #tpu.memory_space<vmem>>, %arg2: memref<32x2xf32, #tpu.memory_space<vmem>>, %arg3: memref<1x1xf32, #tpu.memory_space<vmem>>, %arg4: memref<16x34xf32, #tpu.memory_space<vmem>>, %arg5: memref<1x32xf32, #tpu.memory_space<vmem>>, %arg6: memref<1x32xf32, #tpu.memory_space<vmem>>, %arg7: memref<1x32xf32, #tpu.memory_space<vmem>>, %arg8: memref<1x32xf32, #tpu.memory_space<vmem>>, %arg9: memref<32x34xf32, #tpu.memory_space<vmem>>, %arg10: memref<1x32xf32, #tpu.memory_space<vmem>>, %arg11: memref<1x32xf32, #tpu.memory_space<vmem>>, %arg12: memref<1x32xf32, #tpu.memory_space<vmem>>, %arg13: memref<1x32xf32, #tpu.memory_space<vmem>>, %arg14: memref<16x32xf32, #tpu.memory_space<vmem>>, %arg15: memref<1x32xf32, #tpu.memory_space<vmem>>, %arg16: memref<32x66xf32, #tpu.memory_space<vmem>>, %arg17: memref<1x64xf32, #tpu.memory_space<vmem>>, %arg18: memref<1x64xf32, #tpu.memory_space<vmem>>, %arg19: memref<1x64xf32, #tpu.memory_space<vmem>>, %arg20: memref<1x64xf32, #tpu.memory_space<vmem>>, %arg21: memref<64x66xf32, #tpu.memory_space<vmem>>, %arg22: memref<1x64xf32, #tpu.memory_space<vmem>>, %arg23: memref<1x64xf32, #tpu.memory_space<vmem>>, %arg24: memref<1x64xf32, #tpu.memory_space<vmem>>, %arg25: memref<1x64xf32, #tpu.memory_space<vmem>>, %arg26: memref<32x64xf32, #tpu.memory_space<vmem>>, %arg27: memref<1x64xf32, #tpu.memory_space<vmem>>, %arg28: memref<64x130xf32, #tpu.memory_space<vmem>>, %arg29: memref<1x128xf32, #tpu.memory_space<vmem>>, %arg30: memref<1x128xf32, #tpu.memory_space<vmem>>, %arg31: memref<1x128xf32, #tpu.memory_space<vmem>>, %arg32: memref<1x128xf32, #tpu.memory_space<vmem>>, %arg33: memref<128x130xf32, #tpu.memory_space<vmem>>, %arg34: memref<1x128xf32, #tpu.memory_space<vmem>>, %arg35: memref<1x128xf32, #tpu.memory_space<vmem>>, %arg36: memref<1x128xf32, #tpu.memory_space<vmem>>, %arg37: memref<1x128xf32, #tpu.memory_space<vmem>>, %arg38: memref<64x128xf32, #tpu.memory_space<vmem>>, %arg39: memref<1x128xf32, #tpu.memory_space<vmem>>, %arg40: memref<128x256xf32, #tpu.memory_space<vmem>>, %arg41: memref<1x256xf32, #tpu.memory_space<vmem>>, %arg42: memref<1x256xf32, #tpu.memory_space<vmem>>, %arg43: memref<256x128xf32, #tpu.memory_space<vmem>>, %arg44: memref<1x128xf32, #tpu.memory_space<vmem>>, %arg45: memref<128x64xf32, #tpu.memory_space<vmem>>, %arg46: memref<1x64xf32, #tpu.memory_space<vmem>>, %arg47: memref<64x7xf32, #tpu.memory_space<vmem>>, %arg48: memref<1x7xf32, #tpu.memory_space<vmem>>, %arg49: memref<2x7xf32, #tpu.memory_space<vmem>>) attributes {dimension_semantics = [], scalar_prefetch = 0 : i64, scratch_operands = 0 : i64, tpu.core_type = #tpu.core_type<tc>} {
    %c0 = arith.constant 0 : index
    %c0_0 = arith.constant 0 : index
    %0 = vector.load %arg1[%c0, %c0_0] : memref<32x32xf32, #tpu.memory_space<vmem>>, vector<32x32xf32>
    %cst = arith.constant 0.000000e+00 : f32
    %1 = vector.broadcast %cst : f32 to vector<32x32xf32>
    %2 = arith.cmpf ogt, %0, %1 : vector<32x32xf32>
    %c0_1 = arith.constant 0 : index
    %c0_2 = arith.constant 0 : index
    %3 = vector.load %arg0[%c0_1, %c0_2] : memref<32x16xf32, #tpu.memory_space<vmem>>, vector<32x16xf32>
    %c0_3 = arith.constant 0 : index
    %c0_4 = arith.constant 0 : index
    %4 = vector.load %arg4[%c0_3, %c0_4] : memref<16x34xf32, #tpu.memory_space<vmem>>, vector<16x34xf32>
    %c0_5 = arith.constant 0 : index
    %c0_6 = arith.constant 0 : index
    %5 = vector.load %arg5[%c0_5, %c0_6] : memref<1x32xf32, #tpu.memory_space<vmem>>, vector<1x32xf32>
    %cst_7 = arith.constant dense<0.000000e+00> : vector<32x34xf32>
    %6 = tpu.matmul %3, %4, %cst_7 {dimension_numbers = #tpu.dot_dimension_numbers<[1], [0], [0], [1], [0, 0, 1, 1], [], []>} : vector<32x16xf32>, vector<16x34xf32>, vector<32x34xf32> -> vector<32x34xf32>
    %7 = vector.extract_strided_slice %6 {offsets = [0, 0], sizes = [32, 32], strides = [1, 1]} : vector<32x34xf32> to vector<32x32xf32>
    %8 = vector.extract_strided_slice %6 {offsets = [0, 32], sizes = [32, 1], strides = [1, 1]} : vector<32x34xf32> to vector<32x1xf32>
    %9 = vector.extract_strided_slice %6 {offsets = [0, 33], sizes = [32, 1], strides = [1, 1]} : vector<32x34xf32> to vector<32x1xf32>
    %10 = tpu.transpose %8, [1, 0] : vector<32x1xf32> -> vector<1x32xf32>
    %11 = vector.broadcast %9 : vector<32x1xf32> to vector<32x32xf32>
    %12 = vector.broadcast %10 : vector<1x32xf32> to vector<32x32xf32>
    %13 = arith.addf %11, %12 : vector<32x32xf32>
    %cst_8 = arith.constant 0.000000e+00 : f32
    %14 = vector.broadcast %cst_8 : f32 to vector<32x32xf32>
    %15 = arith.cmpf ogt, %13, %14 : vector<32x32xf32>
    %cst_9 = arith.constant 2.000000e-01 : f32
    %16 = vector.broadcast %cst_9 : f32 to vector<32x32xf32>
    %17 = arith.mulf %16, %13 : vector<32x32xf32>
    %18 = arith.select %15, %13, %17 : vector<32x32xi1>, vector<32x32xf32>
    %cst_10 = arith.constant -1.000000e+30 : f32
    %19 = vector.broadcast %cst_10 : f32 to vector<32x32xf32>
    %20 = arith.select %2, %18, %19 : vector<32x32xi1>, vector<32x32xf32>
    %cst_11 = arith.constant dense<0xFF800000> : vector<32xf32>
    %21 = vector.multi_reduction <maximumf>, %20, %cst_11 [1] : vector<32x32xf32> to vector<32xf32>
    %22 = vector.shape_cast %21 : vector<32xf32> to vector<32x1xf32>
    %23 = vector.broadcast %22 : vector<32x1xf32> to vector<32x32xf32>
    %24 = arith.subf %20, %23 : vector<32x32xf32>
    %25 = math.exp %24 : vector<32x32xf32>
    %cst_12 = arith.constant dense<0.000000e+00> : vector<32xf32>
    %26 = vector.multi_reduction <add>, %25, %cst_12 [1] : vector<32x32xf32> to vector<32xf32>
    %27 = vector.shape_cast %26 : vector<32xf32> to vector<32x1xf32>
    %28 = tpu.reciprocal %27 : vector<32x1xf32> -> vector<32x1xf32>
    %29 = vector.broadcast %28 : vector<32x1xf32> to vector<32x32xf32>
    %30 = arith.mulf %25, %29 : vector<32x32xf32>
    %cst_13 = arith.constant dense<0.000000e+00> : vector<32x32xf32>
    %31 = tpu.matmul %30, %7, %cst_13 {dimension_numbers = #tpu.dot_dimension_numbers<[1], [0], [0], [1], [0, 0, 1, 1], [], []>} : vector<32x32xf32>, vector<32x32xf32>, vector<32x32xf32> -> vector<32x32xf32>
    %32 = vector.broadcast %5 : vector<1x32xf32> to vector<32x32xf32>
    %33 = arith.addf %31, %32 : vector<32x32xf32>
    %c0_14 = arith.constant 0 : index
    %c0_15 = arith.constant 0 : index
    %34 = vector.load %arg6[%c0_14, %c0_15] : memref<1x32xf32, #tpu.memory_space<vmem>>, vector<1x32xf32>
    %c0_16 = arith.constant 0 : index
    %c0_17 = arith.constant 0 : index
    %35 = vector.load %arg7[%c0_16, %c0_17] : memref<1x32xf32, #tpu.memory_space<vmem>>, vector<1x32xf32>
    %c0_18 = arith.constant 0 : index
    %c0_19 = arith.constant 0 : index
    %36 = vector.load %arg8[%c0_18, %c0_19] : memref<1x32xf32, #tpu.memory_space<vmem>>, vector<1x32xf32>
    %cst_20 = arith.constant dense<0.000000e+00> : vector<32xf32>
    %37 = vector.multi_reduction <add>, %33, %cst_20 [0] : vector<32x32xf32> to vector<32xf32>
    %38 = vector.shape_cast %37 : vector<32xf32> to vector<1x32xf32>
    %cst_21 = arith.constant 3.200000e+01 : f32
    %39 = vector.broadcast %cst_21 : f32 to vector<1x32xf32>
    %40 = arith.divf %38, %39 : vector<1x32xf32>
    %41 = arith.mulf %34, %40 : vector<1x32xf32>
    %42 = vector.broadcast %41 : vector<1x32xf32> to vector<32x32xf32>
    %43 = arith.subf %33, %42 : vector<32x32xf32>
    %44 = arith.mulf %43, %43 : vector<32x32xf32>
    %cst_22 = arith.constant dense<0.000000e+00> : vector<32xf32>
    %45 = vector.multi_reduction <add>, %44, %cst_22 [0] : vector<32x32xf32> to vector<32xf32>
    %46 = vector.shape_cast %45 : vector<32xf32> to vector<1x32xf32>
    %cst_23 = arith.constant 3.200000e+01 : f32
    %47 = vector.broadcast %cst_23 : f32 to vector<1x32xf32>
    %48 = arith.divf %46, %47 : vector<1x32xf32>
    %49 = vector.broadcast %35 : vector<1x32xf32> to vector<32x32xf32>
    %50 = arith.mulf %49, %43 : vector<32x32xf32>
    %cst_24 = arith.constant 9.99999974E-6 : f32
    %51 = vector.broadcast %cst_24 : f32 to vector<1x32xf32>
    %52 = arith.addf %48, %51 : vector<1x32xf32>
    %53 = math.rsqrt %52 : vector<1x32xf32>
    %54 = vector.broadcast %53 : vector<1x32xf32> to vector<32x32xf32>
    %55 = arith.mulf %50, %54 : vector<32x32xf32>
    %56 = vector.broadcast %36 : vector<1x32xf32> to vector<32x32xf32>
    %57 = arith.addf %55, %56 : vector<32x32xf32>
    %cst_25 = arith.constant 0.000000e+00 : f32
    %58 = vector.broadcast %cst_25 : f32 to vector<32x32xf32>
    %59 = arith.maximumf %57, %58 : vector<32x32xf32>
    %c0_26 = arith.constant 0 : index
    %c0_27 = arith.constant 0 : index
    %60 = vector.load %arg9[%c0_26, %c0_27] : memref<32x34xf32, #tpu.memory_space<vmem>>, vector<32x34xf32>
    %c0_28 = arith.constant 0 : index
    %c0_29 = arith.constant 0 : index
    %61 = vector.load %arg10[%c0_28, %c0_29] : memref<1x32xf32, #tpu.memory_space<vmem>>, vector<1x32xf32>
    %cst_30 = arith.constant dense<0.000000e+00> : vector<32x34xf32>
    %62 = tpu.matmul %59, %60, %cst_30 {dimension_numbers = #tpu.dot_dimension_numbers<[1], [0], [0], [1], [0, 0, 1, 1], [], []>} : vector<32x32xf32>, vector<32x34xf32>, vector<32x34xf32> -> vector<32x34xf32>
    %63 = vector.extract_strided_slice %62 {offsets = [0, 0], sizes = [32, 32], strides = [1, 1]} : vector<32x34xf32> to vector<32x32xf32>
    %64 = vector.extract_strided_slice %62 {offsets = [0, 32], sizes = [32, 1], strides = [1, 1]} : vector<32x34xf32> to vector<32x1xf32>
    %65 = vector.extract_strided_slice %62 {offsets = [0, 33], sizes = [32, 1], strides = [1, 1]} : vector<32x34xf32> to vector<32x1xf32>
    %66 = tpu.transpose %64, [1, 0] : vector<32x1xf32> -> vector<1x32xf32>
    %67 = vector.broadcast %65 : vector<32x1xf32> to vector<32x32xf32>
    %68 = vector.broadcast %66 : vector<1x32xf32> to vector<32x32xf32>
    %69 = arith.addf %67, %68 : vector<32x32xf32>
    %cst_31 = arith.constant 0.000000e+00 : f32
    %70 = vector.broadcast %cst_31 : f32 to vector<32x32xf32>
    %71 = arith.cmpf ogt, %69, %70 : vector<32x32xf32>
    %cst_32 = arith.constant 2.000000e-01 : f32
    %72 = vector.broadcast %cst_32 : f32 to vector<32x32xf32>
    %73 = arith.mulf %72, %69 : vector<32x32xf32>
    %74 = arith.select %71, %69, %73 : vector<32x32xi1>, vector<32x32xf32>
    %cst_33 = arith.constant -1.000000e+30 : f32
    %75 = vector.broadcast %cst_33 : f32 to vector<32x32xf32>
    %76 = arith.select %2, %74, %75 : vector<32x32xi1>, vector<32x32xf32>
    %cst_34 = arith.constant dense<0xFF800000> : vector<32xf32>
    %77 = vector.multi_reduction <maximumf>, %76, %cst_34 [1] : vector<32x32xf32> to vector<32xf32>
    %78 = vector.shape_cast %77 : vector<32xf32> to vector<32x1xf32>
    %79 = vector.broadcast %78 : vector<32x1xf32> to vector<32x32xf32>
    %80 = arith.subf %76, %79 : vector<32x32xf32>
    %81 = math.exp %80 : vector<32x32xf32>
    %cst_35 = arith.constant dense<0.000000e+00> : vector<32xf32>
    %82 = vector.multi_reduction <add>, %81, %cst_35 [1] : vector<32x32xf32> to vector<32xf32>
    %83 = vector.shape_cast %82 : vector<32xf32> to vector<32x1xf32>
    %84 = tpu.reciprocal %83 : vector<32x1xf32> -> vector<32x1xf32>
    %85 = vector.broadcast %84 : vector<32x1xf32> to vector<32x32xf32>
    %86 = arith.mulf %81, %85 : vector<32x32xf32>
    %cst_36 = arith.constant dense<0.000000e+00> : vector<32x32xf32>
    %87 = tpu.matmul %86, %63, %cst_36 {dimension_numbers = #tpu.dot_dimension_numbers<[1], [0], [0], [1], [0, 0, 1, 1], [], []>} : vector<32x32xf32>, vector<32x32xf32>, vector<32x32xf32> -> vector<32x32xf32>
    %88 = vector.broadcast %61 : vector<1x32xf32> to vector<32x32xf32>
    %89 = arith.addf %87, %88 : vector<32x32xf32>
    %c0_37 = arith.constant 0 : index
    %c0_38 = arith.constant 0 : index
    %90 = vector.load %arg11[%c0_37, %c0_38] : memref<1x32xf32, #tpu.memory_space<vmem>>, vector<1x32xf32>
    %c0_39 = arith.constant 0 : index
    %c0_40 = arith.constant 0 : index
    %91 = vector.load %arg12[%c0_39, %c0_40] : memref<1x32xf32, #tpu.memory_space<vmem>>, vector<1x32xf32>
    %c0_41 = arith.constant 0 : index
    %c0_42 = arith.constant 0 : index
    %92 = vector.load %arg13[%c0_41, %c0_42] : memref<1x32xf32, #tpu.memory_space<vmem>>, vector<1x32xf32>
    %cst_43 = arith.constant dense<0.000000e+00> : vector<32xf32>
    %93 = vector.multi_reduction <add>, %89, %cst_43 [0] : vector<32x32xf32> to vector<32xf32>
    %94 = vector.shape_cast %93 : vector<32xf32> to vector<1x32xf32>
    %cst_44 = arith.constant 3.200000e+01 : f32
    %95 = vector.broadcast %cst_44 : f32 to vector<1x32xf32>
    %96 = arith.divf %94, %95 : vector<1x32xf32>
    %97 = arith.mulf %90, %96 : vector<1x32xf32>
    %98 = vector.broadcast %97 : vector<1x32xf32> to vector<32x32xf32>
    %99 = arith.subf %89, %98 : vector<32x32xf32>
    %100 = arith.mulf %99, %99 : vector<32x32xf32>
    %cst_45 = arith.constant dense<0.000000e+00> : vector<32xf32>
    %101 = vector.multi_reduction <add>, %100, %cst_45 [0] : vector<32x32xf32> to vector<32xf32>
    %102 = vector.shape_cast %101 : vector<32xf32> to vector<1x32xf32>
    %cst_46 = arith.constant 3.200000e+01 : f32
    %103 = vector.broadcast %cst_46 : f32 to vector<1x32xf32>
    %104 = arith.divf %102, %103 : vector<1x32xf32>
    %105 = vector.broadcast %91 : vector<1x32xf32> to vector<32x32xf32>
    %106 = arith.mulf %105, %99 : vector<32x32xf32>
    %cst_47 = arith.constant 9.99999974E-6 : f32
    %107 = vector.broadcast %cst_47 : f32 to vector<1x32xf32>
    %108 = arith.addf %104, %107 : vector<1x32xf32>
    %109 = math.rsqrt %108 : vector<1x32xf32>
    %110 = vector.broadcast %109 : vector<1x32xf32> to vector<32x32xf32>
    %111 = arith.mulf %106, %110 : vector<32x32xf32>
    %112 = vector.broadcast %92 : vector<1x32xf32> to vector<32x32xf32>
    %113 = arith.addf %111, %112 : vector<32x32xf32>
    %c0_48 = arith.constant 0 : index
    %c0_49 = arith.constant 0 : index
    %114 = vector.load %arg14[%c0_48, %c0_49] : memref<16x32xf32, #tpu.memory_space<vmem>>, vector<16x32xf32>
    %c0_50 = arith.constant 0 : index
    %c0_51 = arith.constant 0 : index
    %115 = vector.load %arg15[%c0_50, %c0_51] : memref<1x32xf32, #tpu.memory_space<vmem>>, vector<1x32xf32>
    %cst_52 = arith.constant dense<0.000000e+00> : vector<32x32xf32>
    %116 = tpu.matmul %3, %114, %cst_52 {dimension_numbers = #tpu.dot_dimension_numbers<[1], [0], [0], [1], [0, 0, 1, 1], [], []>} : vector<32x16xf32>, vector<16x32xf32>, vector<32x32xf32> -> vector<32x32xf32>
    %117 = vector.broadcast %115 : vector<1x32xf32> to vector<32x32xf32>
    %118 = arith.addf %116, %117 : vector<32x32xf32>
    %119 = arith.addf %113, %118 : vector<32x32xf32>
    %cst_53 = arith.constant 0.000000e+00 : f32
    %120 = vector.broadcast %cst_53 : f32 to vector<32x32xf32>
    %121 = arith.maximumf %119, %120 : vector<32x32xf32>
    %c0_54 = arith.constant 0 : index
    %c0_55 = arith.constant 0 : index
    %122 = vector.load %arg16[%c0_54, %c0_55] : memref<32x66xf32, #tpu.memory_space<vmem>>, vector<32x66xf32>
    %c0_56 = arith.constant 0 : index
    %c0_57 = arith.constant 0 : index
    %123 = vector.load %arg17[%c0_56, %c0_57] : memref<1x64xf32, #tpu.memory_space<vmem>>, vector<1x64xf32>
    %cst_58 = arith.constant dense<0.000000e+00> : vector<32x66xf32>
    %124 = tpu.matmul %121, %122, %cst_58 {dimension_numbers = #tpu.dot_dimension_numbers<[1], [0], [0], [1], [0, 0, 1, 1], [], []>} : vector<32x32xf32>, vector<32x66xf32>, vector<32x66xf32> -> vector<32x66xf32>
    %125 = vector.extract_strided_slice %124 {offsets = [0, 0], sizes = [32, 64], strides = [1, 1]} : vector<32x66xf32> to vector<32x64xf32>
    %126 = vector.extract_strided_slice %124 {offsets = [0, 64], sizes = [32, 1], strides = [1, 1]} : vector<32x66xf32> to vector<32x1xf32>
    %127 = vector.extract_strided_slice %124 {offsets = [0, 65], sizes = [32, 1], strides = [1, 1]} : vector<32x66xf32> to vector<32x1xf32>
    %128 = tpu.transpose %126, [1, 0] : vector<32x1xf32> -> vector<1x32xf32>
    %129 = vector.broadcast %127 : vector<32x1xf32> to vector<32x32xf32>
    %130 = vector.broadcast %128 : vector<1x32xf32> to vector<32x32xf32>
    %131 = arith.addf %129, %130 : vector<32x32xf32>
    %cst_59 = arith.constant 0.000000e+00 : f32
    %132 = vector.broadcast %cst_59 : f32 to vector<32x32xf32>
    %133 = arith.cmpf ogt, %131, %132 : vector<32x32xf32>
    %cst_60 = arith.constant 2.000000e-01 : f32
    %134 = vector.broadcast %cst_60 : f32 to vector<32x32xf32>
    %135 = arith.mulf %134, %131 : vector<32x32xf32>
    %136 = arith.select %133, %131, %135 : vector<32x32xi1>, vector<32x32xf32>
    %cst_61 = arith.constant -1.000000e+30 : f32
    %137 = vector.broadcast %cst_61 : f32 to vector<32x32xf32>
    %138 = arith.select %2, %136, %137 : vector<32x32xi1>, vector<32x32xf32>
    %cst_62 = arith.constant dense<0xFF800000> : vector<32xf32>
    %139 = vector.multi_reduction <maximumf>, %138, %cst_62 [1] : vector<32x32xf32> to vector<32xf32>
    %140 = vector.shape_cast %139 : vector<32xf32> to vector<32x1xf32>
    %141 = vector.broadcast %140 : vector<32x1xf32> to vector<32x32xf32>
    %142 = arith.subf %138, %141 : vector<32x32xf32>
    %143 = math.exp %142 : vector<32x32xf32>
    %cst_63 = arith.constant dense<0.000000e+00> : vector<32xf32>
    %144 = vector.multi_reduction <add>, %143, %cst_63 [1] : vector<32x32xf32> to vector<32xf32>
    %145 = vector.shape_cast %144 : vector<32xf32> to vector<32x1xf32>
    %146 = tpu.reciprocal %145 : vector<32x1xf32> -> vector<32x1xf32>
    %147 = vector.broadcast %146 : vector<32x1xf32> to vector<32x32xf32>
    %148 = arith.mulf %143, %147 : vector<32x32xf32>
    %cst_64 = arith.constant dense<0.000000e+00> : vector<32x64xf32>
    %149 = tpu.matmul %148, %125, %cst_64 {dimension_numbers = #tpu.dot_dimension_numbers<[1], [0], [0], [1], [0, 0, 1, 1], [], []>} : vector<32x32xf32>, vector<32x64xf32>, vector<32x64xf32> -> vector<32x64xf32>
    %150 = vector.broadcast %123 : vector<1x64xf32> to vector<32x64xf32>
    %151 = arith.addf %149, %150 : vector<32x64xf32>
    %c0_65 = arith.constant 0 : index
    %c0_66 = arith.constant 0 : index
    %152 = vector.load %arg18[%c0_65, %c0_66] : memref<1x64xf32, #tpu.memory_space<vmem>>, vector<1x64xf32>
    %c0_67 = arith.constant 0 : index
    %c0_68 = arith.constant 0 : index
    %153 = vector.load %arg19[%c0_67, %c0_68] : memref<1x64xf32, #tpu.memory_space<vmem>>, vector<1x64xf32>
    %c0_69 = arith.constant 0 : index
    %c0_70 = arith.constant 0 : index
    %154 = vector.load %arg20[%c0_69, %c0_70] : memref<1x64xf32, #tpu.memory_space<vmem>>, vector<1x64xf32>
    %cst_71 = arith.constant dense<0.000000e+00> : vector<64xf32>
    %155 = vector.multi_reduction <add>, %151, %cst_71 [0] : vector<32x64xf32> to vector<64xf32>
    %156 = vector.shape_cast %155 : vector<64xf32> to vector<1x64xf32>
    %cst_72 = arith.constant 3.200000e+01 : f32
    %157 = vector.broadcast %cst_72 : f32 to vector<1x64xf32>
    %158 = arith.divf %156, %157 : vector<1x64xf32>
    %159 = arith.mulf %152, %158 : vector<1x64xf32>
    %160 = vector.broadcast %159 : vector<1x64xf32> to vector<32x64xf32>
    %161 = arith.subf %151, %160 : vector<32x64xf32>
    %162 = arith.mulf %161, %161 : vector<32x64xf32>
    %cst_73 = arith.constant dense<0.000000e+00> : vector<64xf32>
    %163 = vector.multi_reduction <add>, %162, %cst_73 [0] : vector<32x64xf32> to vector<64xf32>
    %164 = vector.shape_cast %163 : vector<64xf32> to vector<1x64xf32>
    %cst_74 = arith.constant 3.200000e+01 : f32
    %165 = vector.broadcast %cst_74 : f32 to vector<1x64xf32>
    %166 = arith.divf %164, %165 : vector<1x64xf32>
    %167 = vector.broadcast %153 : vector<1x64xf32> to vector<32x64xf32>
    %168 = arith.mulf %167, %161 : vector<32x64xf32>
    %cst_75 = arith.constant 9.99999974E-6 : f32
    %169 = vector.broadcast %cst_75 : f32 to vector<1x64xf32>
    %170 = arith.addf %166, %169 : vector<1x64xf32>
    %171 = math.rsqrt %170 : vector<1x64xf32>
    %172 = vector.broadcast %171 : vector<1x64xf32> to vector<32x64xf32>
    %173 = arith.mulf %168, %172 : vector<32x64xf32>
    %174 = vector.broadcast %154 : vector<1x64xf32> to vector<32x64xf32>
    %175 = arith.addf %173, %174 : vector<32x64xf32>
    %cst_76 = arith.constant 0.000000e+00 : f32
    %176 = vector.broadcast %cst_76 : f32 to vector<32x64xf32>
    %177 = arith.maximumf %175, %176 : vector<32x64xf32>
    %c0_77 = arith.constant 0 : index
    %c0_78 = arith.constant 0 : index
    %178 = vector.load %arg21[%c0_77, %c0_78] : memref<64x66xf32, #tpu.memory_space<vmem>>, vector<64x66xf32>
    %c0_79 = arith.constant 0 : index
    %c0_80 = arith.constant 0 : index
    %179 = vector.load %arg22[%c0_79, %c0_80] : memref<1x64xf32, #tpu.memory_space<vmem>>, vector<1x64xf32>
    %cst_81 = arith.constant dense<0.000000e+00> : vector<32x66xf32>
    %180 = tpu.matmul %177, %178, %cst_81 {dimension_numbers = #tpu.dot_dimension_numbers<[1], [0], [0], [1], [0, 0, 1, 1], [], []>} : vector<32x64xf32>, vector<64x66xf32>, vector<32x66xf32> -> vector<32x66xf32>
    %181 = vector.extract_strided_slice %180 {offsets = [0, 0], sizes = [32, 64], strides = [1, 1]} : vector<32x66xf32> to vector<32x64xf32>
    %182 = vector.extract_strided_slice %180 {offsets = [0, 64], sizes = [32, 1], strides = [1, 1]} : vector<32x66xf32> to vector<32x1xf32>
    %183 = vector.extract_strided_slice %180 {offsets = [0, 65], sizes = [32, 1], strides = [1, 1]} : vector<32x66xf32> to vector<32x1xf32>
    %184 = tpu.transpose %182, [1, 0] : vector<32x1xf32> -> vector<1x32xf32>
    %185 = vector.broadcast %183 : vector<32x1xf32> to vector<32x32xf32>
    %186 = vector.broadcast %184 : vector<1x32xf32> to vector<32x32xf32>
    %187 = arith.addf %185, %186 : vector<32x32xf32>
    %cst_82 = arith.constant 0.000000e+00 : f32
    %188 = vector.broadcast %cst_82 : f32 to vector<32x32xf32>
    %189 = arith.cmpf ogt, %187, %188 : vector<32x32xf32>
    %cst_83 = arith.constant 2.000000e-01 : f32
    %190 = vector.broadcast %cst_83 : f32 to vector<32x32xf32>
    %191 = arith.mulf %190, %187 : vector<32x32xf32>
    %192 = arith.select %189, %187, %191 : vector<32x32xi1>, vector<32x32xf32>
    %cst_84 = arith.constant -1.000000e+30 : f32
    %193 = vector.broadcast %cst_84 : f32 to vector<32x32xf32>
    %194 = arith.select %2, %192, %193 : vector<32x32xi1>, vector<32x32xf32>
    %cst_85 = arith.constant dense<0xFF800000> : vector<32xf32>
    %195 = vector.multi_reduction <maximumf>, %194, %cst_85 [1] : vector<32x32xf32> to vector<32xf32>
    %196 = vector.shape_cast %195 : vector<32xf32> to vector<32x1xf32>
    %197 = vector.broadcast %196 : vector<32x1xf32> to vector<32x32xf32>
    %198 = arith.subf %194, %197 : vector<32x32xf32>
    %199 = math.exp %198 : vector<32x32xf32>
    %cst_86 = arith.constant dense<0.000000e+00> : vector<32xf32>
    %200 = vector.multi_reduction <add>, %199, %cst_86 [1] : vector<32x32xf32> to vector<32xf32>
    %201 = vector.shape_cast %200 : vector<32xf32> to vector<32x1xf32>
    %202 = tpu.reciprocal %201 : vector<32x1xf32> -> vector<32x1xf32>
    %203 = vector.broadcast %202 : vector<32x1xf32> to vector<32x32xf32>
    %204 = arith.mulf %199, %203 : vector<32x32xf32>
    %cst_87 = arith.constant dense<0.000000e+00> : vector<32x64xf32>
    %205 = tpu.matmul %204, %181, %cst_87 {dimension_numbers = #tpu.dot_dimension_numbers<[1], [0], [0], [1], [0, 0, 1, 1], [], []>} : vector<32x32xf32>, vector<32x64xf32>, vector<32x64xf32> -> vector<32x64xf32>
    %206 = vector.broadcast %179 : vector<1x64xf32> to vector<32x64xf32>
    %207 = arith.addf %205, %206 : vector<32x64xf32>
    %c0_88 = arith.constant 0 : index
    %c0_89 = arith.constant 0 : index
    %208 = vector.load %arg23[%c0_88, %c0_89] : memref<1x64xf32, #tpu.memory_space<vmem>>, vector<1x64xf32>
    %c0_90 = arith.constant 0 : index
    %c0_91 = arith.constant 0 : index
    %209 = vector.load %arg24[%c0_90, %c0_91] : memref<1x64xf32, #tpu.memory_space<vmem>>, vector<1x64xf32>
    %c0_92 = arith.constant 0 : index
    %c0_93 = arith.constant 0 : index
    %210 = vector.load %arg25[%c0_92, %c0_93] : memref<1x64xf32, #tpu.memory_space<vmem>>, vector<1x64xf32>
    %cst_94 = arith.constant dense<0.000000e+00> : vector<64xf32>
    %211 = vector.multi_reduction <add>, %207, %cst_94 [0] : vector<32x64xf32> to vector<64xf32>
    %212 = vector.shape_cast %211 : vector<64xf32> to vector<1x64xf32>
    %cst_95 = arith.constant 3.200000e+01 : f32
    %213 = vector.broadcast %cst_95 : f32 to vector<1x64xf32>
    %214 = arith.divf %212, %213 : vector<1x64xf32>
    %215 = arith.mulf %208, %214 : vector<1x64xf32>
    %216 = vector.broadcast %215 : vector<1x64xf32> to vector<32x64xf32>
    %217 = arith.subf %207, %216 : vector<32x64xf32>
    %218 = arith.mulf %217, %217 : vector<32x64xf32>
    %cst_96 = arith.constant dense<0.000000e+00> : vector<64xf32>
    %219 = vector.multi_reduction <add>, %218, %cst_96 [0] : vector<32x64xf32> to vector<64xf32>
    %220 = vector.shape_cast %219 : vector<64xf32> to vector<1x64xf32>
    %cst_97 = arith.constant 3.200000e+01 : f32
    %221 = vector.broadcast %cst_97 : f32 to vector<1x64xf32>
    %222 = arith.divf %220, %221 : vector<1x64xf32>
    %223 = vector.broadcast %209 : vector<1x64xf32> to vector<32x64xf32>
    %224 = arith.mulf %223, %217 : vector<32x64xf32>
    %cst_98 = arith.constant 9.99999974E-6 : f32
    %225 = vector.broadcast %cst_98 : f32 to vector<1x64xf32>
    %226 = arith.addf %222, %225 : vector<1x64xf32>
    %227 = math.rsqrt %226 : vector<1x64xf32>
    %228 = vector.broadcast %227 : vector<1x64xf32> to vector<32x64xf32>
    %229 = arith.mulf %224, %228 : vector<32x64xf32>
    %230 = vector.broadcast %210 : vector<1x64xf32> to vector<32x64xf32>
    %231 = arith.addf %229, %230 : vector<32x64xf32>
    %c0_99 = arith.constant 0 : index
    %c0_100 = arith.constant 0 : index
    %232 = vector.load %arg26[%c0_99, %c0_100] : memref<32x64xf32, #tpu.memory_space<vmem>>, vector<32x64xf32>
    %c0_101 = arith.constant 0 : index
    %c0_102 = arith.constant 0 : index
    %233 = vector.load %arg27[%c0_101, %c0_102] : memref<1x64xf32, #tpu.memory_space<vmem>>, vector<1x64xf32>
    %cst_103 = arith.constant dense<0.000000e+00> : vector<32x64xf32>
    %234 = tpu.matmul %121, %232, %cst_103 {dimension_numbers = #tpu.dot_dimension_numbers<[1], [0], [0], [1], [0, 0, 1, 1], [], []>} : vector<32x32xf32>, vector<32x64xf32>, vector<32x64xf32> -> vector<32x64xf32>
    %235 = vector.broadcast %233 : vector<1x64xf32> to vector<32x64xf32>
    %236 = arith.addf %234, %235 : vector<32x64xf32>
    %237 = arith.addf %231, %236 : vector<32x64xf32>
    %cst_104 = arith.constant 0.000000e+00 : f32
    %238 = vector.broadcast %cst_104 : f32 to vector<32x64xf32>
    %239 = arith.maximumf %237, %238 : vector<32x64xf32>
    %c0_105 = arith.constant 0 : index
    %c0_106 = arith.constant 0 : index
    %240 = vector.load %arg28[%c0_105, %c0_106] : memref<64x130xf32, #tpu.memory_space<vmem>>, vector<64x130xf32>
    %c0_107 = arith.constant 0 : index
    %c0_108 = arith.constant 0 : index
    %241 = vector.load %arg29[%c0_107, %c0_108] : memref<1x128xf32, #tpu.memory_space<vmem>>, vector<1x128xf32>
    %cst_109 = arith.constant dense<0.000000e+00> : vector<32x130xf32>
    %242 = tpu.matmul %239, %240, %cst_109 {dimension_numbers = #tpu.dot_dimension_numbers<[1], [0], [0], [1], [0, 0, 1, 1], [], []>} : vector<32x64xf32>, vector<64x130xf32>, vector<32x130xf32> -> vector<32x130xf32>
    %243 = vector.extract_strided_slice %242 {offsets = [0, 0], sizes = [32, 128], strides = [1, 1]} : vector<32x130xf32> to vector<32x128xf32>
    %244 = vector.extract_strided_slice %242 {offsets = [0, 128], sizes = [32, 1], strides = [1, 1]} : vector<32x130xf32> to vector<32x1xf32>
    %245 = vector.extract_strided_slice %242 {offsets = [0, 129], sizes = [32, 1], strides = [1, 1]} : vector<32x130xf32> to vector<32x1xf32>
    %246 = tpu.transpose %244, [1, 0] : vector<32x1xf32> -> vector<1x32xf32>
    %247 = vector.broadcast %245 : vector<32x1xf32> to vector<32x32xf32>
    %248 = vector.broadcast %246 : vector<1x32xf32> to vector<32x32xf32>
    %249 = arith.addf %247, %248 : vector<32x32xf32>
    %cst_110 = arith.constant 0.000000e+00 : f32
    %250 = vector.broadcast %cst_110 : f32 to vector<32x32xf32>
    %251 = arith.cmpf ogt, %249, %250 : vector<32x32xf32>
    %cst_111 = arith.constant 2.000000e-01 : f32
    %252 = vector.broadcast %cst_111 : f32 to vector<32x32xf32>
    %253 = arith.mulf %252, %249 : vector<32x32xf32>
    %254 = arith.select %251, %249, %253 : vector<32x32xi1>, vector<32x32xf32>
    %cst_112 = arith.constant -1.000000e+30 : f32
    %255 = vector.broadcast %cst_112 : f32 to vector<32x32xf32>
    %256 = arith.select %2, %254, %255 : vector<32x32xi1>, vector<32x32xf32>
    %cst_113 = arith.constant dense<0xFF800000> : vector<32xf32>
    %257 = vector.multi_reduction <maximumf>, %256, %cst_113 [1] : vector<32x32xf32> to vector<32xf32>
    %258 = vector.shape_cast %257 : vector<32xf32> to vector<32x1xf32>
    %259 = vector.broadcast %258 : vector<32x1xf32> to vector<32x32xf32>
    %260 = arith.subf %256, %259 : vector<32x32xf32>
    %261 = math.exp %260 : vector<32x32xf32>
    %cst_114 = arith.constant dense<0.000000e+00> : vector<32xf32>
    %262 = vector.multi_reduction <add>, %261, %cst_114 [1] : vector<32x32xf32> to vector<32xf32>
    %263 = vector.shape_cast %262 : vector<32xf32> to vector<32x1xf32>
    %264 = tpu.reciprocal %263 : vector<32x1xf32> -> vector<32x1xf32>
    %265 = vector.broadcast %264 : vector<32x1xf32> to vector<32x32xf32>
    %266 = arith.mulf %261, %265 : vector<32x32xf32>
    %cst_115 = arith.constant dense<0.000000e+00> : vector<32x128xf32>
    %267 = tpu.matmul %266, %243, %cst_115 {dimension_numbers = #tpu.dot_dimension_numbers<[1], [0], [0], [1], [0, 0, 1, 1], [], []>} : vector<32x32xf32>, vector<32x128xf32>, vector<32x128xf32> -> vector<32x128xf32>
    %268 = vector.broadcast %241 : vector<1x128xf32> to vector<32x128xf32>
    %269 = arith.addf %267, %268 : vector<32x128xf32>
    %c0_116 = arith.constant 0 : index
    %c0_117 = arith.constant 0 : index
    %270 = vector.load %arg30[%c0_116, %c0_117] : memref<1x128xf32, #tpu.memory_space<vmem>>, vector<1x128xf32>
    %c0_118 = arith.constant 0 : index
    %c0_119 = arith.constant 0 : index
    %271 = vector.load %arg31[%c0_118, %c0_119] : memref<1x128xf32, #tpu.memory_space<vmem>>, vector<1x128xf32>
    %c0_120 = arith.constant 0 : index
    %c0_121 = arith.constant 0 : index
    %272 = vector.load %arg32[%c0_120, %c0_121] : memref<1x128xf32, #tpu.memory_space<vmem>>, vector<1x128xf32>
    %cst_122 = arith.constant dense<0.000000e+00> : vector<128xf32>
    %273 = vector.multi_reduction <add>, %269, %cst_122 [0] : vector<32x128xf32> to vector<128xf32>
    %274 = vector.shape_cast %273 : vector<128xf32> to vector<1x128xf32>
    %cst_123 = arith.constant 3.200000e+01 : f32
    %275 = vector.broadcast %cst_123 : f32 to vector<1x128xf32>
    %276 = arith.divf %274, %275 : vector<1x128xf32>
    %277 = arith.mulf %270, %276 : vector<1x128xf32>
    %278 = vector.broadcast %277 : vector<1x128xf32> to vector<32x128xf32>
    %279 = arith.subf %269, %278 : vector<32x128xf32>
    %280 = arith.mulf %279, %279 : vector<32x128xf32>
    %cst_124 = arith.constant dense<0.000000e+00> : vector<128xf32>
    %281 = vector.multi_reduction <add>, %280, %cst_124 [0] : vector<32x128xf32> to vector<128xf32>
    %282 = vector.shape_cast %281 : vector<128xf32> to vector<1x128xf32>
    %cst_125 = arith.constant 3.200000e+01 : f32
    %283 = vector.broadcast %cst_125 : f32 to vector<1x128xf32>
    %284 = arith.divf %282, %283 : vector<1x128xf32>
    %285 = vector.broadcast %271 : vector<1x128xf32> to vector<32x128xf32>
    %286 = arith.mulf %285, %279 : vector<32x128xf32>
    %cst_126 = arith.constant 9.99999974E-6 : f32
    %287 = vector.broadcast %cst_126 : f32 to vector<1x128xf32>
    %288 = arith.addf %284, %287 : vector<1x128xf32>
    %289 = math.rsqrt %288 : vector<1x128xf32>
    %290 = vector.broadcast %289 : vector<1x128xf32> to vector<32x128xf32>
    %291 = arith.mulf %286, %290 : vector<32x128xf32>
    %292 = vector.broadcast %272 : vector<1x128xf32> to vector<32x128xf32>
    %293 = arith.addf %291, %292 : vector<32x128xf32>
    %cst_127 = arith.constant 0.000000e+00 : f32
    %294 = vector.broadcast %cst_127 : f32 to vector<32x128xf32>
    %295 = arith.maximumf %293, %294 : vector<32x128xf32>
    %c0_128 = arith.constant 0 : index
    %c0_129 = arith.constant 0 : index
    %296 = vector.load %arg33[%c0_128, %c0_129] : memref<128x130xf32, #tpu.memory_space<vmem>>, vector<128x130xf32>
    %c0_130 = arith.constant 0 : index
    %c0_131 = arith.constant 0 : index
    %297 = vector.load %arg34[%c0_130, %c0_131] : memref<1x128xf32, #tpu.memory_space<vmem>>, vector<1x128xf32>
    %cst_132 = arith.constant dense<0.000000e+00> : vector<32x130xf32>
    %298 = tpu.matmul %295, %296, %cst_132 {dimension_numbers = #tpu.dot_dimension_numbers<[1], [0], [0], [1], [0, 0, 1, 1], [], []>} : vector<32x128xf32>, vector<128x130xf32>, vector<32x130xf32> -> vector<32x130xf32>
    %299 = vector.extract_strided_slice %298 {offsets = [0, 0], sizes = [32, 128], strides = [1, 1]} : vector<32x130xf32> to vector<32x128xf32>
    %300 = vector.extract_strided_slice %298 {offsets = [0, 128], sizes = [32, 1], strides = [1, 1]} : vector<32x130xf32> to vector<32x1xf32>
    %301 = vector.extract_strided_slice %298 {offsets = [0, 129], sizes = [32, 1], strides = [1, 1]} : vector<32x130xf32> to vector<32x1xf32>
    %302 = tpu.transpose %300, [1, 0] : vector<32x1xf32> -> vector<1x32xf32>
    %303 = vector.broadcast %301 : vector<32x1xf32> to vector<32x32xf32>
    %304 = vector.broadcast %302 : vector<1x32xf32> to vector<32x32xf32>
    %305 = arith.addf %303, %304 : vector<32x32xf32>
    %cst_133 = arith.constant 0.000000e+00 : f32
    %306 = vector.broadcast %cst_133 : f32 to vector<32x32xf32>
    %307 = arith.cmpf ogt, %305, %306 : vector<32x32xf32>
    %cst_134 = arith.constant 2.000000e-01 : f32
    %308 = vector.broadcast %cst_134 : f32 to vector<32x32xf32>
    %309 = arith.mulf %308, %305 : vector<32x32xf32>
    %310 = arith.select %307, %305, %309 : vector<32x32xi1>, vector<32x32xf32>
    %cst_135 = arith.constant -1.000000e+30 : f32
    %311 = vector.broadcast %cst_135 : f32 to vector<32x32xf32>
    %312 = arith.select %2, %310, %311 : vector<32x32xi1>, vector<32x32xf32>
    %cst_136 = arith.constant dense<0xFF800000> : vector<32xf32>
    %313 = vector.multi_reduction <maximumf>, %312, %cst_136 [1] : vector<32x32xf32> to vector<32xf32>
    %314 = vector.shape_cast %313 : vector<32xf32> to vector<32x1xf32>
    %315 = vector.broadcast %314 : vector<32x1xf32> to vector<32x32xf32>
    %316 = arith.subf %312, %315 : vector<32x32xf32>
    %317 = math.exp %316 : vector<32x32xf32>
    %cst_137 = arith.constant dense<0.000000e+00> : vector<32xf32>
    %318 = vector.multi_reduction <add>, %317, %cst_137 [1] : vector<32x32xf32> to vector<32xf32>
    %319 = vector.shape_cast %318 : vector<32xf32> to vector<32x1xf32>
    %320 = tpu.reciprocal %319 : vector<32x1xf32> -> vector<32x1xf32>
    %321 = vector.broadcast %320 : vector<32x1xf32> to vector<32x32xf32>
    %322 = arith.mulf %317, %321 : vector<32x32xf32>
    %cst_138 = arith.constant dense<0.000000e+00> : vector<32x128xf32>
    %323 = tpu.matmul %322, %299, %cst_138 {dimension_numbers = #tpu.dot_dimension_numbers<[1], [0], [0], [1], [0, 0, 1, 1], [], []>} : vector<32x32xf32>, vector<32x128xf32>, vector<32x128xf32> -> vector<32x128xf32>
    %324 = vector.broadcast %297 : vector<1x128xf32> to vector<32x128xf32>
    %325 = arith.addf %323, %324 : vector<32x128xf32>
    %c0_139 = arith.constant 0 : index
    %c0_140 = arith.constant 0 : index
    %326 = vector.load %arg35[%c0_139, %c0_140] : memref<1x128xf32, #tpu.memory_space<vmem>>, vector<1x128xf32>
    %c0_141 = arith.constant 0 : index
    %c0_142 = arith.constant 0 : index
    %327 = vector.load %arg36[%c0_141, %c0_142] : memref<1x128xf32, #tpu.memory_space<vmem>>, vector<1x128xf32>
    %c0_143 = arith.constant 0 : index
    %c0_144 = arith.constant 0 : index
    %328 = vector.load %arg37[%c0_143, %c0_144] : memref<1x128xf32, #tpu.memory_space<vmem>>, vector<1x128xf32>
    %cst_145 = arith.constant dense<0.000000e+00> : vector<128xf32>
    %329 = vector.multi_reduction <add>, %325, %cst_145 [0] : vector<32x128xf32> to vector<128xf32>
    %330 = vector.shape_cast %329 : vector<128xf32> to vector<1x128xf32>
    %cst_146 = arith.constant 3.200000e+01 : f32
    %331 = vector.broadcast %cst_146 : f32 to vector<1x128xf32>
    %332 = arith.divf %330, %331 : vector<1x128xf32>
    %333 = arith.mulf %326, %332 : vector<1x128xf32>
    %334 = vector.broadcast %333 : vector<1x128xf32> to vector<32x128xf32>
    %335 = arith.subf %325, %334 : vector<32x128xf32>
    %336 = arith.mulf %335, %335 : vector<32x128xf32>
    %cst_147 = arith.constant dense<0.000000e+00> : vector<128xf32>
    %337 = vector.multi_reduction <add>, %336, %cst_147 [0] : vector<32x128xf32> to vector<128xf32>
    %338 = vector.shape_cast %337 : vector<128xf32> to vector<1x128xf32>
    %cst_148 = arith.constant 3.200000e+01 : f32
    %339 = vector.broadcast %cst_148 : f32 to vector<1x128xf32>
    %340 = arith.divf %338, %339 : vector<1x128xf32>
    %341 = vector.broadcast %327 : vector<1x128xf32> to vector<32x128xf32>
    %342 = arith.mulf %341, %335 : vector<32x128xf32>
    %cst_149 = arith.constant 9.99999974E-6 : f32
    %343 = vector.broadcast %cst_149 : f32 to vector<1x128xf32>
    %344 = arith.addf %340, %343 : vector<1x128xf32>
    %345 = math.rsqrt %344 : vector<1x128xf32>
    %346 = vector.broadcast %345 : vector<1x128xf32> to vector<32x128xf32>
    %347 = arith.mulf %342, %346 : vector<32x128xf32>
    %348 = vector.broadcast %328 : vector<1x128xf32> to vector<32x128xf32>
    %349 = arith.addf %347, %348 : vector<32x128xf32>
    %c0_150 = arith.constant 0 : index
    %c0_151 = arith.constant 0 : index
    %350 = vector.load %arg38[%c0_150, %c0_151] : memref<64x128xf32, #tpu.memory_space<vmem>>, vector<64x128xf32>
    %c0_152 = arith.constant 0 : index
    %c0_153 = arith.constant 0 : index
    %351 = vector.load %arg39[%c0_152, %c0_153] : memref<1x128xf32, #tpu.memory_space<vmem>>, vector<1x128xf32>
    %cst_154 = arith.constant dense<0.000000e+00> : vector<32x128xf32>
    %352 = tpu.matmul %239, %350, %cst_154 {dimension_numbers = #tpu.dot_dimension_numbers<[1], [0], [0], [1], [0, 0, 1, 1], [], []>} : vector<32x64xf32>, vector<64x128xf32>, vector<32x128xf32> -> vector<32x128xf32>
    %353 = vector.broadcast %351 : vector<1x128xf32> to vector<32x128xf32>
    %354 = arith.addf %352, %353 : vector<32x128xf32>
    %355 = arith.addf %349, %354 : vector<32x128xf32>
    %cst_155 = arith.constant 0.000000e+00 : f32
    %356 = vector.broadcast %cst_155 : f32 to vector<32x128xf32>
    %357 = arith.maximumf %355, %356 : vector<32x128xf32>
    %c0_156 = arith.constant 0 : index
    %c0_157 = arith.constant 0 : index
    %358 = vector.load %arg2[%c0_156, %c0_157] : memref<32x2xf32, #tpu.memory_space<vmem>>, vector<32x2xf32>
    %359 = vector.extract_strided_slice %358 {offsets = [0, 0], sizes = [32, 1], strides = [1, 1]} : vector<32x2xf32> to vector<32x1xf32>
    %360 = vector.broadcast %359 : vector<32x1xf32> to vector<32x128xf32>
    %361 = arith.addf %357, %360 : vector<32x128xf32>
    %cst_158 = arith.constant dense<0xFF800000> : vector<128xf32>
    %362 = vector.multi_reduction <maximumf>, %361, %cst_158 [0] : vector<32x128xf32> to vector<128xf32>
    %363 = vector.shape_cast %362 : vector<128xf32> to vector<1x128xf32>
    %364 = vector.extract_strided_slice %358 {offsets = [0, 1], sizes = [32, 1], strides = [1, 1]} : vector<32x2xf32> to vector<32x1xf32>
    %365 = vector.broadcast %364 : vector<32x1xf32> to vector<32x128xf32>
    %366 = arith.addf %357, %365 : vector<32x128xf32>
    %cst_159 = arith.constant dense<0xFF800000> : vector<128xf32>
    %367 = vector.multi_reduction <maximumf>, %366, %cst_159 [0] : vector<32x128xf32> to vector<128xf32>
    %368 = vector.shape_cast %367 : vector<128xf32> to vector<1x128xf32>
    %369 = tpu.concatenate %363, %368 in 0 : vector<1x128xf32>, vector<1x128xf32> -> vector<2x128xf32>
    %c0_160 = arith.constant 0 : index
    %c0_161 = arith.constant 0 : index
    %370 = vector.load %arg40[%c0_160, %c0_161] : memref<128x256xf32, #tpu.memory_space<vmem>>, vector<128x256xf32>
    %c0_162 = arith.constant 0 : index
    %c0_163 = arith.constant 0 : index
    %371 = vector.load %arg41[%c0_162, %c0_163] : memref<1x256xf32, #tpu.memory_space<vmem>>, vector<1x256xf32>
    %c0_164 = arith.constant 0 : index
    %c0_165 = arith.constant 0 : index
    %372 = vector.load %arg42[%c0_164, %c0_165] : memref<1x256xf32, #tpu.memory_space<vmem>>, vector<1x256xf32>
    %c0_166 = arith.constant 0 : index
    %c0_167 = arith.constant 0 : index
    %373 = vector.load %arg3[%c0_166, %c0_167] : memref<1x1xf32, #tpu.memory_space<vmem>>, vector<1x1xf32>
    %374 = vector.broadcast %373 : vector<1x1xf32> to vector<1x256xf32>
    %375 = arith.mulf %374, %371 : vector<1x256xf32>
    %cst_168 = arith.constant dense<0.000000e+00> : vector<2x256xf32>
    %376 = tpu.matmul %369, %370, %cst_168 {dimension_numbers = #tpu.dot_dimension_numbers<[1], [0], [0], [1], [0, 0, 1, 1], [], []>} : vector<2x128xf32>, vector<128x256xf32>, vector<2x256xf32> -> vector<2x256xf32>
    %377 = vector.broadcast %375 : vector<1x256xf32> to vector<2x256xf32>
    %378 = arith.addf %376, %377 : vector<2x256xf32>
    %379 = vector.broadcast %372 : vector<1x256xf32> to vector<2x256xf32>
    %380 = arith.addf %378, %379 : vector<2x256xf32>
    %cst_169 = arith.constant 0.000000e+00 : f32
    %381 = vector.broadcast %cst_169 : f32 to vector<2x256xf32>
    %382 = arith.maximumf %380, %381 : vector<2x256xf32>
    %c0_170 = arith.constant 0 : index
    %c0_171 = arith.constant 0 : index
    %383 = vector.load %arg43[%c0_170, %c0_171] : memref<256x128xf32, #tpu.memory_space<vmem>>, vector<256x128xf32>
    %c0_172 = arith.constant 0 : index
    %c0_173 = arith.constant 0 : index
    %384 = vector.load %arg44[%c0_172, %c0_173] : memref<1x128xf32, #tpu.memory_space<vmem>>, vector<1x128xf32>
    %cst_174 = arith.constant dense<0.000000e+00> : vector<2x128xf32>
    %385 = tpu.matmul %382, %383, %cst_174 {dimension_numbers = #tpu.dot_dimension_numbers<[1], [0], [0], [1], [0, 0, 1, 1], [], []>} : vector<2x256xf32>, vector<256x128xf32>, vector<2x128xf32> -> vector<2x128xf32>
    %386 = vector.broadcast %384 : vector<1x128xf32> to vector<2x128xf32>
    %387 = arith.addf %385, %386 : vector<2x128xf32>
    %cst_175 = arith.constant 0.000000e+00 : f32
    %388 = vector.broadcast %cst_175 : f32 to vector<2x128xf32>
    %389 = arith.maximumf %387, %388 : vector<2x128xf32>
    %c0_176 = arith.constant 0 : index
    %c0_177 = arith.constant 0 : index
    %390 = vector.load %arg45[%c0_176, %c0_177] : memref<128x64xf32, #tpu.memory_space<vmem>>, vector<128x64xf32>
    %c0_178 = arith.constant 0 : index
    %c0_179 = arith.constant 0 : index
    %391 = vector.load %arg46[%c0_178, %c0_179] : memref<1x64xf32, #tpu.memory_space<vmem>>, vector<1x64xf32>
    %cst_180 = arith.constant dense<0.000000e+00> : vector<2x64xf32>
    %392 = tpu.matmul %389, %390, %cst_180 {dimension_numbers = #tpu.dot_dimension_numbers<[1], [0], [0], [1], [0, 0, 1, 1], [], []>} : vector<2x128xf32>, vector<128x64xf32>, vector<2x64xf32> -> vector<2x64xf32>
    %393 = vector.broadcast %391 : vector<1x64xf32> to vector<2x64xf32>
    %394 = arith.addf %392, %393 : vector<2x64xf32>
    %cst_181 = arith.constant 0.000000e+00 : f32
    %395 = vector.broadcast %cst_181 : f32 to vector<2x64xf32>
    %396 = arith.maximumf %394, %395 : vector<2x64xf32>
    %c0_182 = arith.constant 0 : index
    %c0_183 = arith.constant 0 : index
    %397 = vector.load %arg47[%c0_182, %c0_183] : memref<64x7xf32, #tpu.memory_space<vmem>>, vector<64x7xf32>
    %c0_184 = arith.constant 0 : index
    %c0_185 = arith.constant 0 : index
    %398 = vector.load %arg48[%c0_184, %c0_185] : memref<1x7xf32, #tpu.memory_space<vmem>>, vector<1x7xf32>
    %cst_186 = arith.constant dense<0.000000e+00> : vector<2x7xf32>
    %399 = tpu.matmul %396, %397, %cst_186 {dimension_numbers = #tpu.dot_dimension_numbers<[1], [0], [0], [1], [0, 0, 1, 1], [], []>} : vector<2x64xf32>, vector<64x7xf32>, vector<2x7xf32> -> vector<2x7xf32>
    %400 = vector.broadcast %398 : vector<1x7xf32> to vector<2x7xf32>
    %401 = arith.addf %399, %400 : vector<2x7xf32>
    %c0_187 = arith.constant 0 : index
    %c0_188 = arith.constant 0 : index
    %402 = vector.load %arg49[%c0_187, %c0_188] : memref<2x7xf32, #tpu.memory_space<vmem>>, vector<2x7xf32>
    tpu.vector_store %arg49[%c0_187, %c0_188], %401 {strides = array<i32>} : memref<2x7xf32, #tpu.memory_space<vmem>>, vector<2x7xf32>,
    return
  }
}

</mosaic_0001>

<bundles_post_ra>
// kernel: gnn_forward.1
= control target key start
LH: loop header
LB: loop body
LE: loop exit
PB: predicated region body
PF: predicated region fallthrough
CT: control target
= control target key end

     0   :  { %s5837_s6 = smov 1   ;;  %s5838_s10 = smov 2   ;;  %s6880_s0 = inlined_call_operand.smem [shape: u32[50], index: -1, kind: input, shape index: {}] }
   0x1   :  { %s5942_s5 = sld [smem:[%s6880_s0]]   ;;  %s5839_s14 = smov 3  }
   0x2   :  { %s5947_s9 = sld [smem:[%s6880_s0 + %s5837_s6]]   ;;  %s5840_s18 = smov 4  }
   0x3   :  { %s5952_s13 = sld [smem:[%s6880_s0 + %s5838_s10]]   ;;  %s5841_s22 = smov 5  }
   0x4   :  { %s3967_s17 = sld [smem:[%s6880_s0 + %s5839_s14]]   ;;  %s5842_s26 = smov 6  }
   0x5   :  { %s5960_s21 = sld [smem:[%s6880_s0 + %s5840_s18]]   ;;  %s5843_s30 = smov 7  }
   0x6   :  { %s5965_s25 = sld [smem:[%s6880_s0 + %s5841_s22]]   ;;  %s5844_s4 = smov 8  }
   0x7   :  { %6910 = sst [smem:[#allocation80_spill]] %s5942_s5  ;;  %s5845_s10 = smov 9  }
   0x8   :  { %6911 = sst [smem:[#allocation81_spill]] %s5947_s9  ;;  %s5846_s15 = smov 10  }
   0x9   :  { %6912 = sst [smem:[#allocation82_spill]] %s5952_s13  ;;  %s5847_s20 = smov 11  }
   0xa   :  { %s5970_s29 = sld [smem:[%s6880_s0 + %s5842_s26]]   ;;  %v104_v0 = vstv %s3967_s17  ;;  %s5848_s26 = smov 12  }
   0xb   :  { %6913 = sst [smem:[#allocation83_spill]] %s5960_s21  ;;  %105 = vst [vmem:[#allocation2] sm:$0x1] %v104_v0  ;;  %s5849_s17 = smov 13  }
   0xc   :  { %s5975_s3 = sld [smem:[%s6880_s0 + %s5843_s30]]   ;;  %s5850_s6 = smov 14  }
   0xd   :  { %s5980_s8 = sld [smem:[%s6880_s0 + %s5844_s4]]   ;;  %s5851_s12 = smov 15  }
   0xe   :  { %s5985_s14 = sld [smem:[%s6880_s0 + %s5845_s10]]   ;;  %s5853_s27 = smov 17  }
   0xf   :  { %s5990_s19 = sld [smem:[%s6880_s0 + %s5846_s15]]   ;;  %s5854_s2 = smov 18  }
  0x10   :  { %6914 = sst [smem:[#allocation84_spill]] %s5970_s29 }
  0x11   :  { %s5995_s24 = sld [smem:[%s6880_s0 + %s5847_s20]]   ;;  %s5852_s20 = smov 16  }
  0x12   :  { %s6000_s30 = sld [smem:[%s6880_s0 + %s5848_s26]]  }
  0x13   :  { %6915 = sst [smem:[#allocation85_spill]] %s5980_s8 }
  0x14   :  { %s6005_s4 = sld [smem:[%s6880_s0 + %s5849_s17]]  }
  0x15   :  { %6916 = sst [smem:[#allocation86_spill]] %s5990_s19 }
  0x16   :  { %s6010_s11 = sld [smem:[%s6880_s0 + %s5850_s6]]  }
  0x17   :  { %s6015_s18 = sld [smem:[%s6880_s0 + %s5851_s12]]   ;;  %s5855_s12 = smov 19  }
  0x18   :  { %6917 = sst [smem:[#allocation87_spill]] %s6000_s30 }
  0x19   :  { %s6020_s26 = sld [smem:[%s6880_s0 + %s5852_s20]]   ;;  %s5856_s20 = smov 20  }
  0x1a   :  { %s6025_s1 = sld [smem:[%s6880_s0 + %s5853_s27]]   ;;  %s5857_s27 = smov 21  }
  0x1b   :  { %s6030_s10 = sld [smem:[%s6880_s0 + %s5854_s2]]   ;;  %s5858_s2 = smov 22  }
  0x1c   :  { %6918 = sst [smem:[#allocation88_spill]] %s6010_s11 }
  0x1d   :  { %s6035_s13 = sld [smem:[%s6880_s0 + %s5855_s12]]   ;;  %s5859_s12 = smov 23  }
  0x1e   :  { %s6040_s9 = sld [smem:[%s6880_s0 + %s5856_s20]]   ;;  %s5860_s20 = smov 24  }
  0x1f   :  { %6919 = sst [smem:[#allocation89_spill]] %s6020_s26 }
  0x20   :  { %s6045_s5 = sld [smem:[%s6880_s0 + %s5857_s27]]   ;;  %s5861_s27 = smov 25  }
  0x21   :  { %6920 = sst [smem:[#allocation90_spill]] %s6030_s10 }
  0x22   :  { %s6050_s10 = sld [smem:[%s6880_s0 + %s5858_s2]]   ;;  %s5862_s2 = smov 26  }
  0x23   :  { %s6055_s26 = sld [smem:[%s6880_s0 + %s5859_s12]]   ;;  %s5863_s12 = smov 27  }
  0x24   :  { %6921 = sst [smem:[#allocation91_spill]] %s6040_s9 }
  0x25   :  { %s6060_s9 = sld [smem:[%s6880_s0 + %s5860_s20]]   ;;  %s5864_s20 = smov 28  }
  0x26   :  { %s6065_s11 = sld [smem:[%s6880_s0 + %s5861_s27]]   ;;  %s5865_s27 = smov 29  }
  0x27   :  { %s6075_s30 = sld [smem:[%s6880_s0 + %s5863_s12]]   ;;  %s5867_s12 = smov 31  }
  0x28   :  { %6922 = sst [smem:[#allocation92_spill]] %s6050_s10 }
  0x29   :  { %s6070_s10 = sld [smem:[%s6880_s0 + %s5862_s2]]   ;;  %s5866_s2 = smov 30  }
  0x2a   :  { %s6085_s19 = sld [smem:[%s6880_s0 + %s5865_s27]]   ;;  %s5869_s27 = smov 33  }
  0x2b   :  { %6923 = sst [smem:[#allocation93_spill]] %s6060_s9 }
  0x2c   :  { %s6080_s9 = sld [smem:[%s6880_s0 + %s5864_s20]]   ;;  %s5868_s20 = smov 32  }
  0x2d   :  { %s6095_s8 = sld [smem:[%s6880_s0 + %s5867_s12]]   ;;  %s5871_s12 = smov 35  }
  0x2e   :  { %s6115_s29 = sld [smem:[%s6880_s0 + %s5871_s12]]   ;;  %s5875_s12 = smov 39  }
  0x2f   :  { %6924 = sst [smem:[#allocation94_spill]] %s6070_s10 }
  0x30   :  { %6926 = sst [smem:[#allocation96_spill]] %s6085_s19 }
  0x31   :  { %s6090_s10 = sld [smem:[%s6880_s0 + %s5866_s2]]   ;;  %s5870_s2 = smov 34  }
  0x32   :  { %6925 = sst [smem:[#allocation95_spill]] %s6080_s9 }
  0x33   :  { %s6100_s9 = sld [smem:[%s6880_s0 + %s5868_s20]]   ;;  %s5872_s20 = smov 36  }
  0x34   :  { %s6105_s19 = sld [smem:[%s6880_s0 + %s5869_s27]]   ;;  %s5873_s27 = smov 37  }
  0x35   :  { %6930 = sst [smem:[#allocation100_spill]] %s6115_s29 }
  0x36   :  { %s6135_s29 = sld [smem:[%s6880_s0 + %s5875_s12]]   ;;  %s5879_s12 = smov 43  }
  0x37   :  { %6927 = sst [smem:[#allocation97_spill]] %s6090_s10 }
  0x38   :  { %s6110_s10 = sld [smem:[%s6880_s0 + %s5870_s2]]   ;;  %s5874_s2 = smov 38  }
  0x39   :  { %6928 = sst [smem:[#allocation98_spill]] %s6100_s9 }
  0x3a   :  { %6929 = sst [smem:[#allocation99_spill]] %s6105_s19 }
  0x3b   :  { %s6120_s9 = sld [smem:[%s6880_s0 + %s5872_s20]]   ;;  %s5876_s20 = smov 40  }
  0x3c   :  { %s6125_s19 = sld [smem:[%s6880_s0 + %s5873_s27]]   ;;  %s5877_s27 = smov 41  }
  0x3d   :  { %s6130_s21 = sld [smem:[%s6880_s0 + %s5874_s2]]   ;;  %s5878_s2 = smov 42  }
  0x3e   :  { %6934 = sst [smem:[#allocation104_spill]] %s6135_s29 }
  0x3f   :  { %s6155_s29 = sld [smem:[%s6880_s0 + %s5879_s12]]   ;;  %s5883_s12 = smov 47  }
  0x41   :  { %6931 = sst [smem:[#allocation101_spill]] %s6120_s9 }
  0x42   :  { %6932 = sst [smem:[#allocation102_spill]] %s6125_s19 }
  0x43   :  { %6933 = sst [smem:[#allocation103_spill]] %s6130_s21 }
  0x44   :  { %s6140_s9 = sld [smem:[%s6880_s0 + %s5876_s20]]   ;;  %s5880_s20 = smov 44  }
  0x45   :  { %s6145_s19 = sld [smem:[%s6880_s0 + %s5877_s27]]   ;;  %s5881_s27 = smov 45  }
  0x46   :  { %s6150_s21 = sld [smem:[%s6880_s0 + %s5878_s2]]   ;;  %s5882_s2 = smov 46  }
  0x47   :  { %6938 = sst [smem:[#allocation108_spill]] %s6155_s29 }
  0x48   :  { %s6175_s29 = sld [smem:[%s6880_s0 + %s5883_s12]]  }
  0x4a   :  { %6935 = sst [smem:[#allocation105_spill]] %s6140_s9 }
  0x4b   :  { %6936 = sst [smem:[#allocation106_spill]] %s6145_s19 }
  0x4c   :  { %6937 = sst [smem:[#allocation107_spill]] %s6150_s21 }
  0x4d   :  { %s6160_s9 = sld [smem:[%s6880_s0 + %s5880_s20]]   ;;  %s5884_s20 = smov 48  }
  0x4e   :  { %s6165_s19 = sld [smem:[%s6880_s0 + %s5881_s27]]   ;;  %s5885_s27 = smov 49  }
  0x4f   :  { %s6170_s21 = sld [smem:[%s6880_s0 + %s5882_s2]]  }
  0x53   :  { %6939 = sst [smem:[#allocation109_spill]] %s6160_s9 }
  0x54   :  { %6940 = sst [smem:[#allocation110_spill]] %s6165_s19 }
  0x55   :  { %s6180_s9 = sld [smem:[%s6880_s0 + %s5884_s20]]  }
  0x56   :  { %s6185_s19 = sld [smem:[%s6880_s0 + %s5885_s27]]  }
  0x57   :  { %106 = vsyncpa [#allocation4], 0 }
  0x58   :  { %107 = vsyncpa [#allocation7], 0 }
  0x59   :  { %108 = vsyncpa [#allocation10], 0 }
  0x5a   :  { %109 = vsyncpa [#allocation13], 0 }
  0x5b   :  { %110 = vsyncpa [#allocation16], 0 }
  0x5c   :  { %111 = vsyncpa [#allocation19], 0 }
  0x5d   :  { %112 = vsyncpa [#allocation22], 0 }
  0x5e   :  { %113 = vsyncpa [#allocation25], 0 }
  0x5f   :  { %114 = vsyncpa [#allocation28], 0 }
  0x60   :  { %115 = vsyncpa [#allocation31], 0 }
  0x61   :  { %116 = vsyncpa [#allocation34], 0 }
  0x62   :  { %117 = vsyncpa [#allocation37], 0 }
  0x63   :  { %118 = vsyncpa [#allocation40], 0 }
  0x64   :  { %119 = vsyncpa [#allocation43], 0 }
  0x65   :  { %120 = vsyncpa [#allocation46], 0 }
  0x66   :  { %121 = vsyncpa [#allocation49], 0 }
  0x67   :  { %122 = vsyncpa [#allocation52], 0 }
  0x68   :  { %123 = vsyncpa [#allocation55], 0 }
  0x69   :  { %124 = vsyncpa [#allocation58], 0 }
  0x6a   :  { %125 = vsyncpa [#allocation5], 0  ;;  %s5886_s0 = smov [#allocation6]   ;;  %s5887_s6 = smov [#allocation9]  }
  0x6b   :  { %s152_s2 = sshll.u32 %s5886_s0, 4  ;;  %s172_s7 = sshll.u32 %s5887_s6, 4  ;;  %s153_s2 = int_to_ptr.vmem [resolvable:$true] %s152_s2  ;;  %s173_s7 = int_to_ptr.vmem [resolvable:$true] %s172_s7 }
  0x6c   :  { %s4983_s12 = scalar_lea.hbm %s5965_s25, 16 }
  0x6d   :  { %p4984_p0 = scmp.ne.s32.totalorder %s5965_s25, %s4983_s12  ;;  %p4987_p1 = scmp.lt.u32.totalorder %s4983_s12, %s5965_s25 }
  0x6f   :  { %p4989_p2 = pnand %p4987_p1, %p4984_p0 }
  0x71   :  { %4992 = shalt.err (!%p4989_p2)
}
  0x72   :  { %s4993_s15 = scalar_lea.vmem %s153_s2, 16  ;;  %s4997_s16 = scalar_lea.vmem %s153_s2, 32 }
  0x73   :  { %p4994_p3 = scmp.ne.s32.totalorder %s153_s2, %s4993_s15  ;;  %p4998_p4 = scmp.lt.s32.totalorder %s153_s2, %s153_s2 }
  0x74   :  { %p4999_p5 = scmp.lt.s32.totalorder %s4997_s16, %s4993_s15 }
  0x76   :  { %p5000_p6 = por %p4999_p5, %p4998_p4 }
  0x78   :  { %p5001_p7 = pnand %p5000_p6, %p4994_p3 }
  0x7a   :  { %5004 = shalt.err (!%p5001_p7)
}
  0x7b   :  { %155 = dma.hbm_to_vmem [thread:$0]  %s5965_s25, 16, %s153_s2, [#allocation7]  }
  0x7c   :  { %s5005_s20 = scalar_lea.hbm %s5975_s3, 16 }
  0x7d   :  { %p5006_p8 = scmp.ne.s32.totalorder %s5975_s3, %s5005_s20  ;;  %p5009_p9 = scmp.lt.u32.totalorder %s5005_s20, %s5975_s3 }
  0x7f   :  { %p5011_p10 = pnand %p5009_p9, %p5006_p8 }
  0x81   :  { %5014 = shalt.err (!%p5011_p10)
}
  0x82   :  { %s5015_s22 = scalar_lea.vmem %s173_s7, 16  ;;  %s5019_s23 = scalar_lea.vmem %s173_s7, 32 }
  0x83   :  { %p5016_p11 = scmp.ne.s32.totalorder %s173_s7, %s5015_s22  ;;  %p5020_p12 = scmp.lt.s32.totalorder %s173_s7, %s173_s7 }
  0x84   :  { %p5021_p13 = scmp.lt.s32.totalorder %s5019_s23, %s5015_s22 }
  0x86   :  { %p5022_p0 = por %p5021_p13, %p5020_p12 }
  0x88   :  { %p5023_p1 = pnand %p5022_p0, %p5016_p11 }
  0x8a   :  { %5026 = shalt.err (!%p5023_p1)
}
  0x8b   :  { %175 = dma.hbm_to_vmem [thread:$0]  %s5975_s3, 16, %s173_s7, [#allocation10]  }
  0x8c   :  { %s5888_s27 = smov [#allocation12]   ;;  %s5889_s28 = smov [#allocation15]  }
  0x8d   :  { %s191_s25 = sshll.u32 %s5888_s27, 4  ;;  %s214_s17 = sshll.u32 %s5889_s28, 4  ;;  %s192_s25 = int_to_ptr.vmem [resolvable:$true] %s191_s25  ;;  %s6195_s17 = int_to_ptr.vmem [resolvable:$true] %s214_s17 }
  0x8e   :  { %s5027_s0 = scalar_lea.hbm %s5985_s14, 512 }
  0x8f   :  { %p5028_p2 = scmp.ne.s32.totalorder %s5985_s14, %s5027_s0  ;;  %p5031_p3 = scmp.lt.u32.totalorder %s5027_s0, %s5985_s14 }
  0x91   :  { %p5033_p4 = pnand %p5031_p3, %p5028_p2 }
  0x93   :  { %5036 = shalt.err (!%p5033_p4)
}
  0x94   :  { %s5037_s2 = scalar_lea.vmem %s192_s25, 512  ;;  %p5042_p6 = scmp.lt.s32.totalorder %s192_s25, %s192_s25 }
  0x95   :  { %p5038_p5 = scmp.ne.s32.totalorder %s192_s25, %s5037_s2  ;;  %p5043_p7 = scmp.lt.s32.totalorder %s5037_s2, %s5037_s2 }
  0x97   :  { %p5044_p8 = por %p5043_p7, %p5042_p6 }
  0x99   :  { %p5045_p9 = pnand %p5044_p8, %p5038_p5 }
  0x9b   :  { %5048 = shalt.err (!%p5045_p9)
}
  0x9c   :  { %s5890_s3 = smov 128   ;;  %s5891_s6 = smov 8  }
  0x9d   :  { %197 = dma.hbm_to_vmem [thread:$0]  %s5985_s14, 512, %s192_s25, [#allocation13], %s5890_s3, %s5890_s3, %s5891_s6  }
  0x9e   :  { %s5049_s7 = scalar_lea.hbm %s5995_s24, 16 }
  0x9f   :  { %p5050_p10 = scmp.ne.s32.totalorder %s5995_s24, %s5049_s7  ;;  %p5053_p11 = scmp.lt.u32.totalorder %s5049_s7, %s5995_s24 }
  0xa1   :  { %p5055_p12 = pnand %p5053_p11, %p5050_p10 }
  0xa3   :  { %5058 = shalt.err (!%p5055_p12)
}
  0xa4   :  { %s5059_s12 = scalar_lea.vmem %s6195_s17, 16  ;;  %s5063_s15 = scalar_lea.vmem %s6195_s17, 32 }
  0xa5   :  { %p5060_p13 = scmp.ne.s32.totalorder %s6195_s17, %s5059_s12  ;;  %p5064_p0 = scmp.lt.s32.totalorder %s6195_s17, %s6195_s17 }
  0xa6   :  { %p5065_p1 = scmp.lt.s32.totalorder %s5063_s15, %s5059_s12 }
  0xa8   :  { %p5066_p2 = por %p5065_p1, %p5064_p0 }
  0xaa   :  { %p5067_p3 = pnand %p5066_p2, %p5060_p13 }
  0xac   :  { %5070 = shalt.err (!%p5067_p3)
}
  0xad   :  { %217 = dma.hbm_to_vmem [thread:$0]  %s5995_s24, 16, %s6195_s17, [#allocation16]  }
  0xae   :  { %s5892_s14 = smov [#allocation18]   ;;  %s5893_s20 = smov [#allocation21]  }
  0xaf   :  { %s234_s16 = sshll.u32 %s5892_s14, 4  ;;  %s256_s22 = sshll.u32 %s5893_s20, 4  ;;  %s235_s16 = int_to_ptr.vmem [resolvable:$true] %s234_s16  ;;  %s257_s22 = int_to_ptr.vmem [resolvable:$true] %s256_s22 }
  0xb0   :  { %s5071_s23 = scalar_lea.hbm %s6005_s4, 16 }
  0xb1   :  { %p5072_p4 = scmp.ne.s32.totalorder %s6005_s4, %s5071_s23  ;;  %p5075_p5 = scmp.lt.u32.totalorder %s5071_s23, %s6005_s4 }
  0xb3   :  { %p5077_p6 = pnand %p5075_p5, %p5072_p4 }
  0xb5   :  { %5080 = shalt.err (!%p5077_p6)
}
  0xb6   :  { %s5081_s27 = scalar_lea.vmem %s235_s16, 16  ;;  %s5085_s25 = scalar_lea.vmem %s235_s16, 32 }
  0xb7   :  { %p5082_p7 = scmp.ne.s32.totalorder %s235_s16, %s5081_s27  ;;  %p5086_p8 = scmp.lt.s32.totalorder %s235_s16, %s235_s16 }
  0xb8   :  { %p5087_p9 = scmp.lt.s32.totalorder %s5085_s25, %s5081_s27 }
  0xba   :  { %p5088_p10 = por %p5087_p9, %p5086_p8 }
  0xbc   :  { %p5089_p11 = pnand %p5088_p10, %p5082_p7 }
  0xbe   :  { %5092 = shalt.err (!%p5089_p11)
}
  0xbf   :  { %237 = dma.hbm_to_vmem [thread:$0]  %s6005_s4, 16, %s235_s16, [#allocation19]  }
  0xc0   :  { %s5093_s24 = scalar_lea.hbm %s6015_s18, 16 }
  0xc1   :  { %p5094_p12 = scmp.ne.s32.totalorder %s6015_s18, %s5093_s24  ;;  %p5097_p13 = scmp.lt.u32.totalorder %s5093_s24, %s6015_s18 }
  0xc3   :  { %p5099_p0 = pnand %p5097_p13, %p5094_p12 }
  0xc5   :  { %5102 = shalt.err (!%p5099_p0)
}
  0xc6   :  { %s5103_s28 = scalar_lea.vmem %s257_s22, 16  ;;  %s5107_s17 = scalar_lea.vmem %s257_s22, 32 }
  0xc7   :  { %p5104_p1 = scmp.ne.s32.totalorder %s257_s22, %s5103_s28  ;;  %p5108_p2 = scmp.lt.s32.totalorder %s257_s22, %s257_s22 }
  0xc8   :  { %p5109_p3 = scmp.lt.s32.totalorder %s5107_s17, %s5103_s28 }
  0xca   :  { %p5110_p4 = por %p5109_p3, %p5108_p2 }
  0xcc   :  { %p5111_p5 = pnand %p5110_p4, %p5104_p1 }
  0xce   :  { %5114 = shalt.err (!%p5111_p5)
}
  0xcf   :  { %259 = dma.hbm_to_vmem [thread:$0]  %s6015_s18, 16, %s257_s22, [#allocation22]  }
  0xd0   :  { %s5894_s0 = smov [#allocation24]   ;;  %s5895_s2 = smov [#allocation27]  }
  0xd1   :  { %s278_s4 = sshll.u32 %s5894_s0, 4  ;;  %s298_s7 = sshll.u32 %s5895_s2, 4  ;;  %s279_s4 = int_to_ptr.vmem [resolvable:$true] %s278_s4  ;;  %s299_s7 = int_to_ptr.vmem [resolvable:$true] %s298_s7 }
  0xd2   :  { %s5115_s12 = scalar_lea.hbm %s6025_s1, 16 }
  0xd3   :  { %p5116_p6 = scmp.ne.s32.totalorder %s6025_s1, %s5115_s12  ;;  %p5119_p7 = scmp.lt.u32.totalorder %s5115_s12, %s6025_s1 }
  0xd5   :  { %p5121_p8 = pnand %p5119_p7, %p5116_p6 }
  0xd7   :  { %5124 = shalt.err (!%p5121_p8)
}
  0xd8   :  { %s5125_s15 = scalar_lea.vmem %s279_s4, 16  ;;  %s5129_s14 = scalar_lea.vmem %s279_s4, 32 }
  0xd9   :  { %p5126_p9 = scmp.ne.s32.totalorder %s279_s4, %s5125_s15  ;;  %p5130_p10 = scmp.lt.s32.totalorder %s279_s4, %s279_s4 }
  0xda   :  { %p5131_p11 = scmp.lt.s32.totalorder %s5129_s14, %s5125_s15 }
  0xdc   :  { %p5132_p12 = por %p5131_p11, %p5130_p10 }
  0xde   :  { %p5133_p13 = pnand %p5132_p12, %p5126_p9 }
  0xe0   :  { %5136 = shalt.err (!%p5133_p13)
}
  0xe1   :  { %281 = dma.hbm_to_vmem [thread:$0]  %s6025_s1, 16, %s279_s4, [#allocation25]  }
  0xe2   :  { %s5137_s18 = scalar_lea.hbm %s6035_s13, 16 }
  0xe3   :  { %p5138_p0 = scmp.ne.s32.totalorder %s6035_s13, %s5137_s18  ;;  %p5141_p1 = scmp.lt.u32.totalorder %s5137_s18, %s6035_s13 }
  0xe5   :  { %p5143_p2 = pnand %p5141_p1, %p5138_p0 }
  0xe7   :  { %5146 = shalt.err (!%p5143_p2)
}
  0xe8   :  { %s5147_s16 = scalar_lea.vmem %s299_s7, 16  ;;  %s5151_s20 = scalar_lea.vmem %s299_s7, 32 }
  0xe9   :  { %p5148_p3 = scmp.ne.s32.totalorder %s299_s7, %s5147_s16  ;;  %p5152_p4 = scmp.lt.s32.totalorder %s299_s7, %s299_s7 }
  0xea   :  { %p5153_p5 = scmp.lt.s32.totalorder %s5151_s20, %s5147_s16 }
  0xec   :  { %p5154_p6 = por %p5153_p5, %p5152_p4 }
  0xee   :  { %p5155_p7 = pnand %p5154_p6, %p5148_p3 }
  0xf0   :  { %5158 = shalt.err (!%p5155_p7)
}
  0xf1   :  { %301 = dma.hbm_to_vmem [thread:$0]  %s6035_s13, 16, %s299_s7, [#allocation28]  }
  0xf2   :  { %s5896_s22 = smov [#allocation30]   ;;  %s5897_s23 = smov [#allocation33]  }
  0xf3   :  { %s317_s1 = sshll.u32 %s5896_s22, 4  ;;  %s340_s27 = sshll.u32 %s5897_s23, 4  ;;  %s318_s1 = int_to_ptr.vmem [resolvable:$true] %s317_s1  ;;  %s341_s27 = int_to_ptr.vmem [resolvable:$true] %s340_s27 }
  0xf4   :  { %s5159_s25 = scalar_lea.hbm %s6045_s5, 1024 }
  0xf5   :  { %p5160_p8 = scmp.ne.s32.totalorder %s6045_s5, %s5159_s25  ;;  %p5163_p9 = scmp.lt.u32.totalorder %s5159_s25, %s6045_s5 }
  0xf7   :  { %p5165_p10 = pnand %p5163_p9, %p5160_p8 }
  0xf9   :  { %5168 = shalt.err (!%p5165_p10)
}
  0xfa   :  { %s5169_s24 = scalar_lea.vmem %s318_s1, 1024  ;;  %p5174_p12 = scmp.lt.s32.totalorder %s318_s1, %s318_s1 }
  0xfb   :  { %p5170_p11 = scmp.ne.s32.totalorder %s318_s1, %s5169_s24  ;;  %p5175_p13 = scmp.lt.s32.totalorder %s5169_s24, %s5169_s24 }
  0xfd   :  { %p5176_p0 = por %p5175_p13, %p5174_p12 }
  0xff   :  { %p5177_p1 = pnand %p5176_p0, %p5170_p11 }
 0x101   :  { %5180 = shalt.err (!%p5177_p1)
}
 0x102   :  { %323 = dma.hbm_to_vmem [thread:$0]  %s6045_s5, 1024, %s318_s1, [#allocation31], %s5890_s3, %s5890_s3, %s5891_s6  }
 0x103   :  { %s5181_s13 = scalar_lea.hbm %s6055_s26, 16 }
 0x104   :  { %p5182_p2 = scmp.ne.s32.totalorder %s6055_s26, %s5181_s13  ;;  %p5185_p3 = scmp.lt.u32.totalorder %s5181_s13, %s6055_s26 }
 0x106   :  { %p5187_p4 = pnand %p5185_p3, %p5182_p2 }
 0x108   :  { %5190 = shalt.err (!%p5187_p4)
}
 0x109   :  { %s5191_s28 = scalar_lea.vmem %s341_s27, 16  ;;  %s5195_s17 = scalar_lea.vmem %s341_s27, 32 }
 0x10a   :  { %p5192_p5 = scmp.ne.s32.totalorder %s341_s27, %s5191_s28  ;;  %p5196_p6 = scmp.lt.s32.totalorder %s341_s27, %s341_s27 }
 0x10b   :  { %p5197_p7 = scmp.lt.s32.totalorder %s5195_s17, %s5191_s28 }
 0x10d   :  { %p5198_p8 = por %p5197_p7, %p5196_p6 }
 0x10f   :  { %p5199_p9 = pnand %p5198_p8, %p5192_p5 }
 0x111   :  { %5202 = shalt.err (!%p5199_p9)
}
 0x112   :  { %343 = dma.hbm_to_vmem [thread:$0]  %s6055_s26, 16, %s341_s27, [#allocation34]  }
 0x113   :  { %s5898_s0 = smov [#allocation36]   ;;  %s5899_s4 = smov [#allocation39]  }
 0x114   :  { %s360_s5 = sshll.u32 %s5898_s0, 4  ;;  %s382_s2 = sshll.u32 %s5899_s4, 4  ;;  %s361_s5 = int_to_ptr.vmem [resolvable:$true] %s360_s5  ;;  %s383_s2 = int_to_ptr.vmem [resolvable:$true] %s382_s2 }
 0x115   :  { %s5203_s7 = scalar_lea.hbm %s6065_s11, 16 }
 0x116   :  { %p5204_p10 = scmp.ne.s32.totalorder %s6065_s11, %s5203_s7  ;;  %p5207_p11 = scmp.lt.u32.totalorder %s5203_s7, %s6065_s11 }
 0x118   :  { %p5209_p12 = pnand %p5207_p11, %p5204_p10 }
 0x11a   :  { %5212 = shalt.err (!%p5209_p12)
}
 0x11b   :  { %s5213_s12 = scalar_lea.vmem %s361_s5, 16  ;;  %s5217_s15 = scalar_lea.vmem %s361_s5, 32 }
 0x11c   :  { %p5214_p13 = scmp.ne.s32.totalorder %s361_s5, %s5213_s12  ;;  %p5218_p0 = scmp.lt.s32.totalorder %s361_s5, %s361_s5 }
 0x11d   :  { %p5219_p1 = scmp.lt.s32.totalorder %s5217_s15, %s5213_s12 }
 0x11f   :  { %p5220_p2 = por %p5219_p1, %p5218_p0 }
 0x121   :  { %p5221_p3 = pnand %p5220_p2, %p5214_p13 }
 0x123   :  { %5224 = shalt.err (!%p5221_p3)
}
 0x124   :  { %363 = dma.hbm_to_vmem [thread:$0]  %s6065_s11, 16, %s361_s5, [#allocation37]  }
 0x125   :  { %s5225_s26 = scalar_lea.hbm %s6075_s30, 16 }
 0x126   :  { %p5226_p4 = scmp.ne.s32.totalorder %s6075_s30, %s5225_s26  ;;  %p5229_p5 = scmp.lt.u32.totalorder %s5225_s26, %s6075_s30 }
 0x128   :  { %p5231_p6 = pnand %p5229_p5, %p5226_p4 }
 0x12a   :  { %5234 = shalt.err (!%p5231_p6)
}
 0x12b   :  { %s5235_s14 = scalar_lea.vmem %s383_s2, 16  ;;  %s5239_s18 = scalar_lea.vmem %s383_s2, 32 }
 0x12c   :  { %p5236_p7 = scmp.ne.s32.totalorder %s383_s2, %s5235_s14  ;;  %p5240_p8 = scmp.lt.s32.totalorder %s383_s2, %s383_s2 }
 0x12d   :  { %p5241_p9 = scmp.lt.s32.totalorder %s5239_s18, %s5235_s14 }
 0x12f   :  { %p5242_p10 = por %p5241_p9, %p5240_p8 }
 0x131   :  { %p5243_p11 = pnand %p5242_p10, %p5236_p7 }
 0x133   :  { %5246 = shalt.err (!%p5243_p11)
}
 0x134   :  { %385 = dma.hbm_to_vmem [thread:$0]  %s6075_s30, 16, %s383_s2, [#allocation40]  }
 0x135   :  { %s5900_s16 = smov [#allocation42]   ;;  %s5901_s20 = smov [#allocation45]  }
 0x136   :  { %s406_s11 = sshll.u32 %s5900_s16, 4  ;;  %s428_s22 = sshll.u32 %s5901_s20, 4  ;;  %s407_s11 = int_to_ptr.vmem [resolvable:$true] %s406_s11  ;;  %s429_s22 = int_to_ptr.vmem [resolvable:$true] %s428_s22 }
 0x137   :  { %s5247_s1 = scalar_lea.hbm %s6095_s8, 16 }
 0x138   :  { %p5248_p12 = scmp.ne.s32.totalorder %s6095_s8, %s5247_s1  ;;  %p5251_p13 = scmp.lt.u32.totalorder %s5247_s1, %s6095_s8 }
 0x13a   :  { %p5253_p0 = pnand %p5251_p13, %p5248_p12 }
 0x13c   :  { %5256 = shalt.err (!%p5253_p0)
}
 0x13d   :  { %s5257_s23 = scalar_lea.vmem %s407_s11, 16  ;;  %s5261_s27 = scalar_lea.vmem %s407_s11, 32 }
 0x13e   :  { %p5258_p1 = scmp.ne.s32.totalorder %s407_s11, %s5257_s23  ;;  %p5262_p2 = scmp.lt.s32.totalorder %s407_s11, %s407_s11 }
 0x13f   :  { %p5263_p3 = scmp.lt.s32.totalorder %s5261_s27, %s5257_s23 }
 0x141   :  { %p5264_p4 = por %p5263_p3, %p5262_p2 }
 0x143   :  { %p5265_p5 = pnand %p5264_p4, %p5258_p1 }
 0x145   :  { %5268 = shalt.err (!%p5265_p5)
}
 0x146   :  { %409 = dma.hbm_to_vmem [thread:$0]  %s6095_s8, 16, %s407_s11, [#allocation43]  }
 0x147   :  { %s5269_s30 = scalar_lea.hbm %s6110_s10, 16 }
 0x148   :  { %p5270_p6 = scmp.ne.s32.totalorder %s6110_s10, %s5269_s30  ;;  %p5273_p7 = scmp.lt.u32.totalorder %s5269_s30, %s6110_s10 }
 0x14a   :  { %p5275_p8 = pnand %p5273_p7, %p5270_p6 }
 0x14c   :  { %5278 = shalt.err (!%p5275_p8)
}
 0x14d   :  { %s5279_s25 = scalar_lea.vmem %s429_s22, 16  ;;  %s5283_s24 = scalar_lea.vmem %s429_s22, 32 }
 0x14e   :  { %p5280_p9 = scmp.ne.s32.totalorder %s429_s22, %s5279_s25  ;;  %p5284_p10 = scmp.lt.s32.totalorder %s429_s22, %s429_s22 }
 0x14f   :  { %p5285_p11 = scmp.lt.s32.totalorder %s5283_s24, %s5279_s25 }
 0x151   :  { %p5286_p12 = por %p5285_p11, %p5284_p10 }
 0x153   :  { %p5287_p13 = pnand %p5286_p12, %p5280_p9 }
 0x155   :  { %5290 = shalt.err (!%p5287_p13)
}
 0x156   :  { %s6941_s13 = sld [smem:[#allocation101_spill]]  ;;  %s5902_s28 = smov [#allocation48]  }
 0x157   :  { %431 = dma.hbm_to_vmem [thread:$0]  %s6110_s10, 16, %s429_s22, [#allocation46]  }
 0x158   :  { %s448_s8 = sshll.u32 %s5902_s28, 4  ;;  %s5903_s17 = smov [#allocation51]   ;;  %s449_s8 = int_to_ptr.vmem [resolvable:$true] %s448_s8 }
 0x159   :  { %s467_s0 = sshll.u32 %s5903_s17, 4  ;;  %s6257_s0 = int_to_ptr.vmem [resolvable:$true] %s467_s0 }
 0x15c   :  { %s5291_s5 = scalar_lea.hbm %s6941_s13, 16 }
 0x15d   :  { %p5292_p0 = scmp.ne.s32.totalorder %s6941_s13, %s5291_s5  ;;  %p5295_p1 = scmp.lt.u32.totalorder %s5291_s5, %s6941_s13 }
 0x15f   :  { %p5297_p2 = pnand %p5295_p1, %p5292_p0 }
 0x161   :  { %5300 = shalt.err (!%p5297_p2)
}
 0x162   :  { %s5301_s4 = scalar_lea.vmem %s449_s8, 16  ;;  %s5305_s2 = scalar_lea.vmem %s449_s8, 32 }
 0x163   :  { %p5302_p3 = scmp.ne.s32.totalorder %s449_s8, %s5301_s4  ;;  %p5306_p4 = scmp.lt.s32.totalorder %s449_s8, %s449_s8 }
 0x164   :  { %p5307_p5 = scmp.lt.s32.totalorder %s5305_s2, %s5301_s4 }
 0x166   :  { %p5308_p6 = por %p5307_p5, %p5306_p4 }
 0x168   :  { %p5309_p7 = pnand %p5308_p6, %p5302_p3 }
 0x16a   :  { %5312 = shalt.err (!%p5309_p7)
}
 0x16b   :  { %s6942_s10 = sld [smem:[#allocation103_spill]] }
 0x16c   :  { %451 = dma.hbm_to_vmem [thread:$0]  %s6941_s13, 16, %s449_s8, [#allocation49]  }
 0x171   :  { %s5313_s7 = scalar_lea.hbm %s6942_s10, 1024 }
 0x172   :  { %p5314_p8 = scmp.ne.s32.totalorder %s6942_s10, %s5313_s7  ;;  %p5317_p9 = scmp.lt.u32.totalorder %s5313_s7, %s6942_s10 }
 0x174   :  { %p5319_p10 = pnand %p5317_p9, %p5314_p8 }
 0x176   :  { %5322 = shalt.err (!%p5319_p10)
}
 0x177   :  { %s5323_s12 = scalar_lea.vmem %s6257_s0, 1024  ;;  %p5328_p12 = scmp.lt.s32.totalorder %s6257_s0, %s6257_s0 }
 0x178   :  { %p5324_p11 = scmp.ne.s32.totalorder %s6257_s0, %s5323_s12  ;;  %p5329_p13 = scmp.lt.s32.totalorder %s5323_s12, %s5323_s12 }
 0x17a   :  { %p5330_p0 = por %p5329_p13, %p5328_p12 }
 0x17c   :  { %p5331_p1 = pnand %p5330_p0, %p5324_p11 }
 0x17e   :  { %5334 = shalt.err (!%p5331_p1)
}
 0x17f   :  { %s6943_s15 = sld [smem:[#allocation106_spill]]  ;;  %s5904_s26 = smov [#allocation54]  }
 0x180   :  { %473 = dma.hbm_to_vmem [thread:$0]  %s6942_s10, 1024, %s6257_s0, [#allocation52], %s5890_s3, %s5890_s3, %s5891_s6  }
 0x181   :  { %s492_s14 = sshll.u32 %s5904_s26, 4  ;;  %s5905_s18 = smov [#allocation3]   ;;  %s493_s14 = int_to_ptr.vmem [resolvable:$true] %s492_s14 }
 0x182   :  { %s139_s16 = sshll.u32 %s5905_s18, 4  ;;  %s6275_s16 = int_to_ptr.vmem [resolvable:$true] %s139_s16 }
 0x185   :  { %s5335_s11 = scalar_lea.hbm %s6943_s15, 32 }
 0x186   :  { %p5336_p2 = scmp.ne.s32.totalorder %s6943_s15, %s5335_s11  ;;  %p5339_p3 = scmp.lt.u32.totalorder %s5335_s11, %s6943_s15 }
 0x188   :  { %p5341_p4 = pnand %p5339_p3, %p5336_p2 }
 0x18a   :  { %5344 = shalt.err (!%p5341_p4)
}
 0x18b   :  { %s5345_s20 = scalar_lea.vmem %s493_s14, 32  ;;  %p5350_p6 = scmp.lt.s32.totalorder %s493_s14, %s493_s14 }
 0x18c   :  { %p5346_p5 = scmp.ne.s32.totalorder %s493_s14, %s5345_s20  ;;  %p5351_p7 = scmp.lt.s32.totalorder %s5345_s20, %s5345_s20 }
 0x18e   :  { %p5352_p8 = por %p5351_p7, %p5350_p6 }
 0x190   :  { %p5353_p9 = pnand %p5352_p8, %p5346_p5 }
 0x192   :  { %5356 = shalt.err (!%p5353_p9)
}
 0x193   :  { %s6944_s22 = sld [smem:[#allocation83_spill]] }
 0x194   :  { %495 = dma.hbm_to_vmem [thread:$0]  %s6943_s15, 32, %s493_s14, [#allocation55]  }
 0x199   :  { %s5357_s1 = scalar_lea.hbm %s6944_s22, 256 }
 0x19a   :  { %p5358_p10 = scmp.ne.s32.totalorder %s6944_s22, %s5357_s1  ;;  %p5361_p11 = scmp.lt.u32.totalorder %s5357_s1, %s6944_s22 }
 0x19c   :  { %p5363_p12 = pnand %p5361_p11, %p5358_p10 }
 0x19e   :  { %5366 = shalt.err (!%p5363_p12)
}
 0x19f   :  { %s5367_s23 = scalar_lea.vmem %s6275_s16, 256  ;;  %p5372_p0 = scmp.lt.s32.totalorder %s6275_s16, %s6275_s16 }
 0x1a0   :  { %p5368_p13 = scmp.ne.s32.totalorder %s6275_s16, %s5367_s23  ;;  %p5373_p1 = scmp.lt.s32.totalorder %s5367_s23, %s5367_s23 }
 0x1a2   :  { %p5374_p2 = por %p5373_p1, %p5372_p0 }
 0x1a4   :  { %p5375_p3 = pnand %p5374_p2, %p5368_p13 }
 0x1a6   :  { %5378 = shalt.err (!%p5375_p3)
}
 0x1a7   :  { %s6945_s27 = sld [smem:[#allocation84_spill]]  ;;  %s5906_s30 = smov [#allocation8]  }
 0x1a8   :  { %145 = dma.hbm_to_vmem [thread:$0]  %s6944_s22, 256, %s6275_s16, [#allocation4], %s5890_s3, %s5890_s3, %s5891_s6  }
 0x1a9   :  { %s162_s25 = sshll.u32 %s5906_s30, 4  ;;  %s5907_s24 = smov [#allocation11]   ;;  %s163_s25 = int_to_ptr.vmem [resolvable:$true] %s162_s25 }
 0x1aa   :  { %s182_s13 = sshll.u32 %s5907_s24, 4  ;;  %s183_s13 = int_to_ptr.vmem [resolvable:$true] %s182_s13 }
 0x1ad   :  { %s5379_s28 = scalar_lea.hbm %s6945_s27, 16 }
 0x1ae   :  { %p5380_p4 = scmp.ne.s32.totalorder %s6945_s27, %s5379_s28  ;;  %p5383_p5 = scmp.lt.u32.totalorder %s5379_s28, %s6945_s27 }
 0x1b0   :  { %p5385_p6 = pnand %p5383_p5, %p5380_p4 }
 0x1b2   :  { %5388 = shalt.err (!%p5385_p6)
}
 0x1b3   :  { %s5389_s8 = scalar_lea.vmem %s163_s25, 16  ;;  %s5393_s17 = scalar_lea.vmem %s163_s25, 32 }
 0x1b4   :  { %p5390_p7 = scmp.ne.s32.totalorder %s163_s25, %s5389_s8  ;;  %p5394_p8 = scmp.lt.s32.totalorder %s163_s25, %s163_s25 }
 0x1b5   :  { %p5395_p9 = scmp.lt.s32.totalorder %s5393_s17, %s5389_s8 }
 0x1b7   :  { %p5396_p10 = por %p5395_p9, %p5394_p8 }
 0x1b9   :  { %p5397_p11 = pnand %p5396_p10, %p5390_p7 }
 0x1bb   :  { %5400 = shalt.err (!%p5397_p11)
}
 0x1bc   :  { %s6946_s0 = sld [smem:[#allocation85_spill]] }
 0x1bd   :  { %165 = dma.hbm_to_vmem [thread:$0]  %s6945_s27, 16, %s163_s25, [#allocation7]  }
 0x1c2   :  { %s5401_s5 = scalar_lea.hbm %s6946_s0, 16 }
 0x1c3   :  { %p5402_p12 = scmp.ne.s32.totalorder %s6946_s0, %s5401_s5  ;;  %p5405_p13 = scmp.lt.u32.totalorder %s5401_s5, %s6946_s0 }
 0x1c5   :  { %p5407_p0 = pnand %p5405_p13, %p5402_p12 }
 0x1c7   :  { %5410 = shalt.err (!%p5407_p0)
}
 0x1c8   :  { %s5411_s4 = scalar_lea.vmem %s183_s13, 16  ;;  %s5415_s2 = scalar_lea.vmem %s183_s13, 32 }
 0x1c9   :  { %p5412_p1 = scmp.ne.s32.totalorder %s183_s13, %s5411_s4  ;;  %p5416_p2 = scmp.lt.s32.totalorder %s183_s13, %s183_s13 }
 0x1ca   :  { %p5417_p3 = scmp.lt.s32.totalorder %s5415_s2, %s5411_s4 }
 0x1cc   :  { %p5418_p4 = por %p5417_p3, %p5416_p2 }
 0x1ce   :  { %p5419_p5 = pnand %p5418_p4, %p5412_p1 }
 0x1d0   :  { %5422 = shalt.err (!%p5419_p5)
}
 0x1d1   :  { %s6947_s10 = sld [smem:[#allocation86_spill]]  ;;  %s5908_s7 = smov [#allocation14]  }
 0x1d2   :  { %185 = dma.hbm_to_vmem [thread:$0]  %s6946_s0, 16, %s183_s13, [#allocation10]  }
 0x1d3   :  { %s204_s12 = sshll.u32 %s5908_s7, 4  ;;  %s5909_s15 = smov [#allocation17]   ;;  %s205_s12 = int_to_ptr.vmem [resolvable:$true] %s204_s12 }
 0x1d4   :  { %s224_s26 = sshll.u32 %s5909_s15, 4  ;;  %s225_s26 = int_to_ptr.vmem [resolvable:$true] %s224_s26 }
 0x1d7   :  { %s5423_s14 = scalar_lea.hbm %s6947_s10, 16 }
 0x1d8   :  { %p5424_p6 = scmp.ne.s32.totalorder %s6947_s10, %s5423_s14  ;;  %p5427_p7 = scmp.lt.u32.totalorder %s5423_s14, %s6947_s10 }
 0x1da   :  { %p5429_p8 = pnand %p5427_p7, %p5424_p6 }
 0x1dc   :  { %5432 = shalt.err (!%p5429_p8)
}
 0x1dd   :  { %s5433_s18 = scalar_lea.vmem %s205_s12, 16  ;;  %s5437_s16 = scalar_lea.vmem %s205_s12, 32 }
 0x1de   :  { %p5434_p9 = scmp.ne.s32.totalorder %s205_s12, %s5433_s18  ;;  %p5438_p10 = scmp.lt.s32.totalorder %s205_s12, %s205_s12 }
 0x1df   :  { %p5439_p11 = scmp.lt.s32.totalorder %s5437_s16, %s5433_s18 }
 0x1e1   :  { %p5440_p12 = por %p5439_p11, %p5438_p10 }
 0x1e3   :  { %p5441_p13 = pnand %p5440_p12, %p5434_p9 }
 0x1e5   :  { %5444 = shalt.err (!%p5441_p13)
}
 0x1e6   :  { %s6948_s11 = sld [smem:[#allocation87_spill]] }
 0x1e7   :  { %207 = dma.hbm_to_vmem [thread:$0]  %s6947_s10, 16, %s205_s12, [#allocation13]  }
 0x1ec   :  { %s5445_s20 = scalar_lea.hbm %s6948_s11, 16 }
 0x1ed   :  { %p5446_p0 = scmp.ne.s32.totalorder %s6948_s11, %s5445_s20  ;;  %p5449_p1 = scmp.lt.u32.totalorder %s5445_s20, %s6948_s11 }
 0x1ef   :  { %p5451_p2 = pnand %p5449_p1, %p5446_p0 }
 0x1f1   :  { %5454 = shalt.err (!%p5451_p2)
}
 0x1f2   :  { %s5455_s22 = scalar_lea.vmem %s225_s26, 16  ;;  %s5459_s1 = scalar_lea.vmem %s225_s26, 32 }
 0x1f3   :  { %p5456_p3 = scmp.ne.s32.totalorder %s225_s26, %s5455_s22  ;;  %p5460_p4 = scmp.lt.s32.totalorder %s225_s26, %s225_s26 }
 0x1f4   :  { %p5461_p5 = scmp.lt.s32.totalorder %s5459_s1, %s5455_s22 }
 0x1f6   :  { %p5462_p6 = por %p5461_p5, %p5460_p4 }
 0x1f8   :  { %p5463_p7 = pnand %p5462_p6, %p5456_p3 }
 0x1fa   :  { %5466 = shalt.err (!%p5463_p7)
}
 0x1fb   :  { %s6949_s23 = sld [smem:[#allocation88_spill]]  ;;  %s5910_s27 = smov [#allocation20]  }
 0x1fc   :  { %227 = dma.hbm_to_vmem [thread:$0]  %s6948_s11, 16, %s225_s26, [#allocation16]  }
 0x1fd   :  { %s243_s30 = sshll.u32 %s5910_s27, 4  ;;  %s5911_s25 = smov [#allocation23]   ;;  %s244_s30 = int_to_ptr.vmem [resolvable:$true] %s243_s30 }
 0x1fe   :  { %s265_s24 = sshll.u32 %s5911_s25, 4  ;;  %s6309_s24 = int_to_ptr.vmem [resolvable:$true] %s265_s24 }
 0x201   :  { %s5467_s13 = scalar_lea.hbm %s6949_s23, 256 }
 0x202   :  { %p5468_p8 = scmp.ne.s32.totalorder %s6949_s23, %s5467_s13  ;;  %p5471_p9 = scmp.lt.u32.totalorder %s5467_s13, %s6949_s23 }
 0x204   :  { %p5473_p10 = pnand %p5471_p9, %p5468_p8 }
 0x206   :  { %5476 = shalt.err (!%p5473_p10)
}
 0x207   :  { %s5477_s28 = scalar_lea.vmem %s244_s30, 256  ;;  %p5482_p12 = scmp.lt.s32.totalorder %s244_s30, %s244_s30 }
 0x208   :  { %p5478_p11 = scmp.ne.s32.totalorder %s244_s30, %s5477_s28  ;;  %p5483_p13 = scmp.lt.s32.totalorder %s5477_s28, %s5477_s28 }
 0x20a   :  { %p5484_p0 = por %p5483_p13, %p5482_p12 }
 0x20c   :  { %p5485_p1 = pnand %p5484_p0, %p5478_p11 }
 0x20e   :  { %5488 = shalt.err (!%p5485_p1)
}
 0x20f   :  { %s6950_s8 = sld [smem:[#allocation89_spill]] }
 0x210   :  { %249 = dma.hbm_to_vmem [thread:$0]  %s6949_s23, 256, %s244_s30, [#allocation19], %s5890_s3, %s5890_s3, %s5891_s6  }
 0x215   :  { %s5489_s17 = scalar_lea.hbm %s6950_s8, 512 }
 0x216   :  { %p5490_p2 = scmp.ne.s32.totalorder %s6950_s8, %s5489_s17  ;;  %p5493_p3 = scmp.lt.u32.totalorder %s5489_s17, %s6950_s8 }
 0x218   :  { %p5495_p4 = pnand %p5493_p3, %p5490_p2 }
 0x21a   :  { %5498 = shalt.err (!%p5495_p4)
}
 0x21b   :  { %s5499_s0 = scalar_lea.vmem %s6309_s24, 512  ;;  %p5504_p6 = scmp.lt.s32.totalorder %s6309_s24, %s6309_s24 }
 0x21c   :  { %p5500_p5 = scmp.ne.s32.totalorder %s6309_s24, %s5499_s0  ;;  %p5505_p7 = scmp.lt.s32.totalorder %s5499_s0, %s5499_s0 }
 0x21e   :  { %p5506_p8 = por %p5505_p7, %p5504_p6 }
 0x220   :  { %p5507_p9 = pnand %p5506_p8, %p5500_p5 }
 0x222   :  { %5510 = shalt.err (!%p5507_p9)
}
 0x223   :  { %s6951_s5 = sld [smem:[#allocation90_spill]]  ;;  %s5912_s4 = smov [#allocation26]  }
 0x224   :  { %271 = dma.hbm_to_vmem [thread:$0]  %s6950_s8, 512, %s6309_s24, [#allocation22], %s5890_s3, %s5890_s3, %s5891_s6  }
 0x225   :  { %s288_s2 = sshll.u32 %s5912_s4, 4  ;;  %s5913_s10 = smov [#allocation29]   ;;  %s289_s2 = int_to_ptr.vmem [resolvable:$true] %s288_s2 }
 0x226   :  { %s308_s7 = sshll.u32 %s5913_s10, 4  ;;  %s309_s7 = int_to_ptr.vmem [resolvable:$true] %s308_s7 }
 0x229   :  { %s5511_s12 = scalar_lea.hbm %s6951_s5, 16 }
 0x22a   :  { %p5512_p10 = scmp.ne.s32.totalorder %s6951_s5, %s5511_s12  ;;  %p5515_p11 = scmp.lt.u32.totalorder %s5511_s12, %s6951_s5 }
 0x22c   :  { %p5517_p12 = pnand %p5515_p11, %p5512_p10 }
 0x22e   :  { %5520 = shalt.err (!%p5517_p12)
}
 0x22f   :  { %s5521_s15 = scalar_lea.vmem %s289_s2, 16  ;;  %s5525_s26 = scalar_lea.vmem %s289_s2, 32 }
 0x230   :  { %p5522_p13 = scmp.ne.s32.totalorder %s289_s2, %s5521_s15  ;;  %p5526_p0 = scmp.lt.s32.totalorder %s289_s2, %s289_s2 }
 0x231   :  { %p5527_p1 = scmp.lt.s32.totalorder %s5525_s26, %s5521_s15 }
 0x233   :  { %p5528_p2 = por %p5527_p1, %p5526_p0 }
 0x235   :  { %p5529_p3 = pnand %p5528_p2, %p5522_p13 }
 0x237   :  { %5532 = shalt.err (!%p5529_p3)
}
 0x238   :  { %s6952_s14 = sld [smem:[#allocation91_spill]] }
 0x239   :  { %291 = dma.hbm_to_vmem [thread:$0]  %s6951_s5, 16, %s289_s2, [#allocation25]  }
 0x23e   :  { %s5533_s18 = scalar_lea.hbm %s6952_s14, 16 }
 0x23f   :  { %p5534_p4 = scmp.ne.s32.totalorder %s6952_s14, %s5533_s18  ;;  %p5537_p5 = scmp.lt.u32.totalorder %s5533_s18, %s6952_s14 }
 0x241   :  { %p5539_p6 = pnand %p5537_p5, %p5534_p4 }
 0x243   :  { %5542 = shalt.err (!%p5539_p6)
}
 0x244   :  { %s5543_s16 = scalar_lea.vmem %s309_s7, 16  ;;  %s5547_s11 = scalar_lea.vmem %s309_s7, 32 }
 0x245   :  { %p5544_p7 = scmp.ne.s32.totalorder %s309_s7, %s5543_s16  ;;  %p5548_p8 = scmp.lt.s32.totalorder %s309_s7, %s309_s7 }
 0x246   :  { %p5549_p9 = scmp.lt.s32.totalorder %s5547_s11, %s5543_s16 }
 0x248   :  { %p5550_p10 = por %p5549_p9, %p5548_p8 }
 0x24a   :  { %p5551_p11 = pnand %p5550_p10, %p5544_p7 }
 0x24c   :  { %5554 = shalt.err (!%p5551_p11)
}
 0x24d   :  { %s6953_s20 = sld [smem:[#allocation92_spill]]  ;;  %s5914_s22 = smov [#allocation32]  }
 0x24e   :  { %311 = dma.hbm_to_vmem [thread:$0]  %s6952_s14, 16, %s309_s7, [#allocation28]  }
 0x24f   :  { %s330_s1 = sshll.u32 %s5914_s22, 4  ;;  %s5915_s23 = smov [#allocation35]   ;;  %s331_s1 = int_to_ptr.vmem [resolvable:$true] %s330_s1 }
 0x250   :  { %s350_s27 = sshll.u32 %s5915_s23, 4  ;;  %s351_s27 = int_to_ptr.vmem [resolvable:$true] %s350_s27 }
 0x253   :  { %s5555_s30 = scalar_lea.hbm %s6953_s20, 16 }
 0x254   :  { %p5556_p12 = scmp.ne.s32.totalorder %s6953_s20, %s5555_s30  ;;  %p5559_p13 = scmp.lt.u32.totalorder %s5555_s30, %s6953_s20 }
 0x256   :  { %p5561_p0 = pnand %p5559_p13, %p5556_p12 }
 0x258   :  { %5564 = shalt.err (!%p5561_p0)
}
 0x259   :  { %s5565_s25 = scalar_lea.vmem %s331_s1, 16  ;;  %s5569_s24 = scalar_lea.vmem %s331_s1, 32 }
 0x25a   :  { %p5566_p1 = scmp.ne.s32.totalorder %s331_s1, %s5565_s25  ;;  %p5570_p2 = scmp.lt.s32.totalorder %s331_s1, %s331_s1 }
 0x25b   :  { %p5571_p3 = scmp.lt.s32.totalorder %s5569_s24, %s5565_s25 }
 0x25d   :  { %p5572_p4 = por %p5571_p3, %p5570_p2 }
 0x25f   :  { %p5573_p5 = pnand %p5572_p4, %p5566_p1 }
 0x261   :  { %5576 = shalt.err (!%p5573_p5)
}
 0x262   :  { %s6954_s13 = sld [smem:[#allocation93_spill]] }
 0x263   :  { %333 = dma.hbm_to_vmem [thread:$0]  %s6953_s20, 16, %s331_s1, [#allocation31]  }
 0x268   :  { %s5577_s28 = scalar_lea.hbm %s6954_s13, 16 }
 0x269   :  { %p5578_p6 = scmp.ne.s32.totalorder %s6954_s13, %s5577_s28  ;;  %p5581_p7 = scmp.lt.u32.totalorder %s5577_s28, %s6954_s13 }
 0x26b   :  { %p5583_p8 = pnand %p5581_p7, %p5578_p6 }
 0x26d   :  { %5586 = shalt.err (!%p5583_p8)
}
 0x26e   :  { %s5587_s8 = scalar_lea.vmem %s351_s27, 16  ;;  %s5591_s17 = scalar_lea.vmem %s351_s27, 32 }
 0x26f   :  { %p5588_p9 = scmp.ne.s32.totalorder %s351_s27, %s5587_s8  ;;  %p5592_p10 = scmp.lt.s32.totalorder %s351_s27, %s351_s27 }
 0x270   :  { %p5593_p11 = scmp.lt.s32.totalorder %s5591_s17, %s5587_s8 }
 0x272   :  { %p5594_p12 = por %p5593_p11, %p5592_p10 }
 0x274   :  { %p5595_p13 = pnand %p5594_p12, %p5588_p9 }
 0x276   :  { %5598 = shalt.err (!%p5595_p13)
}
 0x277   :  { %s6955_s0 = sld [smem:[#allocation94_spill]]  ;;  %s5916_s5 = smov [#allocation38]  }
 0x278   :  { %353 = dma.hbm_to_vmem [thread:$0]  %s6954_s13, 16, %s351_s27, [#allocation34]  }
 0x279   :  { %s369_s4 = sshll.u32 %s5916_s5, 4  ;;  %s5917_s2 = smov [#allocation41]   ;;  %s370_s4 = int_to_ptr.vmem [resolvable:$true] %s369_s4 }
 0x27a   :  { %s394_s10 = sshll.u32 %s5917_s2, 4  ;;  %s395_s10 = int_to_ptr.vmem [resolvable:$true] %s394_s10 }
 0x27d   :  { %s5599_s7 = scalar_lea.hbm %s6955_s0, 512 }
 0x27e   :  { %p5600_p0 = scmp.ne.s32.totalorder %s6955_s0, %s5599_s7  ;;  %p5603_p1 = scmp.lt.u32.totalorder %s5599_s7, %s6955_s0 }
 0x280   :  { %p5605_p2 = pnand %p5603_p1, %p5600_p0 }
 0x282   :  { %5608 = shalt.err (!%p5605_p2)
}
 0x283   :  { %s5609_s12 = scalar_lea.vmem %s370_s4, 512  ;;  %p5614_p4 = scmp.lt.s32.totalorder %s370_s4, %s370_s4 }
 0x284   :  { %p5610_p3 = scmp.ne.s32.totalorder %s370_s4, %s5609_s12  ;;  %p5615_p5 = scmp.lt.s32.totalorder %s5609_s12, %s5609_s12 }
 0x286   :  { %p5616_p6 = por %p5615_p5, %p5614_p4 }
 0x288   :  { %p5617_p7 = pnand %p5616_p6, %p5610_p3 }
 0x28a   :  { %5620 = shalt.err (!%p5617_p7)
}
 0x28b   :  { %s6956_s15 = sld [smem:[#allocation96_spill]] }
 0x28c   :  { %375 = dma.hbm_to_vmem [thread:$0]  %s6955_s0, 512, %s370_s4, [#allocation37], %s5890_s3, %s5890_s3, %s5891_s6  }
 0x291   :  { %s5621_s26 = scalar_lea.hbm %s6956_s15, 16 }
 0x292   :  { %p5622_p8 = scmp.ne.s32.totalorder %s6956_s15, %s5621_s26  ;;  %p5625_p9 = scmp.lt.u32.totalorder %s5621_s26, %s6956_s15 }
 0x294   :  { %p5627_p10 = pnand %p5625_p9, %p5622_p8 }
 0x296   :  { %5630 = shalt.err (!%p5627_p10)
}
 0x297   :  { %s5631_s14 = scalar_lea.vmem %s395_s10, 16  ;;  %s5635_s18 = scalar_lea.vmem %s395_s10, 32 }
 0x298   :  { %p5632_p11 = scmp.ne.s32.totalorder %s395_s10, %s5631_s14  ;;  %p5636_p12 = scmp.lt.s32.totalorder %s395_s10, %s395_s10 }
 0x299   :  { %p5637_p13 = scmp.lt.s32.totalorder %s5635_s18, %s5631_s14 }
 0x29b   :  { %p5638_p0 = por %p5637_p13, %p5636_p12 }
 0x29d   :  { %p5639_p1 = pnand %p5638_p0, %p5632_p11 }
 0x29f   :  { %5642 = shalt.err (!%p5639_p1)
}
 0x2a0   :  { %s6957_s16 = sld [smem:[#allocation98_spill]]  ;;  %s5918_s11 = smov [#allocation44]  }
 0x2a1   :  { %397 = dma.hbm_to_vmem [thread:$0]  %s6956_s15, 16, %s395_s10, [#allocation40]  }
 0x2a2   :  { %s416_s3 = sshll.u32 %s5918_s11, 4  ;;  %s5919_s6 = smov [#allocation47]   ;;  %s417_s3 = int_to_ptr.vmem [resolvable:$true] %s416_s3 }
 0x2a3   :  { %s438_s20 = sshll.u32 %s5919_s6, 4  ;;  %s439_s20 = int_to_ptr.vmem [resolvable:$true] %s438_s20 }
 0x2a6   :  { %s5643_s22 = scalar_lea.hbm %s6957_s16, 16 }
 0x2a7   :  { %p5644_p2 = scmp.ne.s32.totalorder %s6957_s16, %s5643_s22  ;;  %p5647_p3 = scmp.lt.u32.totalorder %s5643_s22, %s6957_s16 }
 0x2a9   :  { %p5649_p4 = pnand %p5647_p3, %p5644_p2 }
 0x2ab   :  { %5652 = shalt.err (!%p5649_p4)
}
 0x2ac   :  { %s5653_s1 = scalar_lea.vmem %s417_s3, 16  ;;  %s5657_s23 = scalar_lea.vmem %s417_s3, 32 }
 0x2ad   :  { %p5654_p5 = scmp.ne.s32.totalorder %s417_s3, %s5653_s1  ;;  %p5658_p6 = scmp.lt.s32.totalorder %s417_s3, %s417_s3 }
 0x2ae   :  { %p5659_p7 = scmp.lt.s32.totalorder %s5657_s23, %s5653_s1 }
 0x2b0   :  { %p5660_p8 = por %p5659_p7, %p5658_p6 }
 0x2b2   :  { %p5661_p9 = pnand %p5660_p8, %p5654_p5 }
 0x2b4   :  { %5664 = shalt.err (!%p5661_p9)
}
 0x2b5   :  { %s6958_s27 = sld [smem:[#allocation100_spill]] }
 0x2b6   :  { %419 = dma.hbm_to_vmem [thread:$0]  %s6957_s16, 16, %s417_s3, [#allocation43]  }
 0x2bb   :  { %s5665_s30 = scalar_lea.hbm %s6958_s27, 16 }
 0x2bc   :  { %p5666_p10 = scmp.ne.s32.totalorder %s6958_s27, %s5665_s30  ;;  %p5669_p11 = scmp.lt.u32.totalorder %s5665_s30, %s6958_s27 }
 0x2be   :  { %p5671_p12 = pnand %p5669_p11, %p5666_p10 }
 0x2c0   :  { %5674 = shalt.err (!%p5671_p12)
}
 0x2c1   :  { %s5675_s25 = scalar_lea.vmem %s439_s20, 16  ;;  %s5679_s24 = scalar_lea.vmem %s439_s20, 32 }
 0x2c2   :  { %p5676_p13 = scmp.ne.s32.totalorder %s439_s20, %s5675_s25  ;;  %p5680_p0 = scmp.lt.s32.totalorder %s439_s20, %s439_s20 }
 0x2c3   :  { %p5681_p1 = scmp.lt.s32.totalorder %s5679_s24, %s5675_s25 }
 0x2c5   :  { %p5682_p2 = por %p5681_p1, %p5680_p0 }
 0x2c7   :  { %p5683_p3 = pnand %p5682_p2, %p5676_p13 }
 0x2c9   :  { %5686 = shalt.err (!%p5683_p3)
}
 0x2ca   :  { %s6959_s13 = sld [smem:[#allocation102_spill]]  ;;  %s5920_s28 = smov [#allocation50]  }
 0x2cb   :  { %441 = dma.hbm_to_vmem [thread:$0]  %s6958_s27, 16, %s439_s20, [#allocation46]  }
 0x2cc   :  { %s458_s8 = sshll.u32 %s5920_s28, 4  ;;  %s5921_s17 = smov [#allocation53]   ;;  %s459_s8 = int_to_ptr.vmem [resolvable:$true] %s458_s8 }
 0x2cd   :  { %s480_s0 = sshll.u32 %s5921_s17, 4  ;;  %s481_s0 = int_to_ptr.vmem [resolvable:$true] %s480_s0 }
 0x2d0   :  { %s5687_s5 = scalar_lea.hbm %s6959_s13, 16 }
 0x2d1   :  { %p5688_p4 = scmp.ne.s32.totalorder %s6959_s13, %s5687_s5  ;;  %p5691_p5 = scmp.lt.u32.totalorder %s5687_s5, %s6959_s13 }
 0x2d3   :  { %p5693_p6 = pnand %p5691_p5, %p5688_p4 }
 0x2d5   :  { %5696 = shalt.err (!%p5693_p6)
}
 0x2d6   :  { %s5697_s4 = scalar_lea.vmem %s459_s8, 16  ;;  %s5701_s2 = scalar_lea.vmem %s459_s8, 32 }
 0x2d7   :  { %p5698_p7 = scmp.ne.s32.totalorder %s459_s8, %s5697_s4  ;;  %p5702_p8 = scmp.lt.s32.totalorder %s459_s8, %s459_s8 }
 0x2d8   :  { %p5703_p9 = scmp.lt.s32.totalorder %s5701_s2, %s5697_s4 }
 0x2da   :  { %p5704_p10 = por %p5703_p9, %p5702_p8 }
 0x2dc   :  { %p5705_p11 = pnand %p5704_p10, %p5698_p7 }
 0x2de   :  { %5708 = shalt.err (!%p5705_p11)
}
 0x2df   :  { %s6960_s10 = sld [smem:[#allocation104_spill]] }
 0x2e0   :  { %461 = dma.hbm_to_vmem [thread:$0]  %s6959_s13, 16, %s459_s8, [#allocation49]  }
 0x2e5   :  { %s5709_s7 = scalar_lea.hbm %s6960_s10, 16 }
 0x2e6   :  { %p5710_p12 = scmp.ne.s32.totalorder %s6960_s10, %s5709_s7  ;;  %p5713_p13 = scmp.lt.u32.totalorder %s5709_s7, %s6960_s10 }
 0x2e8   :  { %p5715_p0 = pnand %p5713_p13, %p5710_p12 }
 0x2ea   :  { %5718 = shalt.err (!%p5715_p0)
}
 0x2eb   :  { %s5719_s12 = scalar_lea.vmem %s481_s0, 16  ;;  %s5723_s15 = scalar_lea.vmem %s481_s0, 32 }
 0x2ec   :  { %p5720_p1 = scmp.ne.s32.totalorder %s481_s0, %s5719_s12  ;;  %p5724_p2 = scmp.lt.s32.totalorder %s481_s0, %s481_s0 }
 0x2ed   :  { %p5725_p3 = scmp.lt.s32.totalorder %s5723_s15, %s5719_s12 }
 0x2ef   :  { %p5726_p4 = por %p5725_p3, %p5724_p2 }
 0x2f1   :  { %p5727_p5 = pnand %p5726_p4, %p5720_p1 }
 0x2f3   :  { %5730 = shalt.err (!%p5727_p5)
}
 0x2f4   :  { %s6961_s26 = sld [smem:[#allocation107_spill]]  ;;  %s5922_s14 = smov [#allocation56]  }
 0x2f5   :  { %483 = dma.hbm_to_vmem [thread:$0]  %s6960_s10, 16, %s481_s0, [#allocation52]  }
 0x2f6   :  { %s502_s18 = sshll.u32 %s5922_s14, 4  ;;  %s5923_s16 = smov [#allocation57]   ;;  %s503_s18 = int_to_ptr.vmem [resolvable:$true] %s502_s18 }
 0x2f7   :  { %s522_s11 = sshll.u32 %s5923_s16, 4  ;;  %s523_s11 = int_to_ptr.vmem [resolvable:$true] %s522_s11 }
 0x2fa   :  { %s5731_s3 = scalar_lea.hbm %s6961_s26, 32 }
 0x2fb   :  { %p5732_p6 = scmp.ne.s32.totalorder %s6961_s26, %s5731_s3  ;;  %p5735_p7 = scmp.lt.u32.totalorder %s5731_s3, %s6961_s26 }
 0x2fd   :  { %p5737_p8 = pnand %p5735_p7, %p5732_p6 }
 0x2ff   :  { %5740 = shalt.err (!%p5737_p8)
}
 0x300   :  { %s5741_s6 = scalar_lea.vmem %s503_s18, 32  ;;  %p5746_p10 = scmp.lt.s32.totalorder %s503_s18, %s503_s18 }
 0x301   :  { %p5742_p9 = scmp.ne.s32.totalorder %s503_s18, %s5741_s6  ;;  %p5747_p11 = scmp.lt.s32.totalorder %s5741_s6, %s5741_s6 }
 0x303   :  { %p5748_p12 = por %p5747_p11, %p5746_p10 }
 0x305   :  { %p5749_p13 = pnand %p5748_p12, %p5742_p9 }
 0x307   :  { %5752 = shalt.err (!%p5749_p13)
}
 0x308   :  { %505 = dma.hbm_to_vmem [thread:$0]  %s6961_s26, 32, %s503_s18, [#allocation55]  }
 0x309   :  { %s5753_s20 = scalar_lea.hbm %s6180_s9, 16 }
 0x30a   :  { %p5754_p0 = scmp.ne.s32.totalorder %s6180_s9, %s5753_s20  ;;  %p5757_p1 = scmp.lt.u32.totalorder %s5753_s20, %s6180_s9 }
 0x30c   :  { %p5759_p2 = pnand %p5757_p1, %p5754_p0 }
 0x30e   :  { %5762 = shalt.err (!%p5759_p2)
}
 0x30f   :  { %s5763_s22 = scalar_lea.vmem %s523_s11, 16  ;;  %s5767_s1 = scalar_lea.vmem %s523_s11, 32 }
 0x310   :  { %p5764_p3 = scmp.ne.s32.totalorder %s523_s11, %s5763_s22  ;;  %p5768_p4 = scmp.lt.s32.totalorder %s523_s11, %s523_s11 }
 0x311   :  { %p5769_p5 = scmp.lt.s32.totalorder %s5767_s1, %s5763_s22 }
 0x313   :  { %p5770_p6 = por %p5769_p5, %p5768_p4 }
 0x315   :  { %p5771_p7 = pnand %p5770_p6, %p5764_p3 }
 0x317   :  { %5774 = shalt.err (!%p5771_p7)
}
 0x318   :  { %525 = dma.hbm_to_vmem [thread:$0]  %s6180_s9, 16, %s523_s11, [#allocation58]  }
 0x319   :  { %5797 = dma.done.wait [#allocation4], 256  }
 0x31a   :  { %5798 = vsyncadd [#allocation4], 4294967040 }
 0x31b   :  { %5799 = dma.done.wait [#allocation7], 32  }
 0x31c   :  { %5800 = vsyncadd [#allocation7], 4294967264 }
 0x31d   :  { %5801 = dma.done.wait [#allocation10], 32  }
 0x31e   :  { %5802 = vsyncadd [#allocation10], 4294967264 }
 0x31f   :  { %5803 = dma.done.wait [#allocation13], 528  }
 0x320   :  { %5804 = vsyncadd [#allocation13], 4294966768 }
 0x321   :  { %5805 = dma.done.wait [#allocation16], 32  }
 0x322   :  { %5806 = vsyncadd [#allocation16], 4294967264 }
 0x323   :  { %5807 = dma.done.wait [#allocation19], 272  }
 0x324   :  { %5808 = vsyncadd [#allocation19], 4294967024 }
 0x325   :  { %5809 = dma.done.wait [#allocation22], 528  }
 0x326   :  { %5810 = vsyncadd [#allocation22], 4294966768 }
 0x327   :  { %5811 = dma.done.wait [#allocation25], 32  }
 0x328   :  { %5812 = vsyncadd [#allocation25], 4294967264 }
 0x329   :  { %5813 = dma.done.wait [#allocation28], 32  }
 0x32a   :  { %5814 = vsyncadd [#allocation28], 4294967264 }
 0x32b   :  { %5815 = dma.done.wait [#allocation31], 1040  }
 0x32c   :  { %5816 = vsyncadd [#allocation31], 4294966256 }
 0x32d   :  { %5817 = dma.done.wait [#allocation34], 32  }
 0x32e   :  { %5818 = vsyncadd [#allocation34], 4294967264 }
 0x32f   :  { %5819 = dma.done.wait [#allocation37], 528  }
 0x330   :  { %5820 = vsyncadd [#allocation37], 4294966768 }
 0x331   :  { %5821 = dma.done.wait [#allocation40], 32  }
 0x332   :  { %5822 = vsyncadd [#allocation40], 4294967264 }
 0x333   :  { %5823 = dma.done.wait [#allocation43], 32  }
 0x334   :  { %5824 = vsyncadd [#allocation43], 4294967264 }
 0x335   :  { %5825 = dma.done.wait [#allocation46], 32  }
 0x336   :  { %5826 = vsyncadd [#allocation46], 4294967264 }
 0x337   :  { %5827 = dma.done.wait [#allocation49], 32  }
 0x338   :  { %5828 = vsyncadd [#allocation49], 4294967264 }
 0x339   :  { %5829 = dma.done.wait [#allocation52], 1040  }
 0x33a   :  { %5830 = vsyncadd [#allocation52], 4294966256 }
 0x33b   :  { %5831 = dma.done.wait [#allocation55], 64  }
 0x33c   :  { %5832 = vsyncadd [#allocation55], 4294967232 }
 0x33d   :  { %5833 = dma.done.wait [#allocation58], 16  }
 0x33e   :  { %5834 = vsyncadd [#allocation58], 4294967280  ;;  %s6962_s9 = sld [smem:[#allocation80_spill]]  ;;  %vm649_vm0 = vcmask 130048   ;;  %v646_v1 = vld [vmem:[#allocation3] sm:$0xff]  ;;  %v647_v2 = vld [vmem:[#allocation3 + $0x8] sm:$0xff]  ;;  %v811_v19 = vlaneseq }
 0x33f   :  { %v4508_v4 = vpack.c.bf16 %v647_v2, %v646_v1  ;;  %v5924_v8 = vmov 33   ;;  %s5925_s23 = smov 96   ;;  %s6963_s27 = sld [smem:[#allocation81_spill]]  ;;  %vm835_vm4 = vcmask 261120  }
 0x340   :  { %4865 = vset.pattern.permute.xlu0 %v5924_v8  ;;  %4866 = vset.pattern.permute.xlu1 %v5924_v8  ;;  %v6405_v21 = vshrl.u32 %v811_v19, 7  ;;  %s5927_s30 = smov 64   ;;  %s6964_s25 = sld [smem:[#allocation95_spill]] }
 0x341   :  { %4509 = vmatprep.subr.bf16.mxu1 %v4508_v4  ;;  %s6965_s24 = sld [smem:[#allocation99_spill]]  ;;  %s6966_s13 = sld [smem:[#allocation97_spill]] }
 0x342   :  { %4511 = vmatpush3.bf16.msra.mxu1 %v4508_v4  ;;  %v6408_v23 = vsub.s32 0, %v6405_v21  ;;  %s6967_s28 = sld [smem:[#allocation82_spill]]  ;;  %s6968_s8 = sld [smem:[#allocation105_spill]] }
 0x343   :  { %s6969_s17 = sld [smem:[#allocation108_spill]]  ;;  %s6970_s0 = sld [smem:[#allocation110_spill]] }
 0x344   :  { %v6382_v3 = vld [vmem:[%s6962_s9] sm:$0xff]  ;;  %v6387_v5 = vld [vmem:[%s6962_s9 + $0x8] sm:$0xff]  ;;  %v6390_v6 = vld [vmem:[%s6962_s9 + $0x10] sm:$0xff]  ;;  %s6971_s5 = sld [smem:[#allocation109_spill]]  ;;  %s5933_s4 = smov [#allocation59]  }
 0x345   :  { %4268 = vmatprep.mubr.msk.f32.mxu1 %vm649_vm0, %v6382_v3  ;;  %v6397_v7 = vld [vmem:[%s6962_s9 + $0x18] sm:$0xff]  ;;  %v6412_v27 = vld [vmem:[%s6963_s27] sm:$0xff]  ;;  %v6415_v29 = vld [vmem:[%s6963_s27 + $0x8] sm:$0xff]  ;;  %s3938_s2 = sshll.u32 %s5933_s4, 4  ;;  %s3939_s2 = int_to_ptr.vmem [resolvable:$true] %s3938_s2 }
 0x346   :  { %4269 = vmatmul.mubr.msk.f32.vlgmr.msra.gmra.mrb[0].mxu1 %vm649_vm0, %v6387_v5  ;;  %vm638_vm1 = vcmp.gt.f32.partialorder %v6412_v27, 0.0  ;;  %vm639_vm5 = vcmp.gt.f32.partialorder %v6415_v29, 0.0  ;;  %v6422_v40 = vld [vmem:[%s6963_s27 + $0x10] sm:$0xff]  ;;  %v6429_v45 = vld [vmem:[%s6963_s27 + $0x18] sm:$0xff]  ;;  %s5775_s10 = scalar_lea.vmem %s3939_s2, 32  ;;  %p5780_p9 = scmp.lt.s32.totalorder %s3939_s2, %s3939_s2 }
 0x347   :  { %4271 = vmatprep.mubr.msk.f32.mxu1 %vm649_vm0, %v6390_v6  ;;  %vm640_vm7 = vcmp.gt.f32.partialorder %v6422_v40, 0.0  ;;  %vm641_vm9 = vcmp.gt.f32.partialorder %v6429_v45, 0.0  ;;  %p5776_p8 = scmp.ne.s32.totalorder %s3939_s2, %s5775_s10  ;;  %p5781_p10 = scmp.lt.s32.totalorder %s5775_s10, %s5775_s10 }
 0x349   :  { %p5782_p11 = por %p5781_p10, %p5780_p9 }
 0x34a   :  { %4272 = vmatmul.mubr.msk.f32.gmra.mrb[2].mxu1 %vm649_vm0, %v6397_v7 }
 0x34b   :  { %p5783_p12 = pnand %p5782_p11, %p5776_p8 }
 0x419   :  { %v4270_v9 = vpop.f32.mrb[0].mxu1 }
 0x41a   :  { %v728_v10 = vpop.f32.mrb[1].mxu1 }
 0x41b   :  { %v4512_v11 = vpack.c.bf16 %v4270_v9, %v728_v10  ;;  %751 = vrot.lane.b32.xlu0 %v728_v10, %s5925_s23 }
 0x41d   :  { %v4273_v12 = vpop.f32.mrb[2].mxu1  ;;  %4513 = vmatprep.subr.bf16.mxu1 %v4512_v11 }
 0x41e   :  { %4515 = vmatpush3.bf16.msra.mxu1 %v4512_v11  ;;  %757 = vrot.lane.b32.xlu1 %v4273_v12, %s5925_s23  ;;  %v738_v13 = vpop.f32.mrb[3].mxu1 }
 0x41f   :  { %v4516_v14 = vpack.c.bf16 %v4273_v12, %v738_v13  ;;  %753 = vrot.lane.b32.xlu0 %v4270_v9, %s5925_s23 }
 0x421   :  { %4517 = vmatprep.subr.bf16.mxu1 %v4516_v14 }
 0x422   :  { %755 = vrot.lane.b32.xlu1 %v738_v13, %s5925_s23  ;;  %4519 = vmatpush3.bf16.msra.mxu1 %v4516_v14 }
 0x423   :  { %796 = vperm.xlu0 %4865, %v728_v10  }
 0x426   :  { %800 = vperm.xlu1 %4866, %v4270_v9  }
 0x427   :  { %808 = vperm.xlu0 %4865, %v4273_v12  }
 0x42a   :  { %804 = vperm.xlu1 %4866, %v738_v13  }
 0x48d   :  { %v752_v15 = vpop.permute.xlu0 %751 }
 0x48e   :  { %763 = vxpose.xlu1.b32.start [1/4] (short) (narrow) %v752_v15, 8 }
 0x490   :  { %v758_v16 = vpop.permute.xlu1 %757 }
 0x491   :  { %v754_v17 = vpop.permute.xlu0 %753 }
 0x492   :  { %764 = vxpose.xlu1.b32.cont [2/4] (short) (narrow) %v754_v17, 8 }
 0x494   :  { %v756_v18 = vpop.permute.xlu1 %755 }
 0x496   :  { %765 = vxpose.xlu1.b32.cont [3/4] (short) (narrow) %v756_v18, 8 }
 0x49a   :  { %766 = vxpose.xlu1.b32.end [4/4] (short) (narrow) %v758_v16, 8 }
 0x4a2   :  { %v797_v24 = vpop.permute.xlu0 %796 }
 0x4a5   :  { %v801_v20 = vpop.permute.xlu1 %800 }
 0x4a6   :  { %v809_v34 = vpop.permute.xlu0 %808 }
 0x4a9   :  { %v805_v22 = vpop.permute.xlu1 %804 }
 0x50e   :  { %v779_v25 = vpop.trf.xlu1 }
 0x50f   :  { %v814_v26 = vrot.slane %v779_v25, %v6408_v23 }
 0x511   :  { %v815_v28 = vadd.f32 %v814_v26, %v797_v24  ;;  %v816_v30 = vadd.f32 %v814_v26, %v801_v20  ;;  %v817_v31 = vadd.f32 %v814_v26, %v805_v22  ;;  %v818_v38 = vadd.f32 %v814_v26, %v809_v34  ;;  %v1060_v26 = vld [vmem:[#allocation12] sm:$0xff]  ;;  %v4018_v34 = vld [vmem:[#allocation6] ss:$0 sm:$0xff] }
 0x513   :  { %vm819_vm2 = vcmp.gt.f32.partialorder %v815_v28, 0.0  ;;  %v823_v32 = vmul.f32 0.2, %v815_v28  ;;  %vm820_vm3 = vcmp.gt.f32.partialorder %v816_v30, 0.0  ;;  %v824_v33 = vmul.f32 0.2, %v816_v30 }
 0x514   :  { %v825_v37 = vmul.f32 0.2, %v817_v31  ;;  %vm821_vm6 = vcmp.gt.f32.partialorder %v817_v31, 0.0  ;;  %v826_v44 = vmul.f32 0.2, %v818_v38  ;;  %vm822_vm8 = vcmp.gt.f32.partialorder %v818_v38, 0.0 }
 0x515   :  { %v827_v35 = vsel %vm819_vm2, %v815_v28, %v823_v32  ;;  %v828_v36 = vsel %vm820_vm3, %v816_v30, %v824_v33  ;;  %v1061_v28 = vld [vmem:[#allocation12 + $0x8] sm:$0xff]  ;;  %v1063_v32 = vld [vmem:[#allocation12 + $0x18] sm:$0xff]  ;;  %vm1911_vm3 = vcmask 523264  }
 0x516   :  { %v831_v39 = vsel %vm638_vm1, %v827_v35, -1e+30  ;;  %v832_v42 = vsel %vm639_vm5, %v828_v36, -1e+30  ;;  %v829_v43 = vsel %vm821_vm6, %v817_v31, %v825_v37  ;;  %v830_v48 = vsel %vm822_vm8, %v818_v38, %v826_v44  ;;  %v1062_v31 = vld [vmem:[#allocation12 + $0x10] sm:$0xff] }
 0x517   :  { %v836_v41 = vsel %vm835_vm4, %v831_v39, -inf  ;;  %v839_v46 = vsel %vm835_vm4, %v832_v42, -inf  ;;  %v833_v47 = vsel %vm640_vm7, %v829_v43, -1e+30  ;;  %v834_v50 = vsel %vm641_vm9, %v830_v48, -1e+30 }
 0x518   :  { %837 = vmax.xlane.f32.xlu0 %v836_v41  ;;  %v842_v49 = vsel %vm835_vm4, %v833_v47, -inf  ;;  %v845_v51 = vsel %vm835_vm4, %v834_v50, -inf  ;;  %v4520_v30 = vpack.c.bf16 %v1061_v28, %v1060_v26  ;;  %v4524_v33 = vpack.c.bf16 %v1063_v32, %v1062_v31  ;;  %v4023_v28 = vld [vmem:[#allocation9] ss:$0 sm:$0xff] }
 0x51a   :  { %4521 = vmatprep.subr.bf16.mxu0 %v4520_v30 }
 0x51b   :  { %4523 = vmatpush3.bf16.msra.mxu0 %v4520_v30 }
 0x51c   :  { %840 = vmax.xlane.f32.xlu0 %v839_v46  ;;  %4525 = vmatprep.subr.bf16.mxu0 %v4524_v33 }
 0x51f   :  { %4527 = vmatpush3.bf16.msra.mxu0 %v4524_v33 }
 0x520   :  { %843 = vmax.xlane.f32.xlu0 %v842_v49 }
 0x524   :  { %846 = vmax.xlane.f32.xlu0 %v845_v51 }
 0x5a5   :  { %v838_v52 = vpop.xlane.xlu0 %837 }
 0x5a6   :  { %v848_v53 = vsub.f32 %v831_v39, %v838_v52 }
 0x5a8   :  { %v852_v54 = vmul.f32 1.442695, %v848_v53 }
 0x5a9   :  { %v841_v55 = vpop.xlane.xlu0 %840 }
 0x5aa   :  { %4875 = vpow2.f32 %v852_v54  ;;  %v849_v56 = vsub.f32 %v832_v42, %v841_v55 }
 0x5ac   :  { %v854_v57 = vmul.f32 1.442695, %v849_v56 }
 0x5ad   :  { %v844_v58 = vpop.xlane.xlu0 %843 }
 0x5ae   :  { %4877 = vpow2.f32 %v854_v57  ;;  %v850_v59 = vsub.f32 %v833_v47, %v844_v58  ;;  %v983_v58 = vld [vmem:[#allocation8] sm:$0x1] }
 0x5b0   :  { %v856_v60 = vmul.f32 1.442695, %v850_v59 }
 0x5b1   :  { %v847_v61 = vpop.xlane.xlu0 %846 }
 0x5b2   :  { %4879 = vpow2.f32 %v856_v60  ;;  %v851_v62 = vsub.f32 %v834_v50, %v847_v61 }
 0x5b4   :  { %v4876_v63 = vpop.eup %4875  ;;  %v858_v0 = vmul.f32 1.442695, %v851_v62 }
 0x5b5   :  { %v860_v1 = vsel %vm835_vm4, %v4876_v63, 0.0 }
 0x5b6   :  { %4881 = vpow2.f32 %v858_v0  ;;  %861 = vadd.xlane.f32.xlu0 %v860_v1 }
 0x5b8   :  { %v4878_v2 = vpop.eup %4877 }
 0x5b9   :  { %v863_v4 = vsel %vm835_vm4, %v4878_v2, 0.0 }
 0x5ba   :  { %864 = vadd.xlane.f32.xlu0 %v863_v4 }
 0x5bc   :  { %v4880_v8 = vpop.eup %4879 }
 0x5bd   :  { %v866_v9 = vsel %vm835_vm4, %v4880_v8, 0.0 }
 0x5be   :  { %867 = vadd.xlane.f32.xlu1 %v866_v9 }
 0x5c0   :  { %v4882_v10 = vpop.eup %4881 }
 0x5c1   :  { %v869_v11 = vsel %vm835_vm4, %v4882_v10, 0.0 }
 0x5c2   :  { %870 = vadd.xlane.f32.xlu0 %v869_v11 }
 0x643   :  { %v862_v12 = vpop.xlane.xlu0 %861 }
 0x644   :  { %4883 = vrcp.f32 %v862_v12 }
 0x647   :  { %v865_v13 = vpop.xlane.xlu0 %864 }
 0x648   :  { %4885 = vrcp.f32 %v865_v13 }
 0x64b   :  { %v868_v14 = vpop.xlane.xlu1 %867 }
 0x64c   :  { %4887 = vrcp.f32 %v868_v14 }
 0x64e   :  { %v4884_v15 = vpop.eup %4883 }
 0x64f   :  { %v871_v16 = vpop.xlane.xlu0 %870  ;;  %v876_v17 = vmul.f32 %v4884_v15, %v4876_v63 }
 0x650   :  { %4889 = vrcp.f32 %v871_v16 }
 0x651   :  { %4282 = vmatprep.mubr.msk.f32.mxu1 %vm835_vm4, %v876_v17 }
 0x652   :  { %v4886_v18 = vpop.eup %4885 }
 0x653   :  { %v877_v19 = vmul.f32 %v4886_v18, %v4878_v2 }
 0x655   :  { %4283 = vmatmul.mubr.msk.f32.vlgmr.msra.gmra.mrb[4].mxu1 %vm835_vm4, %v877_v19 }
 0x656   :  { %v4888_v20 = vpop.eup %4887 }
 0x657   :  { %v878_v22 = vmul.f32 %v4888_v20, %v4880_v8 }
 0x659   :  { %4285 = vmatprep.mubr.msk.f32.mxu1 %vm835_vm4, %v878_v22 }
 0x65a   :  { %v4890_v24 = vpop.eup %4889 }
 0x65b   :  { %v879_v25 = vmul.f32 %v4890_v24, %v4882_v10 }
 0x65d   :  { %4286 = vmatmul.mubr.msk.f32.gmra.mrb[6].mxu1 %vm835_vm4, %v879_v25 }
 0x728   :  { %v4284_v35 = vpop.f32.mrb[4].mxu1 }
 0x729   :  { %v970_v36 = vadd.f32 %v4284_v35, %v4018_v34  ;;  %v964_v37 = vpop.f32.mrb[5].mxu1  ;;  %v4024_v35 = vld [vmem:[#allocation11] ss:$0 sm:$0xff] }
 0x72a   :  { %v965_v38 = vadd.f32 %v4018_v34, %v964_v37 }
 0x72b   :  { %v987_v39 = vsel %vm835_vm4, %v970_v36, 0.0 }
 0x72c   :  { %v986_v41 = vsel %vm835_vm4, %v965_v38, 0.0 }
 0x72d   :  { %v988_v42 = vadd.f32 %v987_v39, %v986_v41 }
 0x730   :  { %v4287_v43 = vpop.f32.mrb[6].mxu1 }
 0x731   :  { %v974_v44 = vpop.f32.mrb[7].mxu1  ;;  %v980_v46 = vadd.f32 %v4287_v43, %v4018_v34 }
 0x732   :  { %v975_v47 = vadd.f32 %v4018_v34, %v974_v44 }
 0x733   :  { %v991_v50 = vsel %vm835_vm4, %v980_v46, 0.0 }
 0x734   :  { %v989_v48 = vsel %vm835_vm4, %v975_v47, 0.0 }
 0x735   :  { %v990_v49 = vadd.f32 %v989_v48, %v988_v42 }
 0x737   :  { %v992_v51 = vadd.f32 %v991_v50, %v990_v49 }
 0x739   :  { %v993_v52 = vrot.slane %v992_v51, 4 }
 0x73b   :  { %v994_v53 = vadd.f32 %v993_v52, %v992_v51 }
 0x73d   :  { %v995_v54 = vrot.slane %v994_v53, 2 }
 0x73f   :  { %v996_v55 = vadd.f32 %v995_v54, %v994_v53 }
 0x741   :  { %v997_v56 = vrot.slane %v996_v55, 1 }
 0x743   :  { %v998_v57 = vadd.f32 %v997_v56, %v996_v55 }
 0x745   :  { %v1000_v59 = vmul.f32 0.03125, %v998_v57 }
 0x747   :  { %v1001_v60 = vmul.f32 %v1000_v59, %v983_v58 }
 0x749   :  { %v1006_v61 = vrot.slane %v1001_v60, %v6408_v23 }
 0x74b   :  { %v1008_v62 = vsub.f32 %v965_v38, %v1006_v61  ;;  %v1009_v63 = vsub.f32 %v970_v36, %v1006_v61  ;;  %v1010_v0 = vsub.f32 %v975_v47, %v1006_v61  ;;  %v1011_v1 = vsub.f32 %v980_v46, %v1006_v61 }
 0x74d   :  { %v1012_v2 = vmul.f32 %v1008_v62, %v1008_v62  ;;  %v1013_v4 = vmul.f32 %v1009_v63, %v1009_v63  ;;  %v1014_v8 = vmul.f32 %v1010_v0, %v1010_v0  ;;  %v1015_v9 = vmul.f32 %v1011_v1, %v1011_v1 }
 0x74e   :  { %v1038_v30 = vmul.f32 %v4023_v28, %v1010_v0  ;;  %v1036_v31 = vmul.f32 %v4023_v28, %v1008_v62  ;;  %v1037_v32 = vmul.f32 %v4023_v28, %v1009_v63  ;;  %v1039_v33 = vmul.f32 %v4023_v28, %v1011_v1 }
 0x74f   :  { %v1016_v10 = vsel %vm835_vm4, %v1012_v2, 0.0  ;;  %v1017_v11 = vsel %vm835_vm4, %v1013_v4, 0.0  ;;  %v1019_v13 = vsel %vm835_vm4, %v1014_v8, 0.0  ;;  %v1021_v15 = vsel %vm835_vm4, %v1015_v9, 0.0 }
 0x750   :  { %v1018_v12 = vadd.f32 %v1017_v11, %v1016_v10 }
 0x752   :  { %v1020_v14 = vadd.f32 %v1019_v13, %v1018_v12 }
 0x754   :  { %v1022_v16 = vadd.f32 %v1021_v15, %v1020_v14 }
 0x756   :  { %v1023_v17 = vrot.slane %v1022_v16, 4 }
 0x758   :  { %v1024_v18 = vadd.f32 %v1023_v17, %v1022_v16 }
 0x75a   :  { %v1025_v19 = vrot.slane %v1024_v18, 2 }
 0x75c   :  { %v1026_v20 = vadd.f32 %v1025_v19, %v1024_v18 }
 0x75e   :  { %v1027_v22 = vrot.slane %v1026_v20, 1 }
 0x760   :  { %v1028_v24 = vadd.f32 %v1027_v22, %v1026_v20 }
 0x762   :  { %v1029_v25 = vmul.f32 0.03125, %v1028_v24 }
 0x764   :  { %v1040_v26 = vadd.f32 1e-05, %v1029_v25 }
 0x766   :  { %4891 = vrsqrt.f32 %v1040_v26 }
 0x770   :  { %v4892_v34 = vpop.eup %4891 }
 0x771   :  { %v1044_v36 = vmul.f32 %v4892_v34, %v1038_v30  ;;  %v1042_v37 = vmul.f32 %v4892_v34, %v1036_v31  ;;  %v1043_v38 = vmul.f32 %v4892_v34, %v1037_v32  ;;  %v1045_v39 = vmul.f32 %v4892_v34, %v1039_v33 }
 0x773   :  { %v1052_v41 = vadd.f32 %v4024_v35, %v1042_v37  ;;  %v1053_v42 = vadd.f32 %v4024_v35, %v1043_v38  ;;  %v1054_v43 = vadd.f32 %v4024_v35, %v1044_v36  ;;  %v1055_v47 = vadd.f32 %v4024_v35, %v1045_v39 }
 0x775   :  { %v1056_v44 = vmax.f32 %v1052_v41, 0.0  ;;  %v1057_v46 = vmax.f32 %v1053_v42, 0.0  ;;  %v1058_v48 = vmax.f32 %v1054_v43, 0.0  ;;  %v1059_v49 = vmax.f32 %v1055_v47, 0.0 }
 0x777   :  { %4296 = vmatprep.mubr.msk.f32.mxu0 %vm835_vm4, %v1056_v44 }
 0x778   :  { %4297 = vmatmul.mubr.msk.f32.vlgmr.msra.gmra.mrb[0].mxu0 %vm835_vm4, %v1057_v46 }
 0x779   :  { %4299 = vmatprep.mubr.msk.f32.mxu0 %vm835_vm4, %v1058_v48 }
 0x77c   :  { %4300 = vmatmul.mubr.msk.f32.gmra.mrb[2].mxu0 %vm835_vm4, %v1059_v49 }
 0x77d   :  { %4320 = vmatprep.mubr.msk.f32.mxu0 %vm649_vm0, %v6382_v3 }
 0x84b   :  { %v4298_v50 = vpop.f32.mrb[0].mxu0 }
 0x84c   :  { %1168 = vrot.lane.b32.xlu0 %v4298_v50, %s5925_s23  ;;  %v1143_v51 = vpop.f32.mrb[1].mxu0 }
 0x84d   :  { %v4528_v52 = vpack.c.bf16 %v4298_v50, %v1143_v51  ;;  %1211 = vperm.xlu1 %4866, %v1143_v51  }
 0x84f   :  { %v4301_v53 = vpop.f32.mrb[2].mxu0  ;;  %4529 = vmatprep.subr.bf16.mxu1 %v4528_v52 }
 0x850   :  { %1166 = vrot.lane.b32.xlu0 %v1143_v51, %s5925_s23  ;;  %v1153_v54 = vpop.f32.mrb[3].mxu0  ;;  %4531 = vmatpush3.bf16.msra.mxu1 %v4528_v52  ;;  %v1469_v51 = vld [vmem:[#allocation20] sm:$0xff]  ;;  %v1470_v52 = vld [vmem:[#allocation20 + $0x8] sm:$0xff] }
 0x851   :  { %v4532_v55 = vpack.c.bf16 %v4301_v53, %v1153_v54 }
 0x853   :  { %4533 = vmatprep.subr.bf16.mxu1 %v4532_v55 }
 0x854   :  { %1170 = vrot.lane.b32.xlu0 %v1153_v54, %s5925_s23  ;;  %4535 = vmatpush3.bf16.msra.mxu1 %v4532_v55 }
 0x858   :  { %1172 = vrot.lane.b32.xlu0 %v4301_v53, %s5925_s23 }
 0x85c   :  { %1215 = vperm.xlu0 %4865, %v4298_v50  }
 0x860   :  { %1223 = vperm.xlu0 %4865, %v4301_v53   ;;  %v4536_v53 = vpack.c.bf16 %v1470_v52, %v1469_v51 }
 0x862   :  { %4537 = vmatprep.subr.bf16.mxu0 %v4536_v53 }
 0x863   :  { %4539 = vmatpush3.bf16.msra.mxu0 %v4536_v53 }
 0x864   :  { %1219 = vperm.xlu0 %4865, %v1153_v54  }
 0x866   :  { %4321 = vmatmul.mubr.msk.f32.vlgmr.msra.gmra.mrb[4].mxu0 %vm649_vm0, %v6387_v5 }
 0x867   :  { %4323 = vmatprep.mubr.msk.f32.mxu0 %vm649_vm0, %v6390_v6 }
 0x86a   :  { %4324 = vmatmul.mubr.msk.f32.gmra.mrb[6].mxu0 %vm649_vm0, %v6397_v7 }
 0x8be   :  { %v1169_v3 = vpop.permute.xlu0 %1168 }
 0x8c2   :  { %v1167_v56 = vpop.permute.xlu0 %1166 }
 0x8c3   :  { %1178 = vxpose.xlu0.b32.start [1/4] (short) (narrow) %v1167_v56, 8 }
 0x8c6   :  { %v1171_v57 = vpop.permute.xlu0 %1170 }
 0x8c7   :  { %1179 = vxpose.xlu0.b32.cont [2/4] (short) (narrow) %v1169_v3, 8 }
 0x8ca   :  { %v1173_v58 = vpop.permute.xlu0 %1172 }
 0x8cb   :  { %1180 = vxpose.xlu0.b32.cont [3/4] (short) (narrow) %v1171_v57, 8 }
 0x8cc   :  { %v1212_v0 = vpop.permute.xlu1 %1211 }
 0x8cf   :  { %1181 = vxpose.xlu0.b32.end [4/4] (short) (narrow) %v1173_v58, 8 }
 0x8db   :  { %v1216_v59 = vpop.permute.xlu0 %1215 }
 0x8df   :  { %v1224_v60 = vpop.permute.xlu0 %1223 }
 0x8e3   :  { %v1220_v61 = vpop.permute.xlu0 %1219 }
 0x943   :  { %v1194_v62 = vpop.trf.xlu0 }
 0x944   :  { %v1229_v63 = vrot.slane %v1194_v62, %v6408_v23  ;;  %v6493_v62 = vpop.f32.mrb[4].mxu0 }
 0x946   :  { %v1232_v1 = vadd.f32 %v1229_v63, %v1220_v61  ;;  %v1230_v2 = vadd.f32 %v1229_v63, %v1212_v0  ;;  %v1231_v4 = vadd.f32 %v1229_v63, %v1216_v59  ;;  %v1233_v8 = vadd.f32 %v1229_v63, %v1224_v60  ;;  %v1571_v63 = vld [vmem:[#allocation23] sm:$0xff]  ;;  %v1572_v0 = vld [vmem:[#allocation23 + $0x8] sm:$0xff] }
 0x948   :  { %vm1236_vm10 = vcmp.gt.f32.partialorder %v1232_v1, 0.0  ;;  %v1240_v9 = vmul.f32 0.2, %v1232_v1  ;;  %vm1234_vm11 = vcmp.gt.f32.partialorder %v1230_v2, 0.0  ;;  %v1238_v10 = vmul.f32 0.2, %v1230_v2 }
 0x949   :  { %vm1235_vm12 = vcmp.gt.f32.partialorder %v1231_v4, 0.0  ;;  %v1239_v11 = vmul.f32 0.2, %v1231_v4  ;;  %v1241_v14 = vmul.f32 0.2, %v1233_v8  ;;  %vm1237_vm13 = vcmp.gt.f32.partialorder %v1233_v8, 0.0 }
 0x94a   :  { %v1244_v12 = vsel %vm1236_vm10, %v1232_v1, %v1240_v9  ;;  %v1242_v13 = vsel %vm1234_vm11, %v1230_v2, %v1238_v10  ;;  %v6495_v1 = vpop.f32.mrb[5].mxu0  ;;  %v4540_v2 = vpack.c.bf16 %v1572_v0, %v1571_v63  ;;  %v1573_v9 = vld [vmem:[#allocation23 + $0x10] sm:$0xff]  ;;  %v1574_v10 = vld [vmem:[#allocation23 + $0x18] sm:$0xff]  ;;  %v4034_v0 = vld [vmem:[#allocation17] ss:$0 sm:$0xff] }
 0x94b   :  { %v1248_v15 = vsel %vm640_vm7, %v1244_v12, -1e+30  ;;  %v1246_v16 = vsel %vm638_vm1, %v1242_v13, -1e+30  ;;  %v1243_v17 = vsel %vm1235_vm12, %v1231_v4, %v1239_v11  ;;  %v1245_v22 = vsel %vm1237_vm13, %v1233_v8, %v1241_v14  ;;  %v6497_v4 = vpop.f32.mrb[6].mxu0 }
 0x94c   :  { %v1256_v18 = vsel %vm835_vm4, %v1248_v15, -inf  ;;  %v1250_v19 = vsel %vm835_vm4, %v1246_v16, -inf  ;;  %v1247_v20 = vsel %vm639_vm5, %v1243_v17, -1e+30  ;;  %v1249_v25 = vsel %vm641_vm9, %v1245_v22, -1e+30  ;;  %4541 = vmatprep.subr.bf16.mxu1 %v4540_v2 }
 0x94d   :  { %1257 = vmax.xlane.f32.xlu0 %v1256_v18  ;;  %1251 = vmax.xlane.f32.xlu1 %v1250_v19  ;;  %v1253_v24 = vsel %vm835_vm4, %v1247_v20, -inf  ;;  %v1259_v26 = vsel %vm835_vm4, %v1249_v25, -inf  ;;  %v6499_v8 = vpop.f32.mrb[7].mxu0  ;;  %v4544_v11 = vpack.c.bf16 %v1574_v10, %v1573_v9  ;;  %v4029_v12 = vld [vmem:[#allocation14] ss:$0 sm:$0xff] }
 0x951   :  { %1254 = vmax.xlane.f32.xlu1 %v1253_v24 }
 0x955   :  { %1260 = vmax.xlane.f32.xlu1 %v1259_v26 }
 0x9da   :  { %v1252_v28 = vpop.xlane.xlu1 %1251  ;;  %v1258_v30 = vpop.xlane.xlu0 %1257 }
 0x9db   :  { %v1262_v31 = vsub.f32 %v1246_v16, %v1252_v28  ;;  %v1264_v33 = vsub.f32 %v1248_v15, %v1258_v30 }
 0x9dd   :  { %v1266_v32 = vmul.f32 1.442695, %v1262_v31  ;;  %v1270_v37 = vmul.f32 1.442695, %v1264_v33 }
 0x9de   :  { %v1255_v34 = vpop.xlane.xlu1 %1254 }
 0x9df   :  { %v1263_v35 = vsub.f32 %v1247_v20, %v1255_v34  ;;  %4893 = vpow2.f32 %v1266_v32 }
 0x9e1   :  { %v1268_v36 = vmul.f32 1.442695, %v1263_v35 }
 0x9e2   :  { %v1261_v38 = vpop.xlane.xlu1 %1260 }
 0x9e3   :  { %4895 = vpow2.f32 %v1268_v36  ;;  %v1265_v39 = vsub.f32 %v1249_v25, %v1261_v38  ;;  %v1397_v38 = vld [vmem:[#allocation15] sm:$0x1] }
 0x9e4   :  { %4897 = vpow2.f32 %v1270_v37 }
 0x9e5   :  { %v1272_v41 = vmul.f32 1.442695, %v1265_v39 }
 0x9e7   :  { %4899 = vpow2.f32 %v1272_v41 }
 0x9e9   :  { %v4894_v42 = vpop.eup %4893 }
 0x9ea   :  { %v1274_v43 = vsel %vm835_vm4, %v4894_v42, 0.0 }
 0x9eb   :  { %1275 = vadd.xlane.f32.xlu1 %v1274_v43 }
 0x9ed   :  { %v4896_v44 = vpop.eup %4895 }
 0x9ee   :  { %v1277_v46 = vsel %vm835_vm4, %v4896_v44, 0.0  ;;  %v4898_v47 = vpop.eup %4897 }
 0x9ef   :  { %1278 = vadd.xlane.f32.xlu1 %v1277_v46  ;;  %v1280_v48 = vsel %vm835_vm4, %v4898_v47, 0.0 }
 0x9f1   :  { %v4900_v49 = vpop.eup %4899 }
 0x9f2   :  { %v1283_v50 = vsel %vm835_vm4, %v4900_v49, 0.0 }
 0x9f3   :  { %1281 = vadd.xlane.f32.xlu1 %v1280_v48 }
 0x9f7   :  { %1284 = vadd.xlane.f32.xlu1 %v1283_v50 }
 0xa78   :  { %v1276_v54 = vpop.xlane.xlu1 %1275 }
 0xa79   :  { %4901 = vrcp.f32 %v1276_v54 }
 0xa7c   :  { %v1279_v55 = vpop.xlane.xlu1 %1278 }
 0xa7d   :  { %4903 = vrcp.f32 %v1279_v55 }
 0xa80   :  { %v1282_v3 = vpop.xlane.xlu1 %1281 }
 0xa81   :  { %4905 = vrcp.f32 %v1282_v3 }
 0xa83   :  { %v4902_v56 = vpop.eup %4901 }
 0xa84   :  { %v1285_v57 = vpop.xlane.xlu1 %1284  ;;  %v1290_v58 = vmul.f32 %v4902_v56, %v4894_v42 }
 0xa85   :  { %4907 = vrcp.f32 %v1285_v57 }
 0xa86   :  { %4310 = vmatprep.mubr.msk.f32.mxu1 %vm835_vm4, %v1290_v58 }
 0xa87   :  { %v4904_v59 = vpop.eup %4903 }
 0xa88   :  { %v1291_v5 = vmul.f32 %v4904_v59, %v4896_v44 }
 0xa8a   :  { %4311 = vmatmul.mubr.msk.f32.vlgmr.msra.gmra.mrb[8].mxu1 %vm835_vm4, %v1291_v5 }
 0xa8b   :  { %v4906_v6 = vpop.eup %4905  ;;  %4543 = vmatpush3.bf16.msra.mxu1 %v4540_v2  ;;  %v4036_v2 = vld [vmem:[#allocation21] ss:$0 sm:$0xff] }
 0xa8c   :  { %v1292_v60 = vmul.f32 %v4906_v6, %v4898_v47  ;;  %4545 = vmatprep.subr.bf16.mxu1 %v4544_v11 }
 0xa8e   :  { %4313 = vmatprep.mubr.msk.f32.mxu1 %vm835_vm4, %v1292_v60 }
 0xa8f   :  { %v4908_v7 = vpop.eup %4907  ;;  %4547 = vmatpush3.bf16.msra.mxu1 %v4544_v11 }
 0xa90   :  { %v1293_v61 = vmul.f32 %v4908_v7, %v4900_v49 }
 0xa92   :  { %4314 = vmatmul.mubr.msk.f32.gmra.mrb[10].mxu1 %vm835_vm4, %v1293_v61 }
 0xb5d   :  { %v4312_v13 = vpop.f32.mrb[8].mxu1 }
 0xb5e   :  { %v1384_v14 = vadd.f32 %v4312_v13, %v4029_v12  ;;  %v1378_v15 = vpop.f32.mrb[9].mxu1 }
 0xb5f   :  { %v1379_v16 = vadd.f32 %v4029_v12, %v1378_v15  ;;  %v1550_v15 = vadd.f32 %v6493_v62, %v4036_v2 }
 0xb60   :  { %v1401_v17 = vsel %vm835_vm4, %v1384_v14, 0.0 }
 0xb61   :  { %v1400_v18 = vsel %vm835_vm4, %v1379_v16, 0.0 }
 0xb62   :  { %v1402_v19 = vadd.f32 %v1401_v17, %v1400_v18  ;;  %v1560_v17 = vadd.f32 %v6497_v4, %v4036_v2  ;;  %v1555_v18 = vadd.f32 %v4036_v2, %v6499_v8 }
 0xb65   :  { %v4315_v20 = vpop.f32.mrb[10].mxu1 }
 0xb66   :  { %v1388_v22 = vpop.f32.mrb[11].mxu1  ;;  %v1394_v24 = vadd.f32 %v4315_v20, %v4029_v12 }
 0xb67   :  { %v1389_v25 = vadd.f32 %v4029_v12, %v1388_v22 }
 0xb68   :  { %v1405_v30 = vsel %vm835_vm4, %v1394_v24, 0.0 }
 0xb69   :  { %v1403_v26 = vsel %vm835_vm4, %v1389_v25, 0.0 }
 0xb6a   :  { %v1404_v28 = vadd.f32 %v1403_v26, %v1402_v19 }
 0xb6c   :  { %v1406_v31 = vadd.f32 %v1405_v30, %v1404_v28 }
 0xb6e   :  { %v1407_v32 = vrot.slane %v1406_v31, 4 }
 0xb70   :  { %v1408_v33 = vadd.f32 %v1407_v32, %v1406_v31 }
 0xb72   :  { %v1409_v34 = vrot.slane %v1408_v33, 2 }
 0xb74   :  { %v1410_v35 = vadd.f32 %v1409_v34, %v1408_v33 }
 0xb76   :  { %v1411_v36 = vrot.slane %v1410_v35, 1 }
 0xb78   :  { %v1412_v37 = vadd.f32 %v1411_v36, %v1410_v35  ;;  %v5926_v35 = vmov 65  }
 0xb79   :  { %4867 = vset.pattern.permute.xlu1 %v5926_v35  ;;  %4868 = vset.pattern.permute.xlu0 %v5926_v35 }
 0xb7a   :  { %v1413_v39 = vmul.f32 0.03125, %v1412_v37 }
 0xb7c   :  { %v1414_v41 = vmul.f32 %v1413_v39, %v1397_v38 }
 0xb7e   :  { %v1419_v42 = vrot.slane %v1414_v41, %v6408_v23 }
 0xb80   :  { %v1421_v43 = vsub.f32 %v1379_v16, %v1419_v42  ;;  %v1422_v44 = vsub.f32 %v1384_v14, %v1419_v42  ;;  %v1423_v46 = vsub.f32 %v1389_v25, %v1419_v42  ;;  %v1424_v47 = vsub.f32 %v1394_v24, %v1419_v42  ;;  %v4035_v14 = vld [vmem:[#allocation18] ss:$0 sm:$0xff] }
 0xb81   :  { %v1545_v16 = vadd.f32 %v4036_v2, %v6495_v1 }
 0xb82   :  { %v1425_v48 = vmul.f32 %v1421_v43, %v1421_v43  ;;  %v1426_v49 = vmul.f32 %v1422_v44, %v1422_v44  ;;  %v1427_v50 = vmul.f32 %v1423_v46, %v1423_v46  ;;  %v1428_v51 = vmul.f32 %v1424_v47, %v1424_v47 }
 0xb83   :  { %v1451_v9 = vmul.f32 %v4034_v0, %v1423_v46  ;;  %v1450_v10 = vmul.f32 %v4034_v0, %v1422_v44  ;;  %v1449_v11 = vmul.f32 %v4034_v0, %v1421_v43  ;;  %v1452_v12 = vmul.f32 %v4034_v0, %v1424_v47 }
 0xb84   :  { %v1429_v52 = vsel %vm835_vm4, %v1425_v48, 0.0  ;;  %v1430_v53 = vsel %vm835_vm4, %v1426_v49, 0.0  ;;  %v1432_v55 = vsel %vm835_vm4, %v1427_v50, 0.0  ;;  %v1434_v56 = vsel %vm835_vm4, %v1428_v51, 0.0 }
 0xb85   :  { %v1431_v54 = vadd.f32 %v1430_v53, %v1429_v52 }
 0xb87   :  { %v1433_v3 = vadd.f32 %v1432_v55, %v1431_v54 }
 0xb89   :  { %v1435_v57 = vadd.f32 %v1434_v56, %v1433_v3 }
 0xb8b   :  { %v1436_v58 = vrot.slane %v1435_v57, 4 }
 0xb8d   :  { %v1437_v59 = vadd.f32 %v1436_v58, %v1435_v57 }
 0xb8f   :  { %v1438_v5 = vrot.slane %v1437_v59, 2 }
 0xb91   :  { %v1439_v6 = vadd.f32 %v1438_v5, %v1437_v59 }
 0xb93   :  { %v1440_v60 = vrot.slane %v1439_v6, 1 }
 0xb95   :  { %v1441_v7 = vadd.f32 %v1440_v60, %v1439_v6 }
 0xb97   :  { %v1442_v61 = vmul.f32 0.03125, %v1441_v7 }
 0xb99   :  { %v1453_v63 = vadd.f32 1e-05, %v1442_v61 }
 0xb9b   :  { %4909 = vrsqrt.f32 %v1453_v63 }
 0xba5   :  { %v4910_v13 = vpop.eup %4909 }
 0xba6   :  { %v1456_v19 = vmul.f32 %v4910_v13, %v1450_v10  ;;  %v1455_v20 = vmul.f32 %v4910_v13, %v1449_v11  ;;  %v1458_v22 = vmul.f32 %v4910_v13, %v1452_v12  ;;  %v1457_v24 = vmul.f32 %v4910_v13, %v1451_v9 }
 0xba8   :  { %v1466_v25 = vadd.f32 %v4035_v14, %v1456_v19  ;;  %v1465_v26 = vadd.f32 %v4035_v14, %v1455_v20  ;;  %v1468_v28 = vadd.f32 %v4035_v14, %v1458_v22  ;;  %v1467_v30 = vadd.f32 %v4035_v14, %v1457_v24 }
 0xbaa   :  { %v6514_v31 = vadd.f32 %v1550_v15, %v1466_v25  ;;  %v6516_v32 = vadd.f32 %v1545_v16, %v1465_v26  ;;  %v6518_v33 = vadd.f32 %v1560_v17, %v1468_v28  ;;  %v6520_v62 = vadd.f32 %v1555_v18, %v1467_v30 }
 0xbac   :  { %v1568_v1 = vmax.f32 %v6514_v31, 0.0  ;;  %v1567_v4 = vmax.f32 %v6516_v32, 0.0  ;;  %v1569_v8 = vmax.f32 %v6520_v62, 0.0  ;;  %v1570_v34 = vmax.f32 %v6518_v33, 0.0  ;;  %v2509_v62 = vld [vmem:[%s6964_s25 + $0x38] sm:$0xff]  ;;  %v2506_v33 = vld [vmem:[%s6964_s25 + $0x20] sm:$0xff] }
 0xbae   :  { %4334 = vmatprep.mubr.msk.f32.mxu1 %vm835_vm4, %v1567_v4 }
 0xbaf   :  { %4335 = vmatmul.mubr.msk.f32.vlgmr.msra.gmra.mrb[12].mxu1 %vm835_vm4, %v1568_v1 }
 0xbb0   :  { %4337 = vmatprep.mubr.msk.f32.mxu1 %vm835_vm4, %v1569_v8 }
 0xbb3   :  { %4338 = vmatmul.mubr.msk.f32.gmra.mrb[14].mxu1 %vm835_vm4, %v1570_v34 }
 0xc82   :  { %v4336_v36 = vpop.f32.mrb[12].mxu1 }
 0xc83   :  { %1679 = vrot.lane.b32.xlu1 %v4336_v36, %s5927_s30  ;;  %v1654_v37 = vpop.f32.mrb[13].mxu1 }
 0xc84   :  { %v4548_v38 = vpack.c.bf16 %v4336_v36, %v1654_v37 }
 0xc86   :  { %v4339_v39 = vpop.f32.mrb[14].mxu1  ;;  %4549 = vmatprep.subr.bf16.mxu0 %v4548_v38 }
 0xc87   :  { %1677 = vrot.lane.b32.xlu1 %v1654_v37, %s5927_s30  ;;  %4551 = vmatpush3.bf16.msra.mxu0 %v4548_v38  ;;  %v1664_v41 = vpop.f32.mrb[15].mxu1 }
 0xc88   :  { %1683 = vrot.lane.b32.xlu0 %v4339_v39, %s5927_s30  ;;  %v4552_v42 = vpack.c.bf16 %v4339_v39, %v1664_v41 }
 0xc8a   :  { %4553 = vmatprep.subr.bf16.mxu0 %v4552_v42 }
 0xc8b   :  { %1722 = vperm.xlu1 %4867, %v1654_v37   ;;  %4555 = vmatpush3.bf16.msra.mxu0 %v4552_v42 }
 0xc8f   :  { %1726 = vperm.xlu1 %4867, %v4336_v36  }
 0xc93   :  { %1681 = vrot.lane.b32.xlu1 %v1664_v41, %s5927_s30 }
 0xc97   :  { %1734 = vperm.xlu1 %4867, %v4339_v39  }
 0xc9b   :  { %1730 = vperm.xlu1 %4867, %v1664_v41  }
 0xcf5   :  { %v1680_v43 = vpop.permute.xlu1 %1679 }
 0xcf9   :  { %v1678_v44 = vpop.permute.xlu1 %1677 }
 0xcfa   :  { %1689 = vxpose.xlu1.b32.start [1/4] (short) (narrow) %v1678_v44, 8  ;;  %v1684_v49 = vpop.permute.xlu0 %1683 }
 0xcfe   :  { %1690 = vxpose.xlu1.b32.cont [2/4] (short) (narrow) %v1680_v43, 8 }
 0xd0a   :  { %v1723_v46 = vpop.permute.xlu1 %1722 }
 0xd0e   :  { %v1727_v47 = vpop.permute.xlu1 %1726 }
 0xd12   :  { %v1682_v48 = vpop.permute.xlu1 %1681 }
 0xd13   :  { %1691 = vxpose.xlu1.b32.cont [3/4] (short) (narrow) %v1682_v48, 8 }
 0xd16   :  { %v1735_v50 = vpop.permute.xlu1 %1734 }
 0xd17   :  { %1692 = vxpose.xlu1.b32.end [4/4] (short) (narrow) %v1684_v49, 8 }
 0xd1a   :  { %v1731_v51 = vpop.permute.xlu1 %1730 }
 0xd8b   :  { %v1705_v52 = vpop.trf.xlu1 }
 0xd8c   :  { %v1740_v53 = vrot.slane %v1705_v52, %v6408_v23 }
 0xd8e   :  { %v1741_v54 = vadd.f32 %v1740_v53, %v1723_v46  ;;  %v1742_v55 = vadd.f32 %v1740_v53, %v1727_v47  ;;  %v1743_v3 = vadd.f32 %v1740_v53, %v1731_v51  ;;  %v1744_v6 = vadd.f32 %v1740_v53, %v1735_v50 }
 0xd90   :  { %vm1745_vm14 = vcmp.gt.f32.partialorder %v1741_v54, 0.0  ;;  %v1749_v56 = vmul.f32 0.2, %v1741_v54  ;;  %vm1746_vm15 = vcmp.gt.f32.partialorder %v1742_v55, 0.0  ;;  %v1750_v57 = vmul.f32 0.2, %v1742_v55 }
 0xd91   :  { %v1751_v5 = vmul.f32 0.2, %v1743_v3  ;;  %vm1747_vm0 = vcmp.gt.f32.partialorder %v1743_v3, 0.0  ;;  %v1752_v0 = vmul.f32 0.2, %v1744_v6  ;;  %vm1748_vm2 = vcmp.gt.f32.partialorder %v1744_v6, 0.0 }
 0xd92   :  { %v1753_v58 = vsel %vm1745_vm14, %v1741_v54, %v1749_v56  ;;  %v1754_v59 = vsel %vm1746_vm15, %v1742_v55, %v1750_v57  ;;  %v1986_v56 = vld [vmem:[#allocation30 + $0x8] sm:$0xff] }
 0xd93   :  { %v1757_v60 = vsel %vm638_vm1, %v1753_v58, -1e+30  ;;  %v1758_v61 = vsel %vm639_vm5, %v1754_v59, -1e+30  ;;  %v1755_v63 = vsel %vm1747_vm0, %v1743_v3, %v1751_v5  ;;  %v1756_v10 = vsel %vm1748_vm2, %v1744_v6, %v1752_v0  ;;  %v1985_v3 = vld [vmem:[#allocation30] sm:$0xff]  ;;  %v1987_v58 = vld [vmem:[#allocation30 + $0x10] sm:$0xff] }
 0xd94   :  { %v1761_v7 = vsel %vm835_vm4, %v1757_v60, -inf  ;;  %v1764_v2 = vsel %vm835_vm4, %v1758_v61, -inf  ;;  %v1759_v9 = vsel %vm640_vm7, %v1755_v63, -1e+30  ;;  %v1760_v12 = vsel %vm641_vm9, %v1756_v10, -1e+30 }
 0xd95   :  { %1762 = vmax.xlane.f32.xlu0 %v1761_v7  ;;  %v1767_v11 = vsel %vm835_vm4, %v1759_v9, -inf  ;;  %v1770_v13 = vsel %vm835_vm4, %v1760_v12, -inf  ;;  %v4556_v57 = vpack.c.bf16 %v1986_v56, %v1985_v3  ;;  %v1988_v59 = vld [vmem:[#allocation30 + $0x18] sm:$0xff]  ;;  %v1989_v6 = vld [vmem:[#allocation30 + $0x20] sm:$0xff] }
 0xd96   :  { %v4560_v5 = vpack.c.bf16 %v1988_v59, %v1987_v58  ;;  %v1992_v63 = vld [vmem:[#allocation30 + $0x38] sm:$0xff] }
 0xd97   :  { %4557 = vmatprep.subr.bf16.mxu1 %v4556_v57 }
 0xd98   :  { %4559 = vmatpush3.bf16.msra.mxu1 %v4556_v57 }
 0xd99   :  { %1765 = vmax.xlane.f32.xlu0 %v1764_v2  ;;  %4561 = vmatprep.subr.bf16.mxu1 %v4560_v5  ;;  %v4045_v2 = vld [vmem:[#allocation24] ss:$0 sm:$0xff] }
 0xd9c   :  { %4563 = vmatpush3.bf16.msra.mxu1 %v4560_v5 }
 0xd9d   :  { %1768 = vmax.xlane.f32.xlu0 %v1767_v11 }
 0xda1   :  { %1771 = vmax.xlane.f32.xlu0 %v1770_v13 }
 0xe22   :  { %v1763_v14 = vpop.xlane.xlu0 %1762 }
 0xe23   :  { %v1773_v15 = vsub.f32 %v1757_v60, %v1763_v14  ;;  %v1990_v60 = vld [vmem:[#allocation30 + $0x28] sm:$0xff] }
 0xe24   :  { %v4564_v7 = vpack.c.bf16 %v1990_v60, %v1989_v6 }
 0xe25   :  { %v1777_v16 = vmul.f32 1.442695, %v1773_v15 }
 0xe26   :  { %v1766_v17 = vpop.xlane.xlu0 %1765  ;;  %4565 = vmatprep.subr.bf16.mxu1 %v4564_v7 }
 0xe27   :  { %4911 = vpow2.f32 %v1777_v16  ;;  %v1774_v18 = vsub.f32 %v1758_v61, %v1766_v17  ;;  %v1991_v61 = vld [vmem:[#allocation30 + $0x30] sm:$0xff]  ;;  %4567 = vmatpush3.bf16.msra.mxu1 %v4564_v7 }
 0xe28   :  { %v4568_v0 = vpack.c.bf16 %v1992_v63, %v1991_v61 }
 0xe29   :  { %v1779_v19 = vmul.f32 1.442695, %v1774_v18 }
 0xe2a   :  { %v1769_v20 = vpop.xlane.xlu0 %1768  ;;  %4569 = vmatprep.subr.bf16.mxu1 %v4568_v0 }
 0xe2b   :  { %4913 = vpow2.f32 %v1779_v19  ;;  %v1775_v22 = vsub.f32 %v1759_v9, %v1769_v20  ;;  %4571 = vmatpush3.bf16.msra.mxu1 %v4568_v0  ;;  %v4050_v0 = vld [vmem:[#allocation27] ss:$0 sm:$0xff] }
 0xe2d   :  { %v1781_v24 = vmul.f32 1.442695, %v1775_v22 }
 0xe2e   :  { %v1772_v25 = vpop.xlane.xlu0 %1771 }
 0xe2f   :  { %4915 = vpow2.f32 %v1781_v24  ;;  %v1776_v26 = vsub.f32 %v1760_v12, %v1772_v25 }
 0xe31   :  { %v4912_v28 = vpop.eup %4911  ;;  %v1783_v30 = vmul.f32 1.442695, %v1776_v26 }
 0xe32   :  { %v1785_v35 = vsel %vm835_vm4, %v4912_v28, 0.0 }
 0xe33   :  { %4917 = vpow2.f32 %v1783_v30  ;;  %1786 = vadd.xlane.f32.xlu0 %v1785_v35 }
 0xe35   :  { %v4914_v36 = vpop.eup %4913 }
 0xe36   :  { %v1788_v37 = vsel %vm835_vm4, %v4914_v36, 0.0 }
 0xe37   :  { %1789 = vadd.xlane.f32.xlu0 %v1788_v37 }
 0xe39   :  { %v4916_v38 = vpop.eup %4915 }
 0xe3a   :  { %v1791_v39 = vsel %vm835_vm4, %v4916_v38, 0.0 }
 0xe3b   :  { %1792 = vadd.xlane.f32.xlu1 %v1791_v39 }
 0xe3d   :  { %v4918_v41 = vpop.eup %4917 }
 0xe3e   :  { %v1794_v42 = vsel %vm835_vm4, %v4918_v41, 0.0 }
 0xe3f   :  { %1795 = vadd.xlane.f32.xlu0 %v1794_v42 }
 0xec0   :  { %v1787_v43 = vpop.xlane.xlu0 %1786 }
 0xec1   :  { %4919 = vrcp.f32 %v1787_v43 }
 0xec4   :  { %v1790_v44 = vpop.xlane.xlu0 %1789 }
 0xec5   :  { %4921 = vrcp.f32 %v1790_v44 }
 0xec8   :  { %v1793_v46 = vpop.xlane.xlu1 %1792 }
 0xec9   :  { %4923 = vrcp.f32 %v1793_v46 }
 0xecb   :  { %v4920_v47 = vpop.eup %4919 }
 0xecc   :  { %v1796_v48 = vpop.xlane.xlu0 %1795  ;;  %v1801_v49 = vmul.f32 %v4920_v47, %v4912_v28 }
 0xecd   :  { %4925 = vrcp.f32 %v1796_v48 }
 0xece   :  { %4348 = vmatprep.mubr.msk.f32.mxu0 %vm835_vm4, %v1801_v49 }
 0xecf   :  { %v4922_v50 = vpop.eup %4921 }
 0xed0   :  { %v1802_v51 = vmul.f32 %v4922_v50, %v4914_v36 }
 0xed2   :  { %4349 = vmatmul.mubr.msk.f32.vlgmr.msra.gmra.mrb[8].mxu0 %vm835_vm4, %v1802_v51 }
 0xed3   :  { %v4924_v52 = vpop.eup %4923 }
 0xed4   :  { %v1803_v53 = vmul.f32 %v4924_v52, %v4916_v38  ;;  %v1908_v38 = vld [vmem:[#allocation26] sm:$0x1] }
 0xed6   :  { %4351 = vmatprep.mubr.msk.f32.mxu0 %vm835_vm4, %v1803_v53 }
 0xed7   :  { %v4926_v54 = vpop.eup %4925 }
 0xed8   :  { %v1804_v55 = vmul.f32 %v4926_v54, %v4918_v41 }
 0xeda   :  { %4352 = vmatmul.mubr.msk.f32.gmra.mrb[10].mxu0 %vm835_vm4, %v1804_v55 }
 0xfa5   :  { %v4350_v9 = vpop.f32.mrb[8].mxu0 }
 0xfa6   :  { %v1895_v10 = vadd.f32 %v4350_v9, %v4045_v2  ;;  %v1889_v11 = vpop.f32.mrb[9].mxu0 }
 0xfa7   :  { %v1890_v12 = vadd.f32 %v4045_v2, %v1889_v11 }
 0xfa8   :  { %v1913_v13 = vsel %vm1911_vm3, %v1895_v10, 0.0 }
 0xfa9   :  { %v1912_v14 = vsel %vm1911_vm3, %v1890_v12, 0.0 }
 0xfaa   :  { %v1914_v15 = vadd.f32 %v1913_v13, %v1912_v14  ;;  %v4051_v13 = vld [vmem:[#allocation29] ss:$0 sm:$0xff] }
 0xfad   :  { %v4353_v16 = vpop.f32.mrb[10].mxu0 }
 0xfae   :  { %v1899_v17 = vpop.f32.mrb[11].mxu0  ;;  %v1905_v18 = vadd.f32 %v4353_v16, %v4045_v2 }
 0xfaf   :  { %v1900_v19 = vadd.f32 %v4045_v2, %v1899_v17 }
 0xfb0   :  { %v1917_v24 = vsel %vm1911_vm3, %v1905_v18, 0.0 }
 0xfb1   :  { %v1915_v20 = vsel %vm1911_vm3, %v1900_v19, 0.0 }
 0xfb2   :  { %v1916_v22 = vadd.f32 %v1915_v20, %v1914_v15 }
 0xfb4   :  { %v1918_v25 = vadd.f32 %v1917_v24, %v1916_v22 }
 0xfb6   :  { %v1919_v26 = vrot.slane %v1918_v25, 4 }
 0xfb8   :  { %v1920_v28 = vadd.f32 %v1919_v26, %v1918_v25 }
 0xfba   :  { %v1921_v30 = vrot.slane %v1920_v28, 2 }
 0xfbc   :  { %v1922_v35 = vadd.f32 %v1921_v30, %v1920_v28 }
 0xfbe   :  { %v1923_v36 = vrot.slane %v1922_v35, 1 }
 0xfc0   :  { %v1924_v37 = vadd.f32 %v1923_v36, %v1922_v35 }
 0xfc2   :  { %v1925_v39 = vmul.f32 0.03125, %v1924_v37 }
 0xfc4   :  { %v1926_v41 = vmul.f32 %v1925_v39, %v1908_v38 }
 0xfc6   :  { %v1931_v42 = vrot.slane %v1926_v41, %v6408_v23 }
 0xfc8   :  { %v1933_v43 = vsub.f32 %v1890_v12, %v1931_v42  ;;  %v1934_v44 = vsub.f32 %v1895_v10, %v1931_v42  ;;  %v1935_v46 = vsub.f32 %v1900_v19, %v1931_v42  ;;  %v1936_v47 = vsub.f32 %v1905_v18, %v1931_v42 }
 0xfca   :  { %v1937_v48 = vmul.f32 %v1933_v43, %v1933_v43  ;;  %v1938_v49 = vmul.f32 %v1934_v44, %v1934_v44  ;;  %v1939_v50 = vmul.f32 %v1935_v46, %v1935_v46  ;;  %v1940_v51 = vmul.f32 %v1936_v47, %v1936_v47 }
 0xfcb   :  { %v1962_v2 = vmul.f32 %v4050_v0, %v1934_v44  ;;  %v1963_v9 = vmul.f32 %v4050_v0, %v1935_v46  ;;  %v1961_v10 = vmul.f32 %v4050_v0, %v1933_v43  ;;  %v1964_v11 = vmul.f32 %v4050_v0, %v1936_v47 }
 0xfcc   :  { %v1941_v52 = vsel %vm1911_vm3, %v1937_v48, 0.0  ;;  %v1942_v53 = vsel %vm1911_vm3, %v1938_v49, 0.0  ;;  %v1944_v55 = vsel %vm1911_vm3, %v1939_v50, 0.0  ;;  %v1946_v56 = vsel %vm1911_vm3, %v1940_v51, 0.0 }
 0xfcd   :  { %v1943_v54 = vadd.f32 %v1942_v53, %v1941_v52 }
 0xfcf   :  { %v1945_v3 = vadd.f32 %v1944_v55, %v1943_v54 }
 0xfd1   :  { %v1947_v57 = vadd.f32 %v1946_v56, %v1945_v3 }
 0xfd3   :  { %v1948_v58 = vrot.slane %v1947_v57, 4 }
 0xfd5   :  { %v1949_v59 = vadd.f32 %v1948_v58, %v1947_v57 }
 0xfd7   :  { %v1950_v5 = vrot.slane %v1949_v59, 2 }
 0xfd9   :  { %v1951_v6 = vadd.f32 %v1950_v5, %v1949_v59 }
 0xfdb   :  { %v1952_v60 = vrot.slane %v1951_v6, 1 }
 0xfdd   :  { %v1953_v7 = vadd.f32 %v1952_v60, %v1951_v6 }
 0xfdf   :  { %v1954_v61 = vmul.f32 0.03125, %v1953_v7 }
 0xfe1   :  { %v1965_v63 = vadd.f32 1e-05, %v1954_v61 }
 0xfe3   :  { %4927 = vrsqrt.f32 %v1965_v63 }
 0xfed   :  { %v4928_v12 = vpop.eup %4927 }
 0xfee   :  { %v1968_v14 = vmul.f32 %v4928_v12, %v1962_v2  ;;  %v1969_v15 = vmul.f32 %v4928_v12, %v1963_v9  ;;  %v1967_v16 = vmul.f32 %v4928_v12, %v1961_v10  ;;  %v1970_v17 = vmul.f32 %v4928_v12, %v1964_v11 }
 0xff0   :  { %v1977_v18 = vadd.f32 %v4051_v13, %v1967_v16  ;;  %v1978_v19 = vadd.f32 %v4051_v13, %v1968_v14  ;;  %v1979_v20 = vadd.f32 %v4051_v13, %v1969_v15  ;;  %v1980_v25 = vadd.f32 %v4051_v13, %v1970_v17 }
 0xff2   :  { %v1981_v22 = vmax.f32 %v1977_v18, 0.0  ;;  %v1982_v24 = vmax.f32 %v1978_v19, 0.0  ;;  %v1983_v26 = vmax.f32 %v1979_v20, 0.0  ;;  %v1984_v28 = vmax.f32 %v1980_v25, 0.0 }
 0xff4   :  { %4370 = vmatprep.mubr.msk.f32.mxu1 %vm1911_vm3, %v1981_v22 }
 0xff5   :  { %4371 = vmatmul.mubr.msk.f32.vlgmr.msra.gmra.mrb[16].mxu1 %vm1911_vm3, %v1982_v24 }
 0xff6   :  { %4373 = vmatprep.mubr.msk.f32.mxu1 %vm1911_vm3, %v1983_v26 }
 0xff9   :  { %4374 = vmatmul.mubr.msk.f32.gmra.mrb[18].mxu1 %vm1911_vm3, %v1984_v28 }
0x10c8   :  { %v4372_v30 = vpop.f32.mrb[16].mxu1 }
0x10c9   :  { %2097 = vrot.lane.b32.xlu0 %v4372_v30, %s5927_s30  ;;  %v2072_v35 = vpop.f32.mrb[17].mxu1 }
0x10ca   :  { %v4572_v36 = vpack.c.bf16 %v4372_v30, %v2072_v35  ;;  %2140 = vperm.xlu1 %4867, %v2072_v35  }
0x10cc   :  { %v4375_v37 = vpop.f32.mrb[18].mxu1  ;;  %4573 = vmatprep.subr.bf16.mxu0 %v4572_v36 }
0x10cd   :  { %2095 = vrot.lane.b32.xlu0 %v2072_v35, %s5927_s30  ;;  %v2082_v38 = vpop.f32.mrb[19].mxu1  ;;  %4575 = vmatpush3.bf16.msra.mxu0 %v4572_v36 }
0x10ce   :  { %v4576_v39 = vpack.c.bf16 %v4375_v37, %v2082_v38 }
0x10d0   :  { %4577 = vmatprep.subr.bf16.mxu0 %v4576_v39 }
0x10d1   :  { %2099 = vrot.lane.b32.xlu0 %v2082_v38, %s5927_s30  ;;  %4579 = vmatpush3.bf16.msra.mxu0 %v4576_v39 }
0x10d5   :  { %2101 = vrot.lane.b32.xlu0 %v4375_v37, %s5927_s30 }
0x10d9   :  { %2144 = vperm.xlu0 %4868, %v4372_v30  }
0x10dd   :  { %2152 = vperm.xlu0 %4868, %v4375_v37  }
0x10e1   :  { %2148 = vperm.xlu0 %4868, %v2082_v38  }
0x113b   :  { %v2098_v41 = vpop.permute.xlu0 %2097 }
0x113f   :  { %v2096_v42 = vpop.permute.xlu0 %2095 }
0x1140   :  { %2107 = vxpose.xlu0.b32.start [1/4] (short) (narrow) %v2096_v42, 8  ;;  %v2399_v42 = vld [vmem:[#allocation38 + $0x8] sm:$0xff] }
0x1143   :  { %v2100_v43 = vpop.permute.xlu0 %2099 }
0x1144   :  { %2108 = vxpose.xlu0.b32.cont [2/4] (short) (narrow) %v2098_v41, 8  ;;  %v2398_v41 = vld [vmem:[#allocation38] sm:$0xff] }
0x1147   :  { %v2102_v44 = vpop.permute.xlu0 %2101 }
0x1148   :  { %2109 = vxpose.xlu0.b32.cont [3/4] (short) (narrow) %v2100_v43, 8  ;;  %v4580_v43 = vpack.c.bf16 %v2399_v42, %v2398_v41 }
0x1149   :  { %v2141_v51 = vpop.permute.xlu1 %2140 }
0x114a   :  { %4581 = vmatprep.subr.bf16.mxu0 %v4580_v43 }
0x114c   :  { %2110 = vxpose.xlu0.b32.end [4/4] (short) (narrow) %v2102_v44, 8 }
0x1158   :  { %v2145_v46 = vpop.permute.xlu0 %2144 }
0x115c   :  { %v2153_v47 = vpop.permute.xlu0 %2152 }
0x1160   :  { %v2149_v48 = vpop.permute.xlu0 %2148 }
0x11c0   :  { %v2123_v49 = vpop.trf.xlu0 }
0x11c1   :  { %v2158_v50 = vrot.slane %v2123_v49, %v6408_v23 }
0x11c3   :  { %v2162_v52 = vadd.f32 %v2158_v50, %v2153_v47  ;;  %v2159_v53 = vadd.f32 %v2158_v50, %v2141_v51  ;;  %v2160_v54 = vadd.f32 %v2158_v50, %v2145_v46  ;;  %v2161_v55 = vadd.f32 %v2158_v50, %v2149_v48  ;;  %v2400_v51 = vld [vmem:[#allocation38 + $0x10] sm:$0xff] }
0x11c5   :  { %vm2166_vm6 = vcmp.gt.f32.partialorder %v2162_v52, 0.0  ;;  %v2170_v3 = vmul.f32 0.2, %v2162_v52  ;;  %vm2163_vm8 = vcmp.gt.f32.partialorder %v2159_v53, 0.0  ;;  %v2167_v56 = vmul.f32 0.2, %v2159_v53 }
0x11c6   :  { %vm2164_vm10 = vcmp.gt.f32.partialorder %v2160_v54, 0.0  ;;  %v2168_v57 = vmul.f32 0.2, %v2160_v54  ;;  %v2169_v5 = vmul.f32 0.2, %v2161_v55  ;;  %vm2165_vm11 = vcmp.gt.f32.partialorder %v2161_v55, 0.0 }
0x11c7   :  { %v2174_v58 = vsel %vm2166_vm6, %v2162_v52, %v2170_v3  ;;  %v2171_v59 = vsel %vm2163_vm8, %v2159_v53, %v2167_v56  ;;  %v2401_v52 = vld [vmem:[#allocation38 + $0x18] sm:$0xff] }
0x11c8   :  { %v2178_v6 = vsel %vm641_vm9, %v2174_v58, -1e+30  ;;  %v2175_v60 = vsel %vm638_vm1, %v2171_v59, -1e+30  ;;  %v2172_v7 = vsel %vm2164_vm10, %v2160_v54, %v2168_v57  ;;  %v2173_v2 = vsel %vm2165_vm11, %v2161_v55, %v2169_v5  ;;  %v2503_v59 = vld [vmem:[%s6964_s25 + $0x8] sm:$0xff]  ;;  %v2505_v5 = vld [vmem:[%s6964_s25 + $0x18] sm:$0xff] }
0x11c9   :  { %v2188_v61 = vsel %vm835_vm4, %v2178_v6, -inf  ;;  %v2179_v63 = vsel %vm835_vm4, %v2175_v60, -inf  ;;  %v2176_v0 = vsel %vm639_vm5, %v2172_v7, -1e+30  ;;  %v2177_v10 = vsel %vm640_vm7, %v2173_v2, -1e+30 }
0x11ca   :  { %2189 = vmax.xlane.f32.xlu0 %v2188_v61  ;;  %2180 = vmax.xlane.f32.xlu1 %v2179_v63  ;;  %v2182_v9 = vsel %vm835_vm4, %v2176_v0, -inf  ;;  %v2185_v11 = vsel %vm835_vm4, %v2177_v10, -inf  ;;  %v4584_v55 = vpack.c.bf16 %v2401_v52, %v2400_v51  ;;  %v4588_v32 = vpack.c.bf16 %v2505_v5, %v2503_v59  ;;  %v2511_v7 = vld [vmem:[%s6964_s25 + $0x48] sm:$0xff]  ;;  %v2513_v61 = vld [vmem:[%s6964_s25 + $0x58] sm:$0xff]  ;;  %v2512_v2 = vld [vmem:[%s6964_s25 + $0x50] sm:$0xff] }
0x11cb   :  { %v4596_v63 = vpack.c.bf16 %v2513_v61, %v2511_v7 }
0x11cc   :  { %4589 = vmatprep.subr.bf16.mxu1 %v4588_v32 }
0x11ce   :  { %2183 = vmax.xlane.f32.xlu1 %v2182_v9 }
0x11d2   :  { %2186 = vmax.xlane.f32.xlu1 %v2185_v11  ;;  %v2517_v11 = vld [vmem:[%s6964_s25 + $0x78] sm:$0xff] }
0x1257   :  { %v2181_v12 = vpop.xlane.xlu1 %2180  ;;  %v2190_v16 = vpop.xlane.xlu0 %2189 }
0x1258   :  { %v2191_v13 = vsub.f32 %v2175_v60, %v2181_v12  ;;  %v2194_v19 = vsub.f32 %v2178_v6, %v2190_v16  ;;  %v2502_v6 = vld [vmem:[%s6964_s25] sm:$0xff]  ;;  %v5928_v16 = vmov 0.0  }
0x1259   :  { %2595 = vmatprep.mubr.f32.mxu1 %v5928_v16 }
0x125a   :  { %v2195_v14 = vmul.f32 1.442695, %v2191_v13  ;;  %v2201_v25 = vmul.f32 1.442695, %v2194_v19  ;;  %v2514_v13 = vld [vmem:[%s6964_s25 + $0x60] sm:$0xff] }
0x125b   :  { %v2184_v15 = vpop.xlane.xlu1 %2183 }
0x125c   :  { %v2192_v17 = vsub.f32 %v2176_v0, %v2184_v15  ;;  %4929 = vpow2.f32 %v2195_v14  ;;  %v2510_v0 = vld [vmem:[%s6964_s25 + $0x40] sm:$0xff]  ;;  %v2516_v14 = vld [vmem:[%s6964_s25 + $0x70] sm:$0xff] }
0x125d   :  { %v4598_v9 = vpack.c.bf16 %v2512_v2, %v2510_v0  ;;  %v4602_v15 = vpack.c.bf16 %v2516_v14, %v2514_v13 }
0x125e   :  { %v2197_v18 = vmul.f32 1.442695, %v2192_v17  ;;  %v4056_v17 = vld [vmem:[#allocation32] ss:$0 sm:$0xff] }
0x125f   :  { %v2187_v20 = vpop.xlane.xlu1 %2186 }
0x1260   :  { %4931 = vpow2.f32 %v2197_v18  ;;  %v2193_v22 = vsub.f32 %v2177_v10, %v2187_v20  ;;  %v2515_v10 = vld [vmem:[%s6964_s25 + $0x68] sm:$0xff] }
0x1261   :  { %v4600_v12 = vpack.c.bf16 %v2517_v11, %v2515_v10 }
0x1262   :  { %v2199_v24 = vmul.f32 1.442695, %v2193_v22 }
0x1264   :  { %4933 = vpow2.f32 %v2199_v24 }
0x1265   :  { %4935 = vpow2.f32 %v2201_v25 }
0x1266   :  { %v4930_v26 = vpop.eup %4929 }
0x1267   :  { %v2203_v28 = vsel %vm835_vm4, %v4930_v26, 0.0 }
0x1268   :  { %2204 = vadd.xlane.f32.xlu1 %v2203_v28 }
0x126a   :  { %v4932_v30 = vpop.eup %4931 }
0x126b   :  { %v2206_v35 = vsel %vm835_vm4, %v4932_v30, 0.0 }
0x126c   :  { %2207 = vadd.xlane.f32.xlu1 %v2206_v35 }
0x126e   :  { %v4934_v36 = vpop.eup %4933 }
0x126f   :  { %v2209_v37 = vsel %vm835_vm4, %v4934_v36, 0.0  ;;  %v4936_v38 = vpop.eup %4935 }
0x1270   :  { %2210 = vadd.xlane.f32.xlu1 %v2209_v37  ;;  %v2212_v39 = vsel %vm835_vm4, %v4936_v38, 0.0 }
0x1274   :  { %2213 = vadd.xlane.f32.xlu1 %v2212_v39 }
0x12f5   :  { %v2205_v44 = vpop.xlane.xlu1 %2204 }
0x12f6   :  { %4937 = vrcp.f32 %v2205_v44 }
0x12f9   :  { %v2208_v46 = vpop.xlane.xlu1 %2207 }
0x12fa   :  { %4939 = vrcp.f32 %v2208_v46 }
0x12fd   :  { %v2211_v47 = vpop.xlane.xlu1 %2210 }
0x12fe   :  { %4941 = vrcp.f32 %v2211_v47 }
0x1300   :  { %v4938_v48 = vpop.eup %4937 }
0x1301   :  { %v2214_v49 = vpop.xlane.xlu1 %2213  ;;  %v2219_v50 = vmul.f32 %v4938_v48, %v4930_v26 }
0x1302   :  { %4943 = vrcp.f32 %v2214_v49 }
0x1303   :  { %4384 = vmatprep.mubr.msk.f32.mxu0 %vm835_vm4, %v2219_v50 }
0x1304   :  { %v4940_v53 = vpop.eup %4939 }
0x1305   :  { %v2220_v54 = vmul.f32 %v4940_v53, %v4932_v30  ;;  %v2326_v53 = vld [vmem:[#allocation33] sm:$0x1] }
0x1307   :  { %4385 = vmatmul.mubr.msk.f32.vlgmr.msra.gmra.mrb[12].mxu0 %vm835_vm4, %v2220_v54 }
0x1308   :  { %v4942_v3 = vpop.eup %4941  ;;  %4583 = vmatpush3.bf16.msra.mxu0 %v4580_v43 }
0x1309   :  { %v2221_v56 = vmul.f32 %v4942_v3, %v4934_v36  ;;  %4585 = vmatprep.subr.bf16.mxu0 %v4584_v55 }
0x130b   :  { %4387 = vmatprep.mubr.msk.f32.mxu0 %vm835_vm4, %v2221_v56 }
0x130c   :  { %v4944_v57 = vpop.eup %4943  ;;  %4587 = vmatpush3.bf16.msra.mxu0 %v4584_v55 }
0x130d   :  { %v2222_v58 = vmul.f32 %v4944_v57, %v4936_v38 }
0x130f   :  { %4388 = vmatmul.mubr.msk.f32.gmra.mrb[14].mxu0 %vm835_vm4, %v2222_v58 }
0x1310   :  { %4398 = vmatprep.mubr.msk.f32.mxu0 %vm835_vm4, %v1567_v4  ;;  %v2504_v4 = vld [vmem:[%s6964_s25 + $0x10] sm:$0xff] }
0x1311   :  { %v4590_v31 = vpack.c.bf16 %v2504_v4, %v2502_v6 }
0x1313   :  { %4399 = vmatmul.mubr.msk.f32.vlgmr.msra.gmra.mrb[16].mxu0 %vm835_vm4, %v1568_v1  ;;  %4591 = vmatpush1.bf16.msra.mxu1 %v4590_v31  ;;  %v2507_v1 = vld [vmem:[%s6964_s25 + $0x28] sm:$0xff] }
0x1314   :  { %4401 = vmatprep.mubr.msk.f32.mxu0 %vm835_vm4, %v1569_v8  ;;  %v4592_v8 = vpack.c.bf16 %v2509_v62, %v2507_v1 }
0x1316   :  { %4593 = vmatprep.subr.bf16.mxu1 %v4592_v8 }
0x1317   :  { %4402 = vmatmul.mubr.msk.f32.gmra.mrb[18].mxu0 %vm835_vm4, %v1570_v34  ;;  %v2508_v34 = vld [vmem:[%s6964_s25 + $0x30] sm:$0xff] }
0x1318   :  { %v4594_v60 = vpack.c.bf16 %v2508_v34, %v2506_v33 }
0x131a   :  { %4595 = vmatpush1.bf16.msra.mxu1 %v4594_v60 }
0x131b   :  { %4597 = vmatprep.subr.bf16.mxu1 %v4596_v63 }
0x131e   :  { %4599 = vmatpush1.bf16.msra.mxu1 %v4598_v9 }
0x131f   :  { %4601 = vmatprep.subr.bf16.mxu1 %v4600_v12  ;;  %v4061_v12 = vld [vmem:[#allocation35] ss:$0 sm:$0xff] }
0x1322   :  { %4603 = vmatpush1.bf16.msra.mxu1 %v4602_v15  ;;  %v4063_v15 = vld [vmem:[#allocation39] ss:$0 sm:$0xff] }
0x13da   :  { %v4386_v18 = vpop.f32.mrb[12].mxu0 }
0x13db   :  { %v2313_v19 = vadd.f32 %v4386_v18, %v4056_v17  ;;  %v2307_v20 = vpop.f32.mrb[13].mxu0 }
0x13dc   :  { %v2308_v22 = vadd.f32 %v4056_v17, %v2307_v20  ;;  %v4062_v20 = vld [vmem:[#allocation36] ss:$0 sm:$0xff] }
0x13dd   :  { %v2330_v24 = vsel %vm1911_vm3, %v2313_v19, 0.0 }
0x13de   :  { %v2329_v25 = vsel %vm1911_vm3, %v2308_v22, 0.0 }
0x13df   :  { %v2331_v26 = vadd.f32 %v2330_v24, %v2329_v25 }
0x13e2   :  { %v4389_v28 = vpop.f32.mrb[14].mxu0 }
0x13e3   :  { %v2317_v30 = vpop.f32.mrb[15].mxu0  ;;  %v2323_v35 = vadd.f32 %v4389_v28, %v4056_v17 }
0x13e4   :  { %v2318_v36 = vadd.f32 %v4056_v17, %v2317_v30 }
0x13e5   :  { %v2334_v42 = vsel %vm1911_vm3, %v2323_v35, 0.0 }
0x13e6   :  { %v2332_v37 = vsel %vm1911_vm3, %v2318_v36, 0.0  ;;  %v4400_v38 = vpop.f32.mrb[16].mxu0 }
0x13e7   :  { %v2333_v39 = vadd.f32 %v2332_v37, %v2331_v26  ;;  %v2475_v41 = vpop.f32.mrb[17].mxu0  ;;  %v2481_v28 = vadd.f32 %v4400_v38, %v4063_v15 }
0x13e8   :  { %v2476_v30 = vadd.f32 %v4063_v15, %v2475_v41 }
0x13e9   :  { %v2335_v43 = vadd.f32 %v2334_v42, %v2333_v39 }
0x13ea   :  { %v4403_v44 = vpop.f32.mrb[18].mxu0 }
0x13eb   :  { %v2336_v46 = vrot.slane %v2335_v43, 4  ;;  %v2485_v47 = vpop.f32.mrb[19].mxu0 }
0x13ed   :  { %v2337_v48 = vadd.f32 %v2336_v46, %v2335_v43 }
0x13ef   :  { %v2338_v49 = vrot.slane %v2337_v48, 2 }
0x13f1   :  { %v2339_v50 = vadd.f32 %v2338_v49, %v2337_v48 }
0x13f3   :  { %v2340_v51 = vrot.slane %v2339_v50, 1 }
0x13f5   :  { %v2341_v52 = vadd.f32 %v2340_v51, %v2339_v50 }
0x13f7   :  { %v2342_v54 = vmul.f32 0.03125, %v2341_v52 }
0x13f9   :  { %v2343_v55 = vmul.f32 %v2342_v54, %v2326_v53 }
0x13fb   :  { %v2348_v3 = vrot.slane %v2343_v55, %v6408_v23 }
0x13fd   :  { %v2350_v56 = vsub.f32 %v2308_v22, %v2348_v3  ;;  %v2351_v57 = vsub.f32 %v2313_v19, %v2348_v3  ;;  %v2352_v58 = vsub.f32 %v2318_v36, %v2348_v3  ;;  %v2353_v59 = vsub.f32 %v2323_v35, %v2348_v3 }
0x13fe   :  { %v2491_v35 = vadd.f32 %v4403_v44, %v4063_v15  ;;  %v2486_v36 = vadd.f32 %v4063_v15, %v2485_v47  ;;  %v5929_v47 = vmov 1  }
0x13ff   :  { %v2354_v5 = vmul.f32 %v2350_v56, %v2350_v56  ;;  %v2355_v32 = vmul.f32 %v2351_v57, %v2351_v57  ;;  %v2356_v6 = vmul.f32 %v2352_v58, %v2352_v58  ;;  %v2357_v4 = vmul.f32 %v2353_v59, %v2353_v59  ;;  %4869 = vset.pattern.permute.xlu1 %v5929_v47 }
0x1400   :  { %v2380_v13 = vmul.f32 %v4061_v12, %v2352_v58  ;;  %v2379_v14 = vmul.f32 %v4061_v12, %v2351_v57  ;;  %v2378_v17 = vmul.f32 %v4061_v12, %v2350_v56  ;;  %v2381_v18 = vmul.f32 %v4061_v12, %v2353_v59 }
0x1401   :  { %v2358_v31 = vsel %vm1911_vm3, %v2354_v5, 0.0  ;;  %v2359_v1 = vsel %vm1911_vm3, %v2355_v32, 0.0  ;;  %v2361_v8 = vsel %vm1911_vm3, %v2356_v6, 0.0  ;;  %v2363_v34 = vsel %vm1911_vm3, %v2357_v4, 0.0 }
0x1402   :  { %v2360_v62 = vadd.f32 %v2359_v1, %v2358_v31 }
0x1404   :  { %v2362_v33 = vadd.f32 %v2361_v8, %v2360_v62 }
0x1406   :  { %v2364_v60 = vadd.f32 %v2363_v34, %v2362_v33 }
0x1408   :  { %v2365_v7 = vrot.slane %v2364_v60, 4 }
0x140a   :  { %v2366_v61 = vadd.f32 %v2365_v7, %v2364_v60 }
0x140c   :  { %v2367_v63 = vrot.slane %v2366_v61, 2 }
0x140e   :  { %v2368_v0 = vadd.f32 %v2367_v63, %v2366_v61 }
0x1410   :  { %v2369_v2 = vrot.slane %v2368_v0, 1 }
0x1412   :  { %v2370_v9 = vadd.f32 %v2369_v2, %v2368_v0 }
0x1414   :  { %v2371_v10 = vmul.f32 0.03125, %v2370_v9 }
0x1416   :  { %v2382_v11 = vadd.f32 1e-05, %v2371_v10 }
0x1418   :  { %4945 = vrsqrt.f32 %v2382_v11 }
0x1422   :  { %v4946_v19 = vpop.eup %4945 }
0x1423   :  { %v2385_v22 = vmul.f32 %v4946_v19, %v2379_v14  ;;  %v2384_v24 = vmul.f32 %v4946_v19, %v2378_v17  ;;  %v2387_v25 = vmul.f32 %v4946_v19, %v2381_v18  ;;  %v2386_v26 = vmul.f32 %v4946_v19, %v2380_v13 }
0x1425   :  { %v2395_v37 = vadd.f32 %v4062_v20, %v2385_v22  ;;  %v2394_v39 = vadd.f32 %v4062_v20, %v2384_v24  ;;  %v2397_v42 = vadd.f32 %v4062_v20, %v2387_v25  ;;  %v2396_v43 = vadd.f32 %v4062_v20, %v2386_v26 }
0x1427   :  { %v6639_v46 = vadd.f32 %v2481_v28, %v2395_v37  ;;  %v6641_v48 = vadd.f32 %v2476_v30, %v2394_v39  ;;  %v6643_v49 = vadd.f32 %v2491_v35, %v2397_v42  ;;  %v6645_v50 = vadd.f32 %v2486_v36, %v2396_v43 }
0x1429   :  { %v2498_v51 = vmax.f32 %v6641_v48, 0.0  ;;  %v2499_v38 = vmax.f32 %v6639_v46, 0.0  ;;  %v2500_v41 = vmax.f32 %v6645_v50, 0.0  ;;  %v2501_v44 = vmax.f32 %v6643_v49, 0.0  ;;  %v3497_v48 = vld [vmem:[%s6968_s8 + $0x8] sm:$0xff]  ;;  %v3503_v50 = vld [vmem:[%s6968_s8 + $0x38] sm:$0xff] }
0x142a   :  { %v3500_v49 = vld [vmem:[%s6968_s8 + $0x20] sm:$0xff] }
0x142b   :  { %4068 = vmatmul.mubr.msk.f32.vlgmr.msra.gmra.mrb[20].mxu1 %vm1911_vm3, %v2498_v51 }
0x142c   :  { %2601 = vmatprep.mubr.f32.mxu1 %v5928_v16 }
0x142f   :  { %4069 = vmatmul.mubr.msk.f32.gmra.mrb[22].mxu1 %vm1911_vm3, %v2499_v38 }
0x1430   :  { %2607 = vmatprep.mubr.f32.mxu1 %v5928_v16 }
0x1433   :  { %4070 = vmatmul.mubr.msk.f32.gmra.mrb[24].mxu1 %vm1911_vm3, %v2500_v41 }
0x1434   :  { %2613 = vmatprep.mubr.f32.mxu1 %v5928_v16 }
0x1437   :  { %4071 = vmatmul.mubr.msk.f32.gmra.mrb[26].mxu1 %vm1911_vm3, %v2501_v44 }
0x14fe   :  { %v2597_v52 = vpop.f32.mrb[20].mxu1 }
0x14ff   :  { %v2599_v53 = vpop.f32.mrb[21].mxu1 }
0x1500   :  { %2620 = vxpose.xlu0.b32.start [1/4] (short) (narrow) %v2599_v53, 8  ;;  %2654 = vperm.xlu1 %4869, %v2599_v53  }
0x1502   :  { %v2603_v54 = vpop.f32.mrb[22].mxu1 }
0x1503   :  { %v4604_v55 = vpack.c.bf16 %v2603_v54, %v2597_v52  ;;  %v2605_v3 = vpop.f32.mrb[23].mxu1 }
0x1504   :  { %2621 = vxpose.xlu0.b32.cont [2/4] (short) (narrow) %v2605_v3, 8  ;;  %2659 = vperm.xlu1 %4869, %v2605_v3  }
0x1505   :  { %4605 = vmatprep.subr.bf16.mxu0 %v4604_v55 }
0x1506   :  { %v2609_v56 = vpop.f32.mrb[24].mxu1  ;;  %4607 = vmatpush3.bf16.msra.mxu0 %v4604_v55 }
0x1507   :  { %v2611_v57 = vpop.f32.mrb[25].mxu1 }
0x1508   :  { %2622 = vxpose.xlu0.b32.cont [3/4] (short) (narrow) %v2611_v57, 8  ;;  %2664 = vperm.xlu1 %4869, %v2611_v57  }
0x150a   :  { %v2615_v58 = vpop.f32.mrb[26].mxu1 }
0x150b   :  { %v4608_v59 = vpack.c.bf16 %v2615_v58, %v2609_v56  ;;  %v2617_v5 = vpop.f32.mrb[27].mxu1 }
0x150c   :  { %2623 = vxpose.xlu0.b32.end [4/4] (short) (narrow) %v2617_v5, 8  ;;  %2669 = vperm.xlu1 %4869, %v2617_v5  }
0x150d   :  { %4609 = vmatprep.subr.bf16.mxu0 %v4608_v59 }
0x150e   :  { %4611 = vmatpush3.bf16.msra.mxu0 %v4608_v59 }
0x157f   :  { %v2655_v32 = vpop.permute.xlu1 %2654 }
0x1580   :  { %v2636_v6 = vpop.trf.xlu0 }
0x1581   :  { %v2675_v4 = vrot.slane %v2636_v6, %v6408_v23 }
0x1583   :  { %v2660_v31 = vpop.permute.xlu1 %2659  ;;  %v2676_v1 = vadd.f32 %v2675_v4, %v2655_v32 }
0x1584   :  { %v2677_v62 = vadd.f32 %v2675_v4, %v2660_v31 }
0x1585   :  { %vm2680_vm12 = vcmp.gt.f32.partialorder %v2676_v1, 0.0  ;;  %v2684_v8 = vmul.f32 0.2, %v2676_v1 }
0x1586   :  { %v2685_v33 = vmul.f32 0.2, %v2677_v62  ;;  %vm2681_vm13 = vcmp.gt.f32.partialorder %v2677_v62, 0.0 }
0x1587   :  { %v2665_v34 = vpop.permute.xlu1 %2664  ;;  %v2688_v60 = vsel %vm2680_vm12, %v2676_v1, %v2684_v8 }
0x1588   :  { %v2678_v7 = vadd.f32 %v2675_v4, %v2665_v34  ;;  %v2692_v61 = vsel %vm638_vm1, %v2688_v60, -1e+30  ;;  %v2689_v63 = vsel %vm2681_vm13, %v2677_v62, %v2685_v33 }
0x1589   :  { %v2696_v0 = vsel %vm835_vm4, %v2692_v61, -inf  ;;  %v2693_v9 = vsel %vm639_vm5, %v2689_v63, -1e+30 }
0x158a   :  { %v2686_v2 = vmul.f32 0.2, %v2678_v7  ;;  %2697 = vmax.xlane.f32.xlu1 %v2696_v0  ;;  %vm2682_vm14 = vcmp.gt.f32.partialorder %v2678_v7, 0.0  ;;  %v2699_v13 = vsel %vm835_vm4, %v2693_v9, -inf  ;;  %v2911_v0 = vld [vmem:[%s6965_s24] sm:$0xff] }
0x158b   :  { %v2670_v10 = vpop.permute.xlu1 %2669 }
0x158c   :  { %v2679_v11 = vadd.f32 %v2675_v4, %v2670_v10  ;;  %v2690_v12 = vsel %vm2682_vm14, %v2678_v7, %v2686_v2  ;;  %v2912_v7 = vld [vmem:[%s6965_s24 + $0x8] sm:$0xff]  ;;  %v2913_v2 = vld [vmem:[%s6965_s24 + $0x10] sm:$0xff] }
0x158d   :  { %v2694_v15 = vsel %vm640_vm7, %v2690_v12, -1e+30  ;;  %v2916_v10 = vld [vmem:[%s6965_s24 + $0x28] sm:$0xff] }
0x158e   :  { %v2687_v14 = vmul.f32 0.2, %v2679_v11  ;;  %2700 = vmax.xlane.f32.xlu1 %v2699_v13  ;;  %vm2683_vm15 = vcmp.gt.f32.partialorder %v2679_v11, 0.0  ;;  %v2702_v18 = vsel %vm835_vm4, %v2694_v15, -inf  ;;  %v2915_v13 = vld [vmem:[%s6965_s24 + $0x20] sm:$0xff] }
0x1590   :  { %v2691_v17 = vsel %vm2683_vm15, %v2679_v11, %v2687_v14  ;;  %v2918_v11 = vld [vmem:[%s6965_s24 + $0x38] sm:$0xff]  ;;  %v2917_v14 = vld [vmem:[%s6965_s24 + $0x30] sm:$0xff] }
0x1591   :  { %v2695_v19 = vsel %vm641_vm9, %v2691_v17, -1e+30  ;;  %v4616_v12 = vpack.c.bf16 %v2918_v11, %v2916_v10  ;;  %v2920_v17 = vld [vmem:[%s6965_s24 + $0x48] sm:$0xff] }
0x1592   :  { %2703 = vmax.xlane.f32.xlu1 %v2702_v18  ;;  %v2705_v20 = vsel %vm835_vm4, %v2695_v19, -inf  ;;  %v2922_v18 = vld [vmem:[%s6965_s24 + $0x58] sm:$0xff] }
0x1596   :  { %2706 = vmax.xlane.f32.xlu1 %v2705_v20  ;;  %v2919_v20 = vld [vmem:[%s6965_s24 + $0x40] sm:$0xff] }
0x1617   :  { %v2698_v22 = vpop.xlane.xlu1 %2697 }
0x1618   :  { %v2708_v24 = vsub.f32 %v2692_v61, %v2698_v22  ;;  %v2914_v61 = vld [vmem:[%s6965_s24 + $0x18] sm:$0xff]  ;;  %v2921_v22 = vld [vmem:[%s6965_s24 + $0x50] sm:$0xff] }
0x1619   :  { %v4612_v63 = vpack.c.bf16 %v2914_v61, %v2912_v7  ;;  %v4072_v7 = vld [vmem:[#allocation41] ss:$0 sm:$0xff] }
0x161a   :  { %v2712_v25 = vmul.f32 1.442695, %v2708_v24  ;;  %v4622_v24 = vpack.c.bf16 %v2921_v22, %v2919_v20 }
0x161b   :  { %v2701_v26 = vpop.xlane.xlu1 %2700  ;;  %4613 = vmatprep.subr.bf16.mxu0 %v4612_v63 }
0x161c   :  { %4947 = vpow2.f32 %v2712_v25  ;;  %v2709_v28 = vsub.f32 %v2693_v9, %v2701_v26  ;;  %v4614_v9 = vpack.c.bf16 %v2913_v2, %v2911_v0  ;;  %v2924_v25 = vld [vmem:[%s6965_s24 + $0x68] sm:$0xff]  ;;  %v2926_v26 = vld [vmem:[%s6965_s24 + $0x78] sm:$0xff] }
0x161e   :  { %v2714_v30 = vmul.f32 1.442695, %v2709_v28  ;;  %v4624_v28 = vpack.c.bf16 %v2926_v26, %v2924_v25  ;;  %v2843_v25 = vld [vmem:[%s6966_s13] sm:$0x1] }
0x161f   :  { %v2704_v35 = vpop.xlane.xlu1 %2703 }
0x1620   :  { %4949 = vpow2.f32 %v2714_v30  ;;  %v2710_v36 = vsub.f32 %v2694_v15, %v2704_v35  ;;  %v4618_v15 = vpack.c.bf16 %v2917_v14, %v2915_v13  ;;  %v2923_v30 = vld [vmem:[%s6965_s24 + $0x60] sm:$0xff]  ;;  %v2925_v35 = vld [vmem:[%s6965_s24 + $0x70] sm:$0xff] }
0x1622   :  { %v2716_v37 = vmul.f32 1.442695, %v2710_v36  ;;  %v4626_v36 = vpack.c.bf16 %v2925_v35, %v2923_v30 }
0x1623   :  { %v2707_v39 = vpop.xlane.xlu1 %2706 }
0x1624   :  { %4951 = vpow2.f32 %v2716_v37  ;;  %v2711_v42 = vsub.f32 %v2695_v19, %v2707_v39  ;;  %v4620_v19 = vpack.c.bf16 %v2922_v18, %v2920_v17  ;;  %v2928_v37 = vld [vmem:[%s6965_s24 + $0x88] sm:$0xff]  ;;  %v2930_v39 = vld [vmem:[%s6965_s24 + $0x98] sm:$0xff] }
0x1626   :  { %v4948_v43 = vpop.eup %4947  ;;  %v2718_v52 = vmul.f32 1.442695, %v2711_v42  ;;  %v4628_v42 = vpack.c.bf16 %v2930_v39, %v2928_v37 }
0x1627   :  { %v2720_v53 = vsel %vm835_vm4, %v4948_v43, 0.0 }
0x1628   :  { %4953 = vpow2.f32 %v2718_v52  ;;  %2721 = vadd.xlane.f32.xlu1 %v2720_v53  ;;  %v2929_v52 = vld [vmem:[%s6965_s24 + $0x90] sm:$0xff]  ;;  %v2932_v53 = vld [vmem:[%s6965_s24 + $0xa8] sm:$0xff] }
0x162a   :  { %v4950_v54 = vpop.eup %4949 }
0x162b   :  { %v2723_v55 = vsel %vm835_vm4, %v4950_v54, 0.0 }
0x162c   :  { %2724 = vadd.xlane.f32.xlu1 %v2723_v55  ;;  %v2934_v55 = vld [vmem:[%s6965_s24 + $0xb8] sm:$0xff] }
0x162e   :  { %v4952_v3 = vpop.eup %4951 }
0x162f   :  { %v2726_v56 = vsel %vm835_vm4, %v4952_v3, 0.0 }
0x1630   :  { %2727 = vadd.xlane.f32.xlu0 %v2726_v56  ;;  %v2933_v56 = vld [vmem:[%s6965_s24 + $0xb0] sm:$0xff] }
0x1632   :  { %v4954_v57 = vpop.eup %4953 }
0x1633   :  { %v2729_v58 = vsel %vm835_vm4, %v4954_v57, 0.0 }
0x1634   :  { %2730 = vadd.xlane.f32.xlu1 %v2729_v58  ;;  %v2936_v58 = vld [vmem:[%s6965_s24 + $0xc8] sm:$0xff] }
0x16b5   :  { %v2722_v59 = vpop.xlane.xlu1 %2721 }
0x16b6   :  { %4955 = vrcp.f32 %v2722_v59  ;;  %v2938_v59 = vld [vmem:[%s6965_s24 + $0xd8] sm:$0xff] }
0x16b9   :  { %v2725_v5 = vpop.xlane.xlu1 %2724 }
0x16ba   :  { %4957 = vrcp.f32 %v2725_v5 }
0x16bd   :  { %v2728_v32 = vpop.xlane.xlu0 %2727 }
0x16be   :  { %4959 = vrcp.f32 %v2728_v32  ;;  %v4636_v32 = vpack.c.bf16 %v2938_v59, %v2936_v58 }
0x16c0   :  { %v4956_v6 = vpop.eup %4955 }
0x16c1   :  { %v2731_v4 = vpop.xlane.xlu1 %2730  ;;  %v2736_v31 = vmul.f32 %v4956_v6, %v4948_v43  ;;  %v2927_v43 = vld [vmem:[%s6965_s24 + $0x80] sm:$0xff] }
0x16c2   :  { %4961 = vrcp.f32 %v2731_v4  ;;  %v2935_v6 = vld [vmem:[%s6965_s24 + $0xc0] sm:$0xff]  ;;  %v2937_v4 = vld [vmem:[%s6965_s24 + $0xd0] sm:$0xff] }
0x16c3   :  { %4412 = vmatprep.mubr.msk.f32.mxu0 %vm835_vm4, %v2736_v31  ;;  %v2940_v31 = vld [vmem:[%s6965_s24 + $0xe8] sm:$0xff] }
0x16c4   :  { %v4958_v1 = vpop.eup %4957 }
0x16c5   :  { %v2737_v62 = vmul.f32 %v4958_v1, %v4950_v54  ;;  %v4630_v54 = vpack.c.bf16 %v2929_v52, %v2927_v43  ;;  %v2942_v1 = vld [vmem:[%s6965_s24 + $0xf8] sm:$0xff] }
0x16c7   :  { %4413 = vmatmul.mubr.msk.f32.vlgmr.msra.gmra.mrb[20].mxu0 %vm835_vm4, %v2737_v62  ;;  %v4638_v62 = vpack.c.bf16 %v2937_v4, %v2935_v6 }
0x16c8   :  { %v4960_v8 = vpop.eup %4959  ;;  %4615 = vmatpush1.bf16.msra.mxu0 %v4614_v9 }
0x16c9   :  { %v2738_v33 = vmul.f32 %v4960_v8, %v4952_v3  ;;  %4617 = vmatprep.subr.bf16.mxu0 %v4616_v12  ;;  %v2931_v3 = vld [vmem:[%s6965_s24 + $0xa0] sm:$0xff]  ;;  %v4640_v8 = vpack.c.bf16 %v2942_v1, %v2940_v31 }
0x16ca   :  { %v4634_v5 = vpack.c.bf16 %v2933_v56, %v2931_v3  ;;  %v4077_v31 = vld [vmem:[#allocation42] ss:$0 sm:$0xff] }
0x16cb   :  { %4415 = vmatprep.mubr.msk.f32.mxu0 %vm835_vm4, %v2738_v33  ;;  %v2939_v33 = vld [vmem:[%s6965_s24 + $0xe0] sm:$0xff] }
0x16cc   :  { %v4962_v34 = vpop.eup %4961  ;;  %4619 = vmatpush1.bf16.msra.mxu0 %v4618_v15 }
0x16cd   :  { %v2739_v60 = vmul.f32 %v4962_v34, %v4954_v57  ;;  %4621 = vmatprep.subr.bf16.mxu0 %v4620_v19  ;;  %v4632_v57 = vpack.c.bf16 %v2934_v55, %v2932_v53  ;;  %v2941_v34 = vld [vmem:[%s6965_s24 + $0xf0] sm:$0xff] }
0x16cf   :  { %4416 = vmatmul.mubr.msk.f32.gmra.mrb[22].mxu0 %vm835_vm4, %v2739_v60  ;;  %v4642_v60 = vpack.c.bf16 %v2941_v34, %v2939_v33 }
0x16d0   :  { %3008 = vmatprep.mubr.f32.mxu0 %v5928_v16  ;;  %4623 = vmatpush1.bf16.msra.mxu0 %v4622_v24 }
0x16d1   :  { %4625 = vmatprep.subr.bf16.mxu0 %v4624_v28 }
0x16d4   :  { %4627 = vmatpush1.bf16.msra.mxu0 %v4626_v36 }
0x16d5   :  { %4629 = vmatprep.subr.bf16.mxu0 %v4628_v42 }
0x16d8   :  { %4631 = vmatpush1.bf16.msra.mxu0 %v4630_v54 }
0x16d9   :  { %4633 = vmatprep.subr.bf16.mxu0 %v4632_v57 }
0x16dc   :  { %4635 = vmatpush1.bf16.msra.mxu0 %v4634_v5 }
0x16dd   :  { %4637 = vmatprep.subr.bf16.mxu0 %v4636_v32 }
0x16e0   :  { %4639 = vmatpush1.bf16.msra.mxu0 %v4638_v62 }
0x16e1   :  { %4641 = vmatprep.subr.bf16.mxu0 %v4640_v8 }
0x16e4   :  { %4643 = vmatpush1.bf16.msra.mxu0 %v4642_v60  ;;  %v4078_v60 = vld [vmem:[#allocation44] ss:$0 sm:$0xff] }
0x179a   :  { %v4414_v61 = vpop.f32.mrb[20].mxu0 }
0x179b   :  { %v2830_v63 = vadd.f32 %v4414_v61, %v4072_v7  ;;  %v2824_v0 = vpop.f32.mrb[21].mxu0 }
0x179c   :  { %v2825_v2 = vadd.f32 %v4072_v7, %v2824_v0 }
0x179e   :  { %v2846_v9 = vadd.f32 %v2830_v63, %v2825_v2 }
0x17a2   :  { %v4417_v10 = vpop.f32.mrb[22].mxu0 }
0x17a3   :  { %v2834_v11 = vpop.f32.mrb[23].mxu0  ;;  %v2840_v13 = vadd.f32 %v4417_v10, %v4072_v7 }
0x17a4   :  { %v2835_v12 = vadd.f32 %v4072_v7, %v2834_v11 }
0x17a6   :  { %v2847_v14 = vadd.f32 %v2846_v9, %v2835_v12 }
0x17a8   :  { %v2848_v15 = vadd.f32 %v2847_v14, %v2840_v13 }
0x17aa   :  { %v2849_v17 = vrot.slane %v2848_v15, 4 }
0x17ac   :  { %v2850_v18 = vadd.f32 %v2849_v17, %v2848_v15 }
0x17ae   :  { %v2851_v19 = vrot.slane %v2850_v18, 2 }
0x17b0   :  { %v2852_v20 = vadd.f32 %v2851_v19, %v2850_v18 }
0x17b2   :  { %v2853_v22 = vrot.slane %v2852_v20, 1 }
0x17b4   :  { %v2854_v24 = vadd.f32 %v2853_v22, %v2852_v20 }
0x17b6   :  { %v2855_v26 = vmul.f32 0.03125, %v2854_v24 }
0x17b8   :  { %v2856_v28 = vmul.f32 %v2855_v26, %v2843_v25 }
0x17ba   :  { %v2861_v30 = vrot.slane %v2856_v28, %v6408_v23 }
0x17bc   :  { %v2863_v35 = vsub.f32 %v2825_v2, %v2861_v30  ;;  %v2864_v36 = vsub.f32 %v2830_v63, %v2861_v30  ;;  %v2865_v37 = vsub.f32 %v2835_v12, %v2861_v30  ;;  %v2866_v39 = vsub.f32 %v2840_v13, %v2861_v30 }
0x17be   :  { %v2867_v42 = vmul.f32 %v2863_v35, %v2863_v35  ;;  %v2868_v43 = vmul.f32 %v2864_v36, %v2864_v36  ;;  %v2869_v52 = vmul.f32 %v2865_v37, %v2865_v37  ;;  %v2870_v54 = vmul.f32 %v2866_v39, %v2866_v39 }
0x17bf   :  { %v2887_v1 = vmul.f32 %v4077_v31, %v2863_v35  ;;  %v2889_v62 = vmul.f32 %v4077_v31, %v2865_v37  ;;  %v2888_v8 = vmul.f32 %v4077_v31, %v2864_v36  ;;  %v2890_v33 = vmul.f32 %v4077_v31, %v2866_v39 }
0x17c0   :  { %v2871_v53 = vadd.f32 %v2868_v43, %v2867_v42 }
0x17c2   :  { %v2872_v55 = vadd.f32 %v2871_v53, %v2869_v52 }
0x17c4   :  { %v2873_v3 = vadd.f32 %v2872_v55, %v2870_v54 }
0x17c6   :  { %v2874_v56 = vrot.slane %v2873_v3, 4 }
0x17c8   :  { %v2875_v57 = vadd.f32 %v2874_v56, %v2873_v3 }
0x17ca   :  { %v2876_v58 = vrot.slane %v2875_v57, 2 }
0x17cc   :  { %v2877_v59 = vadd.f32 %v2876_v58, %v2875_v57 }
0x17ce   :  { %v2878_v5 = vrot.slane %v2877_v59, 1 }
0x17d0   :  { %v2879_v32 = vadd.f32 %v2878_v5, %v2877_v59 }
0x17d2   :  { %v2880_v6 = vmul.f32 0.03125, %v2879_v32 }
0x17d4   :  { %v2891_v4 = vadd.f32 1e-05, %v2880_v6 }
0x17d6   :  { %4963 = vrsqrt.f32 %v2891_v4 }
0x17e0   :  { %v4964_v34 = vpop.eup %4963 }
0x17e1   :  { %v2893_v7 = vmul.f32 %v4964_v34, %v2887_v1  ;;  %v2894_v61 = vmul.f32 %v4964_v34, %v2888_v8  ;;  %v2895_v63 = vmul.f32 %v4964_v34, %v2889_v62  ;;  %v2896_v0 = vmul.f32 %v4964_v34, %v2890_v33 }
0x17e3   :  { %v2903_v2 = vadd.f32 %v4078_v60, %v2893_v7  ;;  %v2904_v10 = vadd.f32 %v4078_v60, %v2894_v61  ;;  %v2905_v12 = vadd.f32 %v4078_v60, %v2895_v63  ;;  %v2906_v14 = vadd.f32 %v4078_v60, %v2896_v0 }
0x17e5   :  { %v2907_v9 = vmax.f32 %v2903_v2, 0.0  ;;  %v2908_v11 = vmax.f32 %v2904_v10, 0.0  ;;  %v2909_v13 = vmax.f32 %v2905_v12, 0.0  ;;  %v2910_v15 = vmax.f32 %v2906_v14, 0.0 }
0x17e7   :  { %3009 = vmatmul.mubr.f32.vlgmr.msra.gmra.mrb[24].mxu0 %v2907_v9 }
0x17e8   :  { %3014 = vmatprep.mubr.f32.mxu0 %v5928_v16 }
0x17eb   :  { %3015 = vmatmul.mubr.f32.gmra.mrb[26].mxu0 %v2908_v11 }
0x17ec   :  { %3020 = vmatprep.mubr.f32.mxu0 %v5928_v16 }
0x17ef   :  { %3021 = vmatmul.mubr.f32.gmra.mrb[28].mxu0 %v2909_v13 }
0x17f0   :  { %3026 = vmatprep.mubr.f32.mxu0 %v5928_v16 }
0x17f3   :  { %3027 = vmatmul.mubr.f32.gmra.mrb[30].mxu0 %v2910_v15 }
0x17f4   :  { %3616 = vmatprep.mubr.f32.mxu0 %v5928_v16 }
0x18ba   :  { %v3010_v17 = vpop.f32.mrb[24].mxu0 }
0x18bb   :  { %v3012_v18 = vpop.f32.mrb[25].mxu0 }
0x18bc   :  { %3067 = vperm.xlu1 %4869, %v3012_v18  }
0x18be   :  { %v3016_v19 = vpop.f32.mrb[26].mxu0 }
0x18bf   :  { %v4644_v20 = vpack.c.bf16 %v3016_v19, %v3010_v17  ;;  %v3018_v22 = vpop.f32.mrb[27].mxu0 }
0x18c0   :  { %3072 = vperm.xlu1 %4869, %v3018_v22  }
0x18c1   :  { %4645 = vmatprep.subr.bf16.mxu1 %v4644_v20 }
0x18c2   :  { %v3022_v24 = vpop.f32.mrb[28].mxu0  ;;  %4647 = vmatpush3.bf16.msra.mxu1 %v4644_v20 }
0x18c3   :  { %v3024_v25 = vpop.f32.mrb[29].mxu0 }
0x18c4   :  { %3077 = vperm.xlu1 %4869, %v3024_v25  }
0x18c6   :  { %v3028_v26 = vpop.f32.mrb[30].mxu0 }
0x18c7   :  { %v4648_v28 = vpack.c.bf16 %v3028_v26, %v3022_v24  ;;  %v3030_v30 = vpop.f32.mrb[31].mxu0  ;;  %v3321_v24 = vld [vmem:[#allocation51 + $0x8] sm:$0xff]  ;;  %v3429_v26 = vld [vmem:[%s6967_s28 + $0x8] sm:$0xff] }
0x18c8   :  { %3082 = vperm.xlu1 %4869, %v3030_v30  }
0x18c9   :  { %4649 = vmatprep.subr.bf16.mxu1 %v4648_v28 }
0x18ca   :  { %4651 = vmatpush3.bf16.msra.mxu1 %v4648_v28  ;;  %v5930_v28 = vmov 0  }
0x18cb   :  { %4870 = vset.pattern.permute.xlu0 %v5930_v28 }
0x18f1   :  { %3033 = vxpose.xlu1.b32.start [1/4] (short) (narrow) %v3012_v18, 8 }
0x18f5   :  { %3034 = vxpose.xlu1.b32.cont [2/4] (short) (narrow) %v3018_v22, 8  ;;  %v3320_v22 = vld [vmem:[#allocation51] sm:$0xff] }
0x18f9   :  { %3035 = vxpose.xlu1.b32.cont [3/4] (short) (narrow) %v3024_v25, 8  ;;  %v4652_v25 = vpack.c.bf16 %v3321_v24, %v3320_v22  ;;  %v3516_v24 = vld [vmem:[%s6968_s8 + $0xa0] sm:$0xff] }
0x18fb   :  { %4653 = vmatprep.subr.bf16.mxu1 %v4652_v25 }
0x18fd   :  { %3036 = vxpose.xlu1.b32.end [4/4] (short) (narrow) %v3030_v30, 8  ;;  %v3428_v30 = vld [vmem:[%s6967_s28] sm:$0xff] }
0x191b   :  { %4871 = vset.pattern.permute.xlu1 %v5930_v28 }
0x191c   :  { %3439 = vperm.xlu1 %4871, %v3429_v26  }
0x193b   :  { %v3068_v35 = vpop.permute.xlu1 %3067 }
0x193f   :  { %v3073_v36 = vpop.permute.xlu1 %3072 }
0x1943   :  { %v3078_v37 = vpop.permute.xlu1 %3077 }
0x1947   :  { %v3083_v39 = vpop.permute.xlu1 %3082 }
0x1971   :  { %v3049_v42 = vpop.trf.xlu1 }
0x1972   :  { %v3088_v43 = vrot.slane %v3049_v42, %v6408_v23 }
0x1974   :  { %v3089_v52 = vadd.f32 %v3088_v43, %v3068_v35  ;;  %v3090_v53 = vadd.f32 %v3088_v43, %v3073_v36  ;;  %v3091_v54 = vadd.f32 %v3088_v43, %v3078_v37  ;;  %v3092_v59 = vadd.f32 %v3088_v43, %v3083_v39  ;;  %v3430_v35 = vld [vmem:[%s6967_s28 + $0x10] sm:$0xff]  ;;  %v3431_v36 = vld [vmem:[%s6967_s28 + $0x18] sm:$0xff] }
0x1975   :  { %3444 = vperm.xlu1 %4871, %v3430_v35  }
0x1976   :  { %vm3093_vm0 = vcmp.gt.f32.partialorder %v3089_v52, 0.0  ;;  %v3097_v55 = vmul.f32 0.2, %v3089_v52  ;;  %vm3094_vm2 = vcmp.gt.f32.partialorder %v3090_v53, 0.0  ;;  %v3098_v3 = vmul.f32 0.2, %v3090_v53 }
0x1977   :  { %v3099_v58 = vmul.f32 0.2, %v3091_v54  ;;  %vm3095_vm6 = vcmp.gt.f32.partialorder %v3091_v54, 0.0  ;;  %v3100_v31 = vmul.f32 0.2, %v3092_v59  ;;  %vm3096_vm8 = vcmp.gt.f32.partialorder %v3092_v59, 0.0 }
0x1978   :  { %v3101_v56 = vsel %vm3093_vm0, %v3089_v52, %v3097_v55  ;;  %v3102_v57 = vsel %vm3094_vm2, %v3090_v53, %v3098_v3  ;;  %v3323_v55 = vld [vmem:[#allocation51 + $0x18] sm:$0xff] }
0x1979   :  { %v3105_v5 = vsel %vm638_vm1, %v3101_v56, -1e+30  ;;  %v3106_v6 = vsel %vm639_vm5, %v3102_v57, -1e+30  ;;  %v3103_v4 = vsel %vm3095_vm6, %v3091_v54, %v3099_v58  ;;  %v3104_v8 = vsel %vm3096_vm8, %v3092_v59, %v3100_v31  ;;  %4872 = vset.pattern.permute.xlu1 %v5929_v47  ;;  %v3322_v54 = vld [vmem:[#allocation51 + $0x10] sm:$0xff]  ;;  %v3324_v57 = vld [vmem:[#allocation51 + $0x20] sm:$0xff] }
0x197a   :  { %v3109_v32 = vsel %vm835_vm4, %v3105_v5, -inf  ;;  %v3112_v1 = vsel %vm835_vm4, %v3106_v6, -inf  ;;  %v3107_v62 = vsel %vm640_vm7, %v3103_v4, -1e+30  ;;  %v3108_v33 = vsel %vm641_vm9, %v3104_v8, -1e+30  ;;  %3466 = vperm.xlu1 %4872, %v3428_v30  }
0x197b   :  { %3110 = vmax.xlane.f32.xlu0 %v3109_v32  ;;  %v3115_v27 = vsel %vm835_vm4, %v3107_v62, -inf  ;;  %v3118_v34 = vsel %vm835_vm4, %v3108_v33, -inf  ;;  %v4656_v56 = vpack.c.bf16 %v3323_v55, %v3322_v54  ;;  %v3325_v58 = vld [vmem:[#allocation51 + $0x28] sm:$0xff]  ;;  %v3327_v4 = vld [vmem:[#allocation51 + $0x38] sm:$0xff]  ;;  %vm3494_vm1 = vcmask 1040384  }
0x197c   :  { %v4660_v32 = vpack.c.bf16 %v3325_v58, %v3324_v57  ;;  %v3499_v8 = vld [vmem:[%s6968_s8 + $0x18] sm:$0xff]  ;;  %v3526_v54 = vld [vmem:[%s6968_s8 + $0xf0] sm:$0xff]  ;;  %v3638_v58 = vld [vmem:[%s6969_s17] sm:$0xff]  ;;  %vm3930_vm5 = vcmask 50176  }
0x197e   :  { %3474 = vperm.xlu1 %4872, %v3430_v35  }
0x197f   :  { %3113 = vmax.xlane.f32.xlu0 %v3112_v1 }
0x1982   :  { %3478 = vperm.xlu1 %4872, %v3431_v36  }
0x1983   :  { %3116 = vmax.xlane.f32.xlu0 %v3115_v27  ;;  %v3496_v27 = vld [vmem:[%s6968_s8] sm:$0xff] }
0x1987   :  { %3119 = vmax.xlane.f32.xlu0 %v3118_v34 }
0x1a08   :  { %v3111_v29 = vpop.xlane.xlu0 %3110 }
0x1a09   :  { %v3121_v60 = vsub.f32 %v3105_v5, %v3111_v29  ;;  %v3505_v29 = vld [vmem:[%s6968_s8 + $0x48] sm:$0xff] }
0x1a0b   :  { %v3125_v7 = vmul.f32 1.442695, %v3121_v60  ;;  %v3507_v60 = vld [vmem:[%s6968_s8 + $0x58] sm:$0xff] }
0x1a0c   :  { %v3114_v61 = vpop.xlane.xlu0 %3113 }
0x1a0d   :  { %4965 = vpow2.f32 %v3125_v7  ;;  %v3122_v63 = vsub.f32 %v3106_v6, %v3114_v61  ;;  %v3326_v6 = vld [vmem:[#allocation51 + $0x30] sm:$0xff]  ;;  %v4676_v7 = vpack.c.bf16 %v3507_v60, %v3505_v29 }
0x1a0e   :  { %v3504_v61 = vld [vmem:[%s6968_s8 + $0x40] sm:$0xff]  ;;  %v3663_v29 = vld [vmem:[%s6969_s17 + $0xc8] sm:$0xff] }
0x1a0f   :  { %v3127_v0 = vmul.f32 1.442695, %v3122_v63  ;;  %v3506_v63 = vld [vmem:[%s6968_s8 + $0x50] sm:$0xff] }
0x1a10   :  { %v3117_v2 = vpop.xlane.xlu0 %3116 }
0x1a11   :  { %4967 = vpow2.f32 %v3127_v0  ;;  %v3123_v40 = vsub.f32 %v3107_v62, %v3117_v2  ;;  %v4664_v62 = vpack.c.bf16 %v3327_v4, %v3326_v6  ;;  %v4678_v0 = vpack.c.bf16 %v3506_v63, %v3504_v61  ;;  %v3509_v2 = vld [vmem:[%s6968_s8 + $0x68] sm:$0xff]  ;;  %v3657_v6 = vld [vmem:[%s6969_s17 + $0x98] sm:$0xff]  ;;  %v3640_v4 = vld [vmem:[%s6969_s17 + $0x10] sm:$0xff] }
0x1a12   :  { %v3646_v61 = vld [vmem:[%s6969_s17 + $0x40] sm:$0xff]  ;;  %v3647_v63 = vld [vmem:[%s6969_s17 + $0x48] sm:$0xff] }
0x1a13   :  { %v3129_v9 = vmul.f32 1.442695, %v3123_v40  ;;  %v3511_v40 = vld [vmem:[%s6968_s8 + $0x78] sm:$0xff] }
0x1a14   :  { %v3120_v10 = vpop.xlane.xlu0 %3119 }
0x1a15   :  { %4969 = vpow2.f32 %v3129_v9  ;;  %v3124_v11 = vsub.f32 %v3108_v33, %v3120_v10  ;;  %v3498_v33 = vld [vmem:[%s6968_s8 + $0x10] sm:$0xff]  ;;  %v4680_v9 = vpack.c.bf16 %v3511_v40, %v3509_v2  ;;  %v3508_v10 = vld [vmem:[%s6968_s8 + $0x60] sm:$0xff]  ;;  %v3665_v2 = vld [vmem:[%s6969_s17 + $0xd8] sm:$0xff]  ;;  %v4718_v40 = vpack.c.bf16 %v3647_v63, %v3646_v61 }
0x1a16   :  { %v4670_v46 = vpack.c.bf16 %v3498_v33, %v3496_v27  ;;  %v3642_v27 = vld [vmem:[%s6969_s17 + $0x20] sm:$0xff]  ;;  %v3643_v33 = vld [vmem:[%s6969_s17 + $0x28] sm:$0xff]  ;;  %v4086_v61 = vld [vmem:[#allocation53] ss:$0 sm:$0xff] }
0x1a17   :  { %v4966_v12 = vpop.eup %4965  ;;  %v3131_v45 = vmul.f32 1.442695, %v3124_v11  ;;  %v3510_v11 = vld [vmem:[%s6968_s8 + $0x70] sm:$0xff] }
0x1a18   :  { %v3133_v13 = vsel %vm835_vm4, %v4966_v12, 0.0 }
0x1a19   :  { %4971 = vpow2.f32 %v3131_v45  ;;  %3134 = vadd.xlane.f32.xlu0 %v3133_v13  ;;  %v3513_v45 = vld [vmem:[%s6968_s8 + $0x88] sm:$0xff]  ;;  %v3515_v13 = vld [vmem:[%s6968_s8 + $0x98] sm:$0xff] }
0x1a1b   :  { %v4968_v14 = vpop.eup %4967 }
0x1a1c   :  { %v3136_v15 = vsel %vm835_vm4, %v4968_v14, 0.0 }
0x1a1d   :  { %3137 = vadd.xlane.f32.xlu0 %v3136_v15  ;;  %v3512_v15 = vld [vmem:[%s6968_s8 + $0x80] sm:$0xff] }
0x1a1f   :  { %v4970_v17 = vpop.eup %4969 }
0x1a20   :  { %v3139_v18 = vsel %vm835_vm4, %v4970_v17, 0.0 }
0x1a21   :  { %3140 = vadd.xlane.f32.xlu0 %v3139_v18 }
0x1a23   :  { %v4972_v19 = vpop.eup %4971 }
0x1a24   :  { %v3142_v20 = vsel %vm835_vm4, %v4972_v19, 0.0 }
0x1a25   :  { %3143 = vadd.xlane.f32.xlu0 %v3142_v20  ;;  %v3519_v20 = vld [vmem:[%s6968_s8 + $0xb8] sm:$0xff] }
0x1a3b   :  { %3434 = vperm.xlu0 %4870, %v3428_v30   ;;  %v3523_v30 = vld [vmem:[%s6968_s8 + $0xd8] sm:$0xff] }
0x1a3f   :  { %3449 = vperm.xlu0 %4870, %v3431_v36   ;;  %v3520_v36 = vld [vmem:[%s6968_s8 + $0xc0] sm:$0xff] }
0x1a43   :  { %4873 = vset.pattern.permute.xlu0 %v5929_v47 }
0x1a44   :  { %3470 = vperm.xlu0 %4873, %v3429_v26  }
0x1a48   :  { %4874 = vset.pattern.permute.xlu0 %v5930_v28  ;;  %v3521_v28 = vld [vmem:[%s6968_s8 + $0xc8] sm:$0xff] }
0x1a49   :  { %v4692_v35 = vpack.c.bf16 %v3523_v30, %v3521_v28 }
0x1aa6   :  { %v3135_v37 = vpop.xlane.xlu0 %3134 }
0x1aa7   :  { %4973 = vrcp.f32 %v3135_v37  ;;  %v3522_v37 = vld [vmem:[%s6968_s8 + $0xd0] sm:$0xff] }
0x1aaa   :  { %v3138_v39 = vpop.xlane.xlu0 %3137 }
0x1aab   :  { %4975 = vrcp.f32 %v3138_v39  ;;  %v4694_v39 = vpack.c.bf16 %v3522_v37, %v3520_v36 }
0x1aae   :  { %v3141_v42 = vpop.xlane.xlu0 %3140 }
0x1aaf   :  { %4977 = vrcp.f32 %v3141_v42  ;;  %v3525_v42 = vld [vmem:[%s6968_s8 + $0xe8] sm:$0xff] }
0x1ab1   :  { %v4974_v43 = vpop.eup %4973 }
0x1ab2   :  { %v3144_v52 = vpop.xlane.xlu0 %3143  ;;  %v3149_v53 = vmul.f32 %v4974_v43, %v4966_v12  ;;  %v4682_v12 = vpack.c.bf16 %v3510_v11, %v3508_v10  ;;  %v3527_v43 = vld [vmem:[%s6968_s8 + $0xf8] sm:$0xff]  ;;  %v3648_v10 = vld [vmem:[%s6969_s17 + $0x50] sm:$0xff] }
0x1ab3   :  { %4979 = vrcp.f32 %v3144_v52  ;;  %v4696_v52 = vpack.c.bf16 %v3527_v43, %v3525_v42  ;;  %v3649_v11 = vld [vmem:[%s6969_s17 + $0x58] sm:$0xff] }
0x1ab4   :  { %4426 = vmatprep.mubr.msk.f32.mxu1 %vm835_vm4, %v3149_v53  ;;  %v3524_v53 = vld [vmem:[%s6968_s8 + $0xe0] sm:$0xff] }
0x1ab5   :  { %v4976_v47 = vpop.eup %4975  ;;  %v4698_v55 = vpack.c.bf16 %v3526_v54, %v3524_v53  ;;  %v3256_v54 = vld [vmem:[#allocation47] sm:$0x1] }
0x1ab6   :  { %v3150_v3 = vmul.f32 %v4976_v47, %v4968_v14  ;;  %v4684_v14 = vpack.c.bf16 %v3515_v13, %v3513_v45  ;;  %v3530_v47 = vld [vmem:[#allocation2] sm:$0x1]  ;;  %v4079_v45 = vld [vmem:[#allocation45] ss:$0 sm:$0xff] }
0x1ab7   :  { %3533 = vperm.xlu0 %4874, %v3530_v47  }
0x1ab8   :  { %4427 = vmatmul.mubr.msk.f32.vlgmr.msra.gmra.mrb[28].mxu1 %vm835_vm4, %v3150_v3  ;;  %v3654_v3 = vld [vmem:[%s6969_s17 + $0x80] sm:$0xff] }
0x1ab9   :  { %v4978_v59 = vpop.eup %4977  ;;  %4655 = vmatpush3.bf16.msra.mxu1 %v4652_v25  ;;  %v3518_v25 = vld [vmem:[%s6968_s8 + $0xb0] sm:$0xff] }
0x1aba   :  { %4657 = vmatprep.subr.bf16.mxu1 %v4656_v56  ;;  %v3151_v5 = vmul.f32 %v4978_v59, %v4970_v17  ;;  %v3514_v17 = vld [vmem:[%s6968_s8 + $0x90] sm:$0xff]  ;;  %v4690_v26 = vpack.c.bf16 %v3518_v25, %v3516_v24  ;;  %v3639_v59 = vld [vmem:[%s6969_s17 + $0x8] sm:$0xff] }
0x1abb   :  { %v4686_v18 = vpack.c.bf16 %v3514_v17, %v3512_v15 }
0x1abc   :  { %4429 = vmatprep.mubr.msk.f32.mxu1 %vm835_vm4, %v3151_v5  ;;  %v3656_v5 = vld [vmem:[%s6969_s17 + $0x90] sm:$0xff] }
0x1abd   :  { %v4980_v31 = vpop.eup %4979  ;;  %4659 = vmatpush3.bf16.msra.mxu1 %v4656_v56  ;;  %v3655_v56 = vld [vmem:[%s6969_s17 + $0x88] sm:$0xff] }
0x1abe   :  { %4661 = vmatprep.subr.bf16.mxu1 %v4660_v32  ;;  %v3152_v1 = vmul.f32 %v4980_v31, %v4972_v19  ;;  %v3517_v19 = vld [vmem:[%s6968_s8 + $0xa8] sm:$0xff]  ;;  %v4700_v57 = vpack.c.bf16 %v3655_v56, %v3654_v3  ;;  %v3641_v31 = vld [vmem:[%s6969_s17 + $0x18] sm:$0xff] }
0x1abf   :  { %v4688_v22 = vpack.c.bf16 %v3519_v20, %v3517_v19 }
0x1ac0   :  { %4430 = vmatmul.mubr.msk.f32.gmra.mrb[30].mxu1 %vm835_vm4, %v3152_v1  ;;  %v4704_v1 = vpack.c.bf16 %v3657_v6, %v3656_v5  ;;  %vm5932_vm4 = vmmov 0  }
0x1ac1   :  { %4663 = vmatpush3.bf16.msra.mxu1 %v4660_v32  ;;  %4448 = vmatprep.mubr.msk.f32.mxu1 %vm1911_vm3, %v2498_v51  ;;  %v4668_v51 = vpack.c.bf16 %v3499_v8, %v3497_v48  ;;  %v4702_v32 = vpack.c.bf16 %v3639_v59, %v3638_v58  ;;  %v3659_v48 = vld [vmem:[%s6969_s17 + $0xa8] sm:$0xff]  ;;  %v4706_v8 = vpack.c.bf16 %v3641_v31, %v3640_v4 }
0x1ac2   :  { %4665 = vmatprep.subr.bf16.mxu1 %v4664_v62 }
0x1ac3   :  { %4669 = vmatprep.subr.bf16.mxu0 %v4668_v51 }
0x1ac4   :  { %4671 = vmatpush1.bf16.msra.mxu0 %v4670_v46  ;;  %v3660_v46 = vld [vmem:[%s6969_s17 + $0xb0] sm:$0xff] }
0x1ac5   :  { %4667 = vmatpush3.bf16.msra.mxu1 %v4664_v62  ;;  %v3658_v62 = vld [vmem:[%s6969_s17 + $0xa0] sm:$0xff] }
0x1ac6   :  { %4701 = vmatprep.subr.bf16.mxu1 %v4700_v57  ;;  %v4708_v51 = vpack.c.bf16 %v3659_v48, %v3658_v62 }
0x1ac8   :  { %4449 = vmatmul.mubr.msk.f32.vlgmr.msra.gmra.mrb[32].mxu1 %vm1911_vm3, %v2499_v38  ;;  %v3501_v38 = vld [vmem:[%s6968_s8 + $0x28] sm:$0xff] }
0x1ac9   :  { %4451 = vmatprep.mubr.msk.f32.mxu1 %vm1911_vm3, %v2500_v41  ;;  %v4672_v41 = vpack.c.bf16 %v3503_v50, %v3501_v38  ;;  %4703 = vmatpush3.bf16.msra.mxu1 %v4702_v32  ;;  %v3661_v38 = vld [vmem:[%s6969_s17 + $0xb8] sm:$0xff]  ;;  %v4710_v50 = vpack.c.bf16 %v3643_v33, %v3642_v27 }
0x1aca   :  { %4705 = vmatprep.subr.bf16.mxu1 %v4704_v1 }
0x1acb   :  { %4673 = vmatprep.subr.bf16.mxu0 %v4672_v41  ;;  %v4712_v41 = vpack.c.bf16 %v3661_v38, %v3660_v46  ;;  %v3440_v38 = vpop.permute.xlu1 %3439 }
0x1acc   :  { %4452 = vmatmul.mubr.msk.f32.gmra.mrb[34].mxu1 %vm1911_vm3, %v2501_v44  ;;  %v3502_v44 = vld [vmem:[%s6968_s8 + $0x30] sm:$0xff] }
0x1acd   :  { %v4674_v34 = vpack.c.bf16 %v3502_v44, %v3500_v49  ;;  %4707 = vmatpush3.bf16.msra.mxu1 %v4706_v8  ;;  %v3644_v49 = vld [vmem:[%s6969_s17 + $0x30] sm:$0xff]  ;;  %v3645_v44 = vld [vmem:[%s6969_s17 + $0x38] sm:$0xff] }
0x1ace   :  { %4709 = vmatprep.subr.bf16.mxu1 %v4708_v51  ;;  %v4714_v60 = vpack.c.bf16 %v3645_v44, %v3644_v49  ;;  %v4084_v44 = vld [vmem:[#allocation48] ss:$0 sm:$0xff] }
0x1acf   :  { %4675 = vmatpush1.bf16.msra.mxu0 %v4674_v34  ;;  %v3662_v34 = vld [vmem:[%s6969_s17 + $0xc0] sm:$0xff]  ;;  %v3445_v49 = vpop.permute.xlu1 %3444 }
0x1ad0   :  { %4677 = vmatprep.subr.bf16.mxu0 %v4676_v7  ;;  %v4716_v7 = vpack.c.bf16 %v3663_v29, %v3662_v34  ;;  %v3435_v29 = vpop.permute.xlu0 %3434 }
0x1ad1   :  { %4711 = vmatpush3.bf16.msra.mxu1 %v4710_v50 }
0x1ad2   :  { %4713 = vmatprep.subr.bf16.mxu1 %v4712_v41 }
0x1ad3   :  { %4679 = vmatpush1.bf16.msra.mxu0 %v4678_v0  ;;  %v3664_v0 = vld [vmem:[%s6969_s17 + $0xd0] sm:$0xff]  ;;  %v3467_v34 = vpop.permute.xlu1 %3466 }
0x1ad4   :  { %4681 = vmatprep.subr.bf16.mxu0 %v4680_v9  ;;  %v4720_v9 = vpack.c.bf16 %v3665_v2, %v3664_v0 }
0x1ad5   :  { %4715 = vmatpush3.bf16.msra.mxu1 %v4714_v60 }
0x1ad6   :  { %4717 = vmatprep.subr.bf16.mxu1 %v4716_v7 }
0x1ad7   :  { %4683 = vmatpush1.bf16.msra.mxu0 %v4682_v12  ;;  %v4722_v12 = vpack.c.bf16 %v3649_v11, %v3648_v10 }
0x1ad8   :  { %4685 = vmatprep.subr.bf16.mxu0 %v4684_v14 }
0x1ad9   :  { %4719 = vmatpush3.bf16.msra.mxu1 %v4718_v40  ;;  %v4085_v40 = vld [vmem:[#allocation50] ss:$0 sm:$0xff] }
0x1ada   :  { %4721 = vmatprep.subr.bf16.mxu1 %v4720_v9 }
0x1adb   :  { %4687 = vmatpush1.bf16.msra.mxu0 %v4686_v18 }
0x1adc   :  { %4689 = vmatprep.subr.bf16.mxu0 %v4688_v22 }
0x1add   :  { %4723 = vmatpush3.bf16.msra.mxu1 %v4722_v12 }
0x1adf   :  { %4691 = vmatpush1.bf16.msra.mxu0 %v4690_v26 }
0x1ae0   :  { %4693 = vmatprep.subr.bf16.mxu0 %v4692_v35 }
0x1ae3   :  { %4695 = vmatpush1.bf16.msra.mxu0 %v4694_v39 }
0x1ae4   :  { %4697 = vmatprep.subr.bf16.mxu0 %v4696_v52 }
0x1ae7   :  { %4699 = vmatpush1.bf16.msra.mxu0 %v4698_v55 }
0x1b8b   :  { %v4428_v13 = vpop.f32.mrb[28].mxu1 }
0x1b8c   :  { %v3243_v14 = vadd.f32 %v4428_v13, %v4079_v45  ;;  %v3237_v15 = vpop.f32.mrb[29].mxu1 }
0x1b8d   :  { %v3238_v17 = vadd.f32 %v4079_v45, %v3237_v15 }
0x1b8f   :  { %v3259_v18 = vadd.f32 %v3243_v14, %v3238_v17 }
0x1b93   :  { %v4431_v19 = vpop.f32.mrb[30].mxu1 }
0x1b94   :  { %v3247_v20 = vpop.f32.mrb[31].mxu1  ;;  %v3253_v24 = vadd.f32 %v4431_v19, %v4079_v45 }
0x1b95   :  { %v3248_v22 = vadd.f32 %v4079_v45, %v3247_v20 }
0x1b97   :  { %v3260_v25 = vadd.f32 %v3259_v18, %v3248_v22 }
0x1b99   :  { %v3261_v26 = vadd.f32 %v3260_v25, %v3253_v24 }
0x1b9b   :  { %v3262_v28 = vrot.slane %v3261_v26, 4  ;;  %v4450_v30 = vpop.f32.mrb[32].mxu1 }
0x1b9c   :  { %v3401_v35 = vpop.f32.mrb[33].mxu1  ;;  %v3407_v45 = vadd.f32 %v4450_v30, %v4086_v61 }
0x1b9d   :  { %v3263_v36 = vadd.f32 %v3262_v28, %v3261_v26  ;;  %v3402_v13 = vadd.f32 %v4086_v61, %v3401_v35 }
0x1b9f   :  { %v3264_v37 = vrot.slane %v3263_v36, 2  ;;  %v4453_v39 = vpop.f32.mrb[34].mxu1 }
0x1ba0   :  { %v3411_v42 = vpop.f32.mrb[35].mxu1 }
0x1ba1   :  { %v3265_v43 = vadd.f32 %v3264_v37, %v3263_v36  ;;  %v3412_v15 = vadd.f32 %v4086_v61, %v3411_v42 }
0x1ba3   :  { %v3266_v52 = vrot.slane %v3265_v43, 1 }
0x1ba5   :  { %v3267_v53 = vadd.f32 %v3266_v52, %v3265_v43 }
0x1ba7   :  { %v3268_v55 = vmul.f32 0.03125, %v3267_v53 }
0x1ba9   :  { %v3269_v47 = vmul.f32 %v3268_v55, %v3256_v54 }
0x1bab   :  { %v3274_v3 = vrot.slane %v3269_v47, %v6408_v23 }
0x1bad   :  { %v3276_v56 = vsub.f32 %v3238_v17, %v3274_v3  ;;  %v3277_v57 = vsub.f32 %v3243_v14, %v3274_v3  ;;  %v3278_v58 = vsub.f32 %v3248_v22, %v3274_v3  ;;  %v3279_v59 = vsub.f32 %v3253_v24, %v3274_v3  ;;  %v3475_v22 = vpop.permute.xlu1 %3474  ;;  %v3450_v24 = vpop.permute.xlu0 %3449 }
0x1bae   :  { %v3417_v14 = vadd.f32 %v4453_v39, %v4086_v61 }
0x1baf   :  { %v3280_v5 = vmul.f32 %v3276_v56, %v3276_v56  ;;  %v3281_v32 = vmul.f32 %v3277_v57, %v3277_v57  ;;  %v3282_v6 = vmul.f32 %v3278_v58, %v3278_v58  ;;  %v3283_v31 = vmul.f32 %v3279_v59, %v3279_v59 }
0x1bb0   :  { %v3302_v60 = vmul.f32 %v4084_v44, %v3278_v58  ;;  %v3301_v7 = vmul.f32 %v4084_v44, %v3277_v57  ;;  %v3300_v63 = vmul.f32 %v4084_v44, %v3276_v56  ;;  %v3303_v0 = vmul.f32 %v4084_v44, %v3279_v59  ;;  %v3666_v44 = vld [vmem:[%s6969_s17 + $0xe0] sm:$0xff] }
0x1bb1   :  { %v3284_v4 = vadd.f32 %v3281_v32, %v3280_v5  ;;  %v3471_v54 = vpop.permute.xlu0 %3470  ;;  %v3479_v42 = vpop.permute.xlu1 %3478 }
0x1bb3   :  { %v3285_v1 = vadd.f32 %v3284_v4, %v3282_v6 }
0x1bb5   :  { %v3286_v62 = vadd.f32 %v3285_v1, %v3283_v31 }
0x1bb7   :  { %v3287_v48 = vrot.slane %v3286_v62, 4 }
0x1bb9   :  { %v3288_v8 = vadd.f32 %v3287_v48, %v3286_v62 }
0x1bbb   :  { %v3289_v51 = vrot.slane %v3288_v8, 2 }
0x1bbd   :  { %v3290_v27 = vadd.f32 %v3289_v51, %v3288_v8 }
0x1bbf   :  { %v3291_v33 = vrot.slane %v3290_v27, 1 }
0x1bc1   :  { %v3292_v46 = vadd.f32 %v3291_v33, %v3290_v27 }
0x1bc3   :  { %v3293_v50 = vmul.f32 0.03125, %v3292_v46 }
0x1bc5   :  { %v3304_v41 = vadd.f32 1e-05, %v3293_v50 }
0x1bc7   :  { %4981 = vrsqrt.f32 %v3304_v41 }
0x1bd1   :  { %v4982_v2 = vpop.eup %4981 }
0x1bd2   :  { %v3307_v9 = vmul.f32 %v4982_v2, %v3301_v7  ;;  %v3306_v10 = vmul.f32 %v4982_v2, %v3300_v63  ;;  %v3309_v11 = vmul.f32 %v4982_v2, %v3303_v0  ;;  %v3308_v12 = vmul.f32 %v4982_v2, %v3302_v60  ;;  %v3650_v60 = vld [vmem:[%s6969_s17 + $0x60] sm:$0xff]  ;;  %v3651_v7 = vld [vmem:[%s6969_s17 + $0x68] sm:$0xff]  ;;  %v3668_v63 = vld [vmem:[%s6969_s17 + $0xf0] sm:$0xff] }
0x1bd3   :  { %v4726_v61 = vpack.c.bf16 %v3651_v7, %v3650_v60  ;;  %v3669_v0 = vld [vmem:[%s6969_s17 + $0xf8] sm:$0xff] }
0x1bd4   :  { %v3317_v17 = vadd.f32 %v4085_v40, %v3307_v9  ;;  %v3316_v18 = vadd.f32 %v4085_v40, %v3306_v10  ;;  %v3319_v19 = vadd.f32 %v4085_v40, %v3309_v11  ;;  %v3318_v20 = vadd.f32 %v4085_v40, %v3308_v12  ;;  %v3652_v40 = vld [vmem:[%s6969_s17 + $0x70] sm:$0xff]  ;;  %v3653_v9 = vld [vmem:[%s6969_s17 + $0x78] sm:$0xff]  ;;  %v3748_v11 = vld [vmem:[%s6970_s0] sm:$0xff] }
0x1bd5   :  { %v4728_v2 = vpack.c.bf16 %v3669_v0, %v3668_v63  ;;  %v4730_v10 = vpack.c.bf16 %v3653_v9, %v3652_v40  ;;  %v3749_v12 = vld [vmem:[%s6970_s0 + $0x8] sm:$0xff]  ;;  %v3848_v63 = vld [vmem:[%s6175_s29 + $0x30] sm:$0xff]  ;;  %v3849_v0 = vld [vmem:[%s6175_s29 + $0x38] sm:$0xff] }
0x1bd6   :  { %v3421_v25 = vadd.f32 %v3407_v45, %v3317_v17  ;;  %v3420_v26 = vadd.f32 %v3402_v13, %v3316_v18  ;;  %v3423_v28 = vadd.f32 %v3417_v14, %v3319_v19  ;;  %v3422_v36 = vadd.f32 %v3412_v15, %v3318_v20  ;;  %v3750_v45 = vld [vmem:[%s6970_s0 + $0x10] sm:$0xff]  ;;  %v3751_v15 = vld [vmem:[%s6970_s0 + $0x18] sm:$0xff]  ;;  %v3752_v18 = vld [vmem:[%s6970_s0 + $0x20] sm:$0xff] }
0x1bd7   :  { %v5931_v13 = vmov 0.0|0.0   ;;  %v4733_v14 = vpack.c.bf16 %v3749_v12, %v3748_v11  ;;  %v4736_v17 = vpack.c.bf16 %v3751_v15, %v3750_v45  ;;  %v3753_v19 = vld [vmem:[%s6970_s0 + $0x28] sm:$0xff]  ;;  %v4092_v40 = vld [vmem:[%s6170_s21] ss:$0 sm:$0xff]  ;;  %v4093_v45 = vld [vmem:[#allocation57] ss:$0 sm:$0xff] }
0x1bd8   :  { %v3425_v37 = vmax.f32 %v3421_v25, 0.0  ;;  %v3426_v43 = vmax.f32 %v3422_v36, 0.0  ;;  %v3424_v52 = vmax.f32 %v3420_v26, 0.0  ;;  %v3427_v53 = vmax.f32 %v3423_v28, 0.0  ;;  %4732 = vmatprep.subr.bf16.mxu0 %v5931_v13  ;;  %v3756_v26 = vld [vmem:[%s6970_s0 + $0x40] sm:$0xff]  ;;  %v3757_v28 = vld [vmem:[%s6970_s0 + $0x48] sm:$0xff] }
0x1bd9   :  { %v4739_v20 = vpack.c.bf16 %v3753_v19, %v3752_v18  ;;  %v4745_v36 = vpack.c.bf16 %v3757_v28, %v3756_v26 }
0x1bda   :  { %v3453_v55 = vadd.f32 %v3440_v38, %v3425_v37  ;;  %v3454_v30 = vadd.f32 %v3445_v49, %v3426_v43  ;;  %v3481_v35 = vadd.f32 %v3467_v34, %v3424_v52  ;;  %v3452_v39 = vadd.f32 %v3435_v29, %v3424_v52  ;;  %v3667_v34 = vld [vmem:[%s6969_s17 + $0xe8] sm:$0xff] }
0x1bdb   :  { %v3483_v47 = vadd.f32 %v3475_v22, %v3426_v43  ;;  %v3455_v3 = vadd.f32 %v3450_v24, %v3427_v53  ;;  %v3484_v56 = vadd.f32 %v3479_v42, %v3427_v53  ;;  %v3482_v57 = vadd.f32 %v3471_v54, %v3425_v37  ;;  %v3754_v22 = vld [vmem:[%s6970_s0 + $0x30] sm:$0xff]  ;;  %v3755_v24 = vld [vmem:[%s6970_s0 + $0x38] sm:$0xff]  ;;  %v3534_v53 = vpop.permute.xlu0 %3533 }
0x1bdc   :  { %v3456_v58 = vmax.f32 %v3452_v39, %v3453_v55  ;;  %v4724_v29 = vpack.c.bf16 %v3667_v34, %v3666_v44  ;;  %v4742_v25 = vpack.c.bf16 %v3755_v24, %v3754_v22  ;;  %v3758_v37 = vld [vmem:[%s6970_s0 + $0x50] sm:$0xff]  ;;  %v3759_v43 = vld [vmem:[%s6970_s0 + $0x58] sm:$0xff]  ;;  %v3539_v54 = vrot.slane %v3534_v53, %v6408_v23  ;;  %v4091_v34 = vld [vmem:[%s6971_s5] ss:$0 sm:$0xff] }
0x1bdd   :  { %v3457_v59 = vmax.f32 %v3454_v30, %v3455_v3  ;;  %v3486_v5 = vmax.f32 %v3483_v47, %v3484_v56  ;;  %v3485_v32 = vmax.f32 %v3481_v35, %v3482_v57  ;;  %v4748_v52 = vpack.c.bf16 %v3759_v43, %v3758_v37  ;;  %v3528_v55 = vld [vmem:[#allocation54] sm:$0x3]  ;;  %v3529_v39 = vld [vmem:[#allocation56] sm:$0x3] }
0x1bde   :  { %4725 = vmatprep.subr.bf16.mxu1 %v4724_v29  ;;  %v3540_v30 = vmul.f32 %v3539_v54, %v3528_v55  ;;  %v3548_v35 = vsub.s32 1, %v6405_v21  ;;  %v3627_v3 = vrot.slane %v3529_v39, %v6408_v23 }
0x1bdf   :  { %v3458_v6 = vmax.f32 %v3456_v58, %v3457_v59  ;;  %v3487_v4 = vmax.f32 %v3485_v32, %v3486_v5  ;;  %4727 = vmatpush3.bf16.msra.mxu1 %v4726_v61 }
0x1be0   :  { %4729 = vmatprep.subr.bf16.mxu1 %v4728_v2  ;;  %v3545_v42 = vrot.slane %v3540_v30, %v6408_v23  ;;  %v3549_v47 = vrot.slane %v3540_v30, %v3548_v35  ;;  %v3631_v57 = vrot.slane %v3529_v39, %v3548_v35  ;;  %v4766_v2 = vpack.c.bf16 %v3849_v0, %v3848_v63 }
0x1be1   :  { %v3459_v31 = vrot.slane %v3458_v6, 4  ;;  %v3488_v1 = vrot.slane %v3487_v4, 4 }
0x1be3   :  { %v3460_v62 = vmax.f32 %v3458_v6, %v3459_v31  ;;  %v3489_v48 = vmax.f32 %v3487_v4, %v3488_v1  ;;  %4731 = vmatpush3.bf16.msra.mxu1 %v4730_v10  ;;  %v3760_v31 = vld [vmem:[%s6970_s0 + $0x60] sm:$0xff]  ;;  %v3761_v1 = vld [vmem:[%s6970_s0 + $0x68] sm:$0xff] }
0x1be4   :  { %4756 = vmatprep.subr.bf16.mxu1 %v5931_v13  ;;  %v4751_v23 = vpack.c.bf16 %v3761_v1, %v3760_v31 }
0x1be5   :  { %v3461_v8 = vrot.slane %v3460_v62, 2  ;;  %v3490_v51 = vrot.slane %v3489_v48, 2 }
0x1be7   :  { %v3462_v27 = vmax.f32 %v3460_v62, %v3461_v8  ;;  %v3491_v33 = vmax.f32 %v3489_v48, %v3490_v51  ;;  %v3762_v62 = vld [vmem:[%s6970_s0 + $0x70] sm:$0xff]  ;;  %v3763_v48 = vld [vmem:[%s6970_s0 + $0x78] sm:$0xff]  ;;  %v3842_v51 = vld [vmem:[%s6175_s29] sm:$0xff] }
0x1be8   :  { %v4754_v8 = vpack.c.bf16 %v3763_v48, %v3762_v62 }
0x1be9   :  { %v3463_v46 = vrot.slane %v3462_v27, 1  ;;  %v3492_v38 = vrot.slane %v3491_v33, 1 }
0x1beb   :  { %v3464_v50 = vmax.f32 %v3462_v27, %v3463_v46  ;;  %v3493_v41 = vmax.f32 %v3491_v33, %v3492_v38  ;;  %v3843_v27 = vld [vmem:[%s6175_s29 + $0x8] sm:$0xff]  ;;  %v3844_v33 = vld [vmem:[%s6175_s29 + $0x10] sm:$0xff]  ;;  %v3845_v38 = vld [vmem:[%s6175_s29 + $0x18] sm:$0xff] }
0x1bec   :  { %v4757_v46 = vpack.c.bf16 %v3843_v27, %v3842_v51 }
0x1bed   :  { %v3495_v49 = vsel %vm3494_vm1, %v3464_v50, %v3493_v41  ;;  %v4760_v50 = vpack.c.bf16 %v3845_v38, %v3844_v33  ;;  %v3846_v41 = vld [vmem:[%s6175_s29 + $0x20] sm:$0xff] }
0x1bee   :  { %3617 = vmatmul.mubr.f32.vlgmr.msra.gmra.mrb[32].mxu0 %v3495_v49  ;;  %v3847_v49 = vld [vmem:[%s6175_s29 + $0x28] sm:$0xff] }
0x1bef   :  { %4734 = vmatpush3.bf16.msra.mxu0 %v4733_v14  ;;  %4486 = vmatprep.mubr.msk.f32.mxu0 %vm5932_vm4, %v5928_v16  ;;  %v4763_v44 = vpack.c.bf16 %v3847_v49, %v3846_v41 }
0x1bf0   :  { %4735 = vmatprep.subr.bf16.mxu0 %v5931_v13 }
0x1bf3   :  { %4737 = vmatpush3.bf16.msra.mxu0 %v4736_v17 }
0x1bf4   :  { %4738 = vmatprep.subr.bf16.mxu0 %v5931_v13 }
0x1bf7   :  { %4740 = vmatpush3.bf16.msra.mxu0 %v4739_v20 }
0x1bf8   :  { %4741 = vmatprep.subr.bf16.mxu0 %v5931_v13 }
0x1bfb   :  { %4743 = vmatpush3.bf16.msra.mxu0 %v4742_v25 }
0x1bfc   :  { %4744 = vmatprep.subr.bf16.mxu0 %v5931_v13 }
0x1bff   :  { %4746 = vmatpush3.bf16.msra.mxu0 %v4745_v36 }
0x1c00   :  { %4747 = vmatprep.subr.bf16.mxu0 %v5931_v13 }
0x1c03   :  { %4749 = vmatpush3.bf16.msra.mxu0 %v4748_v52 }
0x1c04   :  { %4750 = vmatprep.subr.bf16.mxu0 %v5931_v13 }
0x1c07   :  { %4752 = vmatpush3.bf16.msra.mxu0 %v4751_v23 }
0x1c08   :  { %4753 = vmatprep.subr.bf16.mxu0 %v5931_v13 }
0x1c0b   :  { %4755 = vmatpush3.bf16.msra.mxu0 %v4754_v8 }
0x1cc1   :  { %v3618_v56 = vpop.f32.mrb[32].mxu0 }
0x1cc2   :  { %v3619_v58 = vadd.f32 %v3618_v56, %v3545_v42  ;;  %v3620_v59 = vpop.f32.mrb[33].mxu0 }
0x1cc3   :  { %v3621_v5 = vadd.f32 %v3620_v59, %v3549_v47 }
0x1cc4   :  { %v3634_v32 = vadd.f32 %v3627_v3, %v3619_v58 }
0x1cc5   :  { %v3635_v6 = vadd.f32 %v3631_v57, %v3621_v5 }
0x1cc6   :  { %v3636_v21 = vmax.f32 %v3634_v32, 0.0 }
0x1cc7   :  { %v3637_v4 = vmax.f32 %v3635_v6, 0.0 }
0x1cc9   :  { %3741 = vmatprep.mubr.f32.mxu1 %v3637_v4 }
0x1cca   :  { %3742 = vmatmul.mubr.f32.vlgmr.msra.gmra.mrb[36].mxu1 %v3636_v21 }
0x1ccb   :  { %4505 = vmatprep.mubr.msk.f32.mxu1 %vm5932_vm4, %v5928_v16  ;;  %4758 = vmatpush3.bf16.msra.mxu1 %v4757_v46 }
0x1ccc   :  { %4759 = vmatprep.subr.bf16.mxu1 %v5931_v13 }
0x1ccf   :  { %4761 = vmatpush3.bf16.msra.mxu1 %v4760_v50 }
0x1cd0   :  { %4762 = vmatprep.subr.bf16.mxu1 %v5931_v13 }
0x1cd3   :  { %4764 = vmatpush3.bf16.msra.mxu1 %v4763_v44 }
0x1cd4   :  { %4765 = vmatprep.subr.bf16.mxu1 %v5931_v13 }
0x1cd7   :  { %4767 = vmatpush3.bf16.msra.mxu1 %v4766_v2 }
0x1d9d   :  { %v4235_v16 = vpop.f32.mrb[36].mxu1 }
0x1d9e   :  { %v4236_v29 = vpop.f32.mrb[37].mxu1 }
0x1d9f   :  { %v4237_v60 = vadd.f32 %v4236_v29, %v4235_v16 }
0x1da1   :  { %v3744_v7 = vadd.f32 %v4237_v60, %v4091_v34 }
0x1da3   :  { %v3747_v61 = vmax.f32 %v3744_v7, 0.0 }
0x1da5   :  { %4487 = vmatmul.mubr.f32.vlgmr.msra.gmra.mrb[34].mxu0 %v3747_v61 }
0x1e78   :  { %v3837_v9 = vpop.f32.mrb[34].mxu0 }
0x1e79   :  { %v3838_v10 = vadd.f32 %v4092_v40, %v3837_v9  ;;  %v4488_v11 = vpop.f32.mrb[35].mxu0 }
0x1e7b   :  { %v3841_v12 = vmax.f32 %v3838_v10, 0.0 }
0x1e7d   :  { %4506 = vmatmul.mubr.msk.f32.vlgmr.msra.gmra.mrb[38].mxu1 %vm1911_vm3, %v3841_v12 }
0x1f50   :  { %v3926_v13 = vpop.f32.mrb[38].mxu1 }
0x1f51   :  { %v3927_v14 = vadd.f32 %v4093_v45, %v3926_v13  ;;  %v4507_v15 = vpop.f32.mrb[39].mxu1 }
0x1f53   :  { %3931 = vst.msk [vmem:[#allocation59] sm:$0x3] %vm3930_vm5, %v3927_v14 }
0x1f54   :  { %5786 = shalt.err (!%p5783_p12)
}
0x1f55   :  { %s5787_s21 = scalar_lea.hbm %s6185_s19, 32 }
0x1f56   :  { %p5788_p13 = scmp.ne.s32.totalorder %s6185_s19, %s5787_s21  ;;  %p5791_p0 = scmp.lt.u32.totalorder %s5787_s21, %s6185_s19 }
0x1f58   :  { %p5793_p1 = pnand %p5791_p0, %p5788_p13 }
0x1f5a   :  { %5796 = shalt.err (!%p5793_p1)
}
0x1f5b   :  { %3941 = dma.vmem_to_hbm [thread:$0]  %s3939_s2, 32, %s6185_s19, [#allocation5]  }
0x1f5c   :  { %5835 = dma.done.wait [#allocation5], 32  }
0x1f5d   :  { %5836 = vsyncadd [#allocation5], 4294967264 }
0x1f5e   :  { %3945 = vsyncpa [#allocation4], 1 }
0x1f5f   :  { %3946 = vsyncpa [#allocation7], 1 }
0x1f60   :  { %3947 = vsyncpa [#allocation10], 1 }
0x1f61   :  { %3948 = vsyncpa [#allocation13], 1 }
0x1f62   :  { %3949 = vsyncpa [#allocation16], 1 }
0x1f63   :  { %3950 = vsyncpa [#allocation19], 1 }
0x1f64   :  { %3951 = vsyncpa [#allocation22], 1 }
0x1f65   :  { %3952 = vsyncpa [#allocation25], 1 }
0x1f66   :  { %3953 = vsyncpa [#allocation28], 1 }
0x1f67   :  { %3954 = vsyncpa [#allocation31], 1 }
0x1f68   :  { %3955 = vsyncpa [#allocation34], 1 }
0x1f69   :  { %3956 = vsyncpa [#allocation37], 1 }
0x1f6a   :  { %3957 = vsyncpa [#allocation40], 1 }
0x1f6b   :  { %3958 = vsyncpa [#allocation43], 1 }
0x1f6c   :  { %3959 = vsyncpa [#allocation46], 1 }
0x1f6d   :  { %3960 = vsyncpa [#allocation49], 1 }
0x1f6e   :  { %3961 = vsyncpa [#allocation52], 1 }
0x1f6f   :  { %3962 = vsyncpa [#allocation55], 1 }
0x1f70   :  { %3963 = vsyncpa [#allocation58], 1 }
0x1f71   :  { %3964 = vsyncpa [#allocation5], 1 }

</bundles_post_ra>
